<compile_context>
chip_gen: v5e
topology: v5e:2x2
jax: 0.10.0
libtpu: 0.0.40
codegen_flags: <defaults>
</compile_context>

<pallas_src>
import numpy as np
import jax
import jax.numpy as jnp
from jax.experimental import pallas as pl
from jax.experimental.pallas import tpu as pltpu

# Hyperparameters matching the PyTorch module defaults.
FUTURE_DAYS = 3
INPUT_SIZE = 1
HIDDEN_SIZE = 50
NUM_LAYERS = 2          # hard-wired as two explicit layers below
OUTPUT_SIZE = FUTURE_DAYS

# Padded / packed layout constants.
H_PAD = 128             # each gate padded to a full 128-lane slot
G4 = 4 * H_PAD          # 512 = stacked (i, f, g, o) gates
B_PAD = 8               # f32 sublane count
OUT_PAD = 128           # lane-dense FC output width


def _sig(x):
    # sigmoid(x) = 0.5 + 0.5 * tanh(0.5 * x): a single EUP push per gate.
    return 0.5 + 0.5 * jnp.tanh(0.5 * x)


def stock_predictor_kernel(x_ref, wih0b_ref, b0b_ref, whh0_ref, w1_ref, b1_ref,
                           wfc_ref, bfc_ref, out_ref):
    T, B, _ = x_ref.shape
    bf16 = jnp.bfloat16

    def gates(pre):
        # Gate slices land exactly on 128-lane vreg boundaries (free static slices).
        i = _sig(pre[:, 0 * H_PAD:1 * H_PAD])
        f = _sig(pre[:, 1 * H_PAD:2 * H_PAD])
        g = jnp.tanh(pre[:, 2 * H_PAD:3 * H_PAD])
        o = _sig(pre[:, 3 * H_PAD:4 * H_PAD])
        return i, f, g, o

    zeros = jnp.zeros((B, H_PAD), jnp.float32)   # h0 = c0 = 0, as in the PyTorch forward
    h0 = c0 = h1 = c1 = zeros

    # T is a small static constant -> plain Python loop = full unroll with concrete
    # indices (all slices static); carries are only 4 vregs so live ranges stay tiny.
    for t in range(T):
        # ---- layer 0: input_size == 1 -> input projection is just scale + bias,
        #      computed in-kernel per step (VPU work, independent of the carry so it
        #      overlaps the recurrent matmul latency).
        x_t = x_ref[t]                                   # (B, 1) f32, static index
        xproj_t = x_t * wih0b_ref[...] + b0b_ref[...]    # (B, 4*H_PAD) f32
        # Recurrent matmul: bf16 operands streamed from VMEM per use, f32 accumulate.
        pre0 = xproj_t + jnp.dot(h0.astype(bf16), whh0_ref[...],
                                 preferred_element_type=jnp.float32)
        i0, f0, g0, o0 = gates(pre0)
        c0 = f0 * c0 + i0 * g0
        h0 = o0 * jnp.tanh(c0)

        # ---- layer 1: single fused K=256 contraction over [h0 ; h1].
        hcat = jnp.concatenate([h0, h1], axis=1).astype(bf16)   # (B, 2*H_PAD)
        pre1 = (jnp.dot(hcat, w1_ref[...], preferred_element_type=jnp.float32)
                + b1_ref[...])
        i1, f1, g1, o1 = gates(pre1)
        c1 = f1 * c1 + i1 * g1
        h1 = o1 * jnp.tanh(c1)

    # fc(out[:, -1, :]) == h1_last @ Wfc_pad + bfc_pad ; lane-dense (B_PAD, 128) store.
    out_ref[...] = (jnp.dot(h1.astype(bf16), wfc_ref[...],
                            preferred_element_type=jnp.float32) + bfc_ref[...])


def init_params(key):
    """Deterministic synthetic parameters, PyTorch-style U(-1/sqrt(H), 1/sqrt(H)).

    Gate-stacked (i, f, g, o), already transposed: wih*: (4, in, H), whh*: (4, H, H),
    b*: (4, 1, H) combined bias (b_ih + b_hh), wfc: (H, OUT), bfc: (1, OUT).
    """
    bound = 1.0 / np.sqrt(HIDDEN_SIZE)
    keys = jax.random.split(key, 8)

    def u(k, shape):
        return jax.random.uniform(k, shape, jnp.float32, -bound, bound)

    return {
        "wih0": u(keys[0], (4, INPUT_SIZE, HIDDEN_SIZE)),
        "whh0": u(keys[1], (4, HIDDEN_SIZE, HIDDEN_SIZE)),
        "b0":   u(keys[2], (4, 1, HIDDEN_SIZE)),
        "wih1": u(keys[3], (4, HIDDEN_SIZE, HIDDEN_SIZE)),
        "whh1": u(keys[4], (4, HIDDEN_SIZE, HIDDEN_SIZE)),
        "b1":   u(keys[5], (4, 1, HIDDEN_SIZE)),
        "wfc":  u(keys[6], (HIDDEN_SIZE, OUTPUT_SIZE)),
        "bfc":  u(keys[7], (1, OUTPUT_SIZE)),
    }


def _pack_gate_cols(dst, w, row_offset):
    """Write (4, K, H) gate weights into dst rows [row_offset, row_offset+K),
    each gate in its own 128-lane column slot, zero-padded elsewhere."""
    K = w.shape[1]
    for g in range(4):
        dst = dst.at[row_offset:row_offset + K,
                     g * H_PAD:g * H_PAD + HIDDEN_SIZE].set(w[g])
    return dst


def _pack_gate_vec(v):
    """(4, 1, H) -> (4*H_PAD,): each gate in its own 128-lane slot, zero-padded."""
    vp = jnp.zeros((G4,), jnp.float32)
    for g in range(4):
        vp = vp.at[g * H_PAD:g * H_PAD + HIDDEN_SIZE].set(v[g, 0])
    return vp


def pack_params(p):
    """One-time packing / zero-padding of the PyTorch-layout params (outside the kernel).

    MXU operands (whh0, fused w1, wfc) are stored bf16; biases / layer-0 scale stay f32.
    """
    bf16 = jnp.bfloat16

    whh0 = _pack_gate_cols(jnp.zeros((H_PAD, G4), jnp.float32), p["whh0"], 0)

    # Fused layer-1 weight: rows [0:128) <- wih1 (input = h0), rows [128:256) <- whh1.
    w1 = jnp.zeros((2 * H_PAD, G4), jnp.float32)
    w1 = _pack_gate_cols(w1, p["wih1"], 0)
    w1 = _pack_gate_cols(w1, p["whh1"], H_PAD)

    wfc_p = jnp.zeros((H_PAD, OUT_PAD), jnp.float32)
    wfc_p = wfc_p.at[:HIDDEN_SIZE, :OUTPUT_SIZE].set(p["wfc"])
    bfc_p = jnp.zeros((B_PAD, OUT_PAD), jnp.float32)
    bfc_p = bfc_p.at[:, :OUTPUT_SIZE].set(p["bfc"])

    return {
        # Layer-0 input projection (input_size == 1): pre-broadcast over sublanes so
        # the in-kernel per-step projection is a single lane-broadcast multiply-add.
        "wih0b": jnp.broadcast_to(_pack_gate_vec(p["wih0"])[None, :], (B_PAD, G4)),
        "b0b":   jnp.broadcast_to(_pack_gate_vec(p["b0"])[None, :], (B_PAD, G4)),
        "whh0":  whh0.astype(bf16),                                        # (128, 512) bf16
        "w1":    w1.astype(bf16),                                          # (256, 512) bf16
        "b1":    jnp.broadcast_to(_pack_gate_vec(p["b1"])[None, :], (B_PAD, G4)),
        "wfc":   wfc_p.astype(bf16),                                       # (128, 128) bf16
        "bfc":   bfc_p,                                                    # (8, 128) f32
    }


@jax.jit
def stock_predictor_forward(x, packed):
    B, T, _ = x.shape
    # Only a tiny (T, B_PAD, 1) f32 input tile (~256 B) is built in the wrapper;
    # all heavy intermediates (xproj, gates) live only inside the kernel.
    x_pad = jnp.zeros((T, B_PAD, 1), jnp.float32).at[:, :B, 0].set(x[:, :, 0].T)

    args = (x_pad, packed["wih0b"], packed["b0b"], packed["whh0"],
            packed["w1"], packed["b1"], packed["wfc"], packed["bfc"])
    out_pad = pl.pallas_call(
        stock_predictor_kernel,
        out_shape=jax.ShapeDtypeStruct((B_PAD, OUT_PAD), jnp.float32),
        in_specs=[pl.BlockSpec(memory_space=pltpu.MemorySpace.VMEM)] * len(args),
        out_specs=pl.BlockSpec(memory_space=pltpu.MemorySpace.VMEM),
    )(*args)
    # Slice off batch / output padding (padding is zeros -> exact results).
    return out_pad[:B, :OUTPUT_SIZE]


def reference_forward(x, params):
    """Pure-JAX f32 reference (same math as PyTorch nn.LSTM + nn.Linear forward)."""
    B, T, _ = x.shape
    h0 = c0 = h1 = c1 = jnp.zeros((B, HIDDEN_SIZE), jnp.float32)

    def cell(x_t, h, c, wih, whh, b):
        i = jax.nn.sigmoid(x_t @ wih[0] + h @ whh[0] + b[0])
        f = jax.nn.sigmoid(x_t @ wih[1] + h @ whh[1] + b[1])
        g = jnp.tanh(x_t @ wih[2] + h @ whh[2] + b[2])
        o = jax.nn.sigmoid(x_t @ wih[3] + h @ whh[3] + b[3])
        c = f * c + i * g
        h = o * jnp.tanh(c)
        return h, c

    for t in range(T):
        x_t = x[:, t, :]
        h0, c0 = cell(x_t, h0, c0, params["wih0"], params["whh0"], params["b0"])
        h1, c1 = cell(h0, h1, c1, params["wih1"], params["whh1"], params["b1"])
    return h1 @ params["wfc"] + params["bfc"]


if __name__ == "__main__":
    B, T = 2, 8   # small batch / sequence length; input feature size = 1 per the module
    key = jax.random.PRNGKey(0)
    kx, kp = jax.random.split(key)
    x = jax.random.normal(kx, (B, T, INPUT_SIZE), dtype=jnp.float32)
    params = init_params(kp)
    packed = pack_params(params)

    out = stock_predictor_forward(x, packed)
    out = jax.block_until_ready(out)

    ref = reference_forward(x, params)
    # bf16 MXU operands (f32 accumulate) -> slightly looser tolerance than pure f32.
    if not np.allclose(np.asarray(out), np.asarray(ref), atol=3e-2, rtol=3e-2):
        raise AssertionError("Pallas kernel output does not match reference")
    assert out.shape == (B, OUTPUT_SIZE)

    print("KERNEL_OK")
</pallas_src>

<mosaic_0001>
module attributes {stable_mosaic.version = 11 : i64} {
  func.func @stock_predictor_kernel(%arg0: memref<8x8x1xf32, #tpu.memory_space<vmem>>, %arg1: memref<8x512xf32, #tpu.memory_space<vmem>>, %arg2: memref<8x512xf32, #tpu.memory_space<vmem>>, %arg3: memref<128x512xbf16, #tpu.memory_space<vmem>>, %arg4: memref<256x512xbf16, #tpu.memory_space<vmem>>, %arg5: memref<8x512xf32, #tpu.memory_space<vmem>>, %arg6: memref<128x128xbf16, #tpu.memory_space<vmem>>, %arg7: memref<8x128xf32, #tpu.memory_space<vmem>>, %arg8: memref<8x128xf32, #tpu.memory_space<vmem>>) attributes {dimension_semantics = [], scalar_prefetch = 0 : i64, scratch_operands = 0 : i64, tpu.core_type = #tpu.core_type<tc>} {
    %cst = arith.constant 0.000000e+00 : f32
    %0 = vector.broadcast %cst : f32 to vector<8x128xf32>
    %c0 = arith.constant 0 : index
    %c0_0 = arith.constant 0 : index
    %c0_1 = arith.constant 0 : index
    %1 = vector.load %arg0[%c0, %c0_0, %c0_1] : memref<8x8x1xf32, #tpu.memory_space<vmem>>, vector<1x8x1xf32>
    %2 = vector.shape_cast %1 : vector<1x8x1xf32> to vector<8x1xf32>
    %c0_2 = arith.constant 0 : index
    %c0_3 = arith.constant 0 : index
    %3 = vector.load %arg1[%c0_2, %c0_3] : memref<8x512xf32, #tpu.memory_space<vmem>>, vector<8x512xf32>
    %4 = vector.broadcast %2 : vector<8x1xf32> to vector<8x512xf32>
    %5 = arith.mulf %4, %3 : vector<8x512xf32>
    %c0_4 = arith.constant 0 : index
    %c0_5 = arith.constant 0 : index
    %6 = vector.load %arg2[%c0_4, %c0_5] : memref<8x512xf32, #tpu.memory_space<vmem>>, vector<8x512xf32>
    %7 = arith.addf %5, %6 : vector<8x512xf32>
    %8 = arith.truncf %0 : vector<8x128xf32> to vector<8x128xbf16>
    %c0_6 = arith.constant 0 : index
    %c0_7 = arith.constant 0 : index
    %9 = vector.load %arg3[%c0_6, %c0_7] : memref<128x512xbf16, #tpu.memory_space<vmem>>, vector<128x512xbf16>
    %cst_8 = arith.constant dense<0.000000e+00> : vector<8x512xf32>
    %10 = tpu.matmul %8, %9, %cst_8 {dimension_numbers = #tpu.dot_dimension_numbers<[1], [0], [0], [1], [0, 0, 1, 1], [], []>} : vector<8x128xbf16>, vector<128x512xbf16>, vector<8x512xf32> -> vector<8x512xf32>
    %11 = arith.addf %7, %10 : vector<8x512xf32>
    %12 = vector.extract_strided_slice %11 {offsets = [0, 0], sizes = [8, 128], strides = [1, 1]} : vector<8x512xf32> to vector<8x128xf32>
    %cst_9 = arith.constant 5.000000e-01 : f32
    %13 = vector.broadcast %cst_9 : f32 to vector<8x128xf32>
    %14 = arith.mulf %13, %12 : vector<8x128xf32>
    %15 = math.tanh %14 : vector<8x128xf32>
    %cst_10 = arith.constant 5.000000e-01 : f32
    %16 = vector.broadcast %cst_10 : f32 to vector<8x128xf32>
    %17 = arith.mulf %16, %15 : vector<8x128xf32>
    %cst_11 = arith.constant 5.000000e-01 : f32
    %18 = vector.broadcast %cst_11 : f32 to vector<8x128xf32>
    %19 = arith.addf %18, %17 : vector<8x128xf32>
    %20 = vector.extract_strided_slice %11 {offsets = [0, 128], sizes = [8, 128], strides = [1, 1]} : vector<8x512xf32> to vector<8x128xf32>
    %cst_12 = arith.constant 5.000000e-01 : f32
    %21 = vector.broadcast %cst_12 : f32 to vector<8x128xf32>
    %22 = arith.mulf %21, %20 : vector<8x128xf32>
    %23 = math.tanh %22 : vector<8x128xf32>
    %cst_13 = arith.constant 5.000000e-01 : f32
    %24 = vector.broadcast %cst_13 : f32 to vector<8x128xf32>
    %25 = arith.mulf %24, %23 : vector<8x128xf32>
    %cst_14 = arith.constant 5.000000e-01 : f32
    %26 = vector.broadcast %cst_14 : f32 to vector<8x128xf32>
    %27 = arith.addf %26, %25 : vector<8x128xf32>
    %28 = vector.extract_strided_slice %11 {offsets = [0, 256], sizes = [8, 128], strides = [1, 1]} : vector<8x512xf32> to vector<8x128xf32>
    %29 = math.tanh %28 : vector<8x128xf32>
    %30 = vector.extract_strided_slice %11 {offsets = [0, 384], sizes = [8, 128], strides = [1, 1]} : vector<8x512xf32> to vector<8x128xf32>
    %cst_15 = arith.constant 5.000000e-01 : f32
    %31 = vector.broadcast %cst_15 : f32 to vector<8x128xf32>
    %32 = arith.mulf %31, %30 : vector<8x128xf32>
    %33 = math.tanh %32 : vector<8x128xf32>
    %cst_16 = arith.constant 5.000000e-01 : f32
    %34 = vector.broadcast %cst_16 : f32 to vector<8x128xf32>
    %35 = arith.mulf %34, %33 : vector<8x128xf32>
    %cst_17 = arith.constant 5.000000e-01 : f32
    %36 = vector.broadcast %cst_17 : f32 to vector<8x128xf32>
    %37 = arith.addf %36, %35 : vector<8x128xf32>
    %38 = arith.mulf %27, %0 : vector<8x128xf32>
    %39 = arith.mulf %19, %29 : vector<8x128xf32>
    %40 = arith.addf %38, %39 : vector<8x128xf32>
    %41 = math.tanh %40 : vector<8x128xf32>
    %42 = arith.mulf %37, %41 : vector<8x128xf32>
    %43 = tpu.concatenate %42, %0 in 1 : vector<8x128xf32>, vector<8x128xf32> -> vector<8x256xf32>
    %44 = arith.truncf %43 : vector<8x256xf32> to vector<8x256xbf16>
    %c0_18 = arith.constant 0 : index
    %c0_19 = arith.constant 0 : index
    %45 = vector.load %arg4[%c0_18, %c0_19] : memref<256x512xbf16, #tpu.memory_space<vmem>>, vector<256x512xbf16>
    %cst_20 = arith.constant dense<0.000000e+00> : vector<8x512xf32>
    %46 = tpu.matmul %44, %45, %cst_20 {dimension_numbers = #tpu.dot_dimension_numbers<[1], [0], [0], [1], [0, 0, 1, 1], [], []>} : vector<8x256xbf16>, vector<256x512xbf16>, vector<8x512xf32> -> vector<8x512xf32>
    %c0_21 = arith.constant 0 : index
    %c0_22 = arith.constant 0 : index
    %47 = vector.load %arg5[%c0_21, %c0_22] : memref<8x512xf32, #tpu.memory_space<vmem>>, vector<8x512xf32>
    %48 = arith.addf %46, %47 : vector<8x512xf32>
    %49 = vector.extract_strided_slice %48 {offsets = [0, 0], sizes = [8, 128], strides = [1, 1]} : vector<8x512xf32> to vector<8x128xf32>
    %cst_23 = arith.constant 5.000000e-01 : f32
    %50 = vector.broadcast %cst_23 : f32 to vector<8x128xf32>
    %51 = arith.mulf %50, %49 : vector<8x128xf32>
    %52 = math.tanh %51 : vector<8x128xf32>
    %cst_24 = arith.constant 5.000000e-01 : f32
    %53 = vector.broadcast %cst_24 : f32 to vector<8x128xf32>
    %54 = arith.mulf %53, %52 : vector<8x128xf32>
    %cst_25 = arith.constant 5.000000e-01 : f32
    %55 = vector.broadcast %cst_25 : f32 to vector<8x128xf32>
    %56 = arith.addf %55, %54 : vector<8x128xf32>
    %57 = vector.extract_strided_slice %48 {offsets = [0, 128], sizes = [8, 128], strides = [1, 1]} : vector<8x512xf32> to vector<8x128xf32>
    %cst_26 = arith.constant 5.000000e-01 : f32
    %58 = vector.broadcast %cst_26 : f32 to vector<8x128xf32>
    %59 = arith.mulf %58, %57 : vector<8x128xf32>
    %60 = math.tanh %59 : vector<8x128xf32>
    %cst_27 = arith.constant 5.000000e-01 : f32
    %61 = vector.broadcast %cst_27 : f32 to vector<8x128xf32>
    %62 = arith.mulf %61, %60 : vector<8x128xf32>
    %cst_28 = arith.constant 5.000000e-01 : f32
    %63 = vector.broadcast %cst_28 : f32 to vector<8x128xf32>
    %64 = arith.addf %63, %62 : vector<8x128xf32>
    %65 = vector.extract_strided_slice %48 {offsets = [0, 256], sizes = [8, 128], strides = [1, 1]} : vector<8x512xf32> to vector<8x128xf32>
    %66 = math.tanh %65 : vector<8x128xf32>
    %67 = vector.extract_strided_slice %48 {offsets = [0, 384], sizes = [8, 128], strides = [1, 1]} : vector<8x512xf32> to vector<8x128xf32>
    %cst_29 = arith.constant 5.000000e-01 : f32
    %68 = vector.broadcast %cst_29 : f32 to vector<8x128xf32>
    %69 = arith.mulf %68, %67 : vector<8x128xf32>
    %70 = math.tanh %69 : vector<8x128xf32>
    %cst_30 = arith.constant 5.000000e-01 : f32
    %71 = vector.broadcast %cst_30 : f32 to vector<8x128xf32>
    %72 = arith.mulf %71, %70 : vector<8x128xf32>
    %cst_31 = arith.constant 5.000000e-01 : f32
    %73 = vector.broadcast %cst_31 : f32 to vector<8x128xf32>
    %74 = arith.addf %73, %72 : vector<8x128xf32>
    %75 = arith.mulf %64, %0 : vector<8x128xf32>
    %76 = arith.mulf %56, %66 : vector<8x128xf32>
    %77 = arith.addf %75, %76 : vector<8x128xf32>
    %78 = math.tanh %77 : vector<8x128xf32>
    %79 = arith.mulf %74, %78 : vector<8x128xf32>
    %c1 = arith.constant 1 : index
    %c0_32 = arith.constant 0 : index
    %c0_33 = arith.constant 0 : index
    %80 = vector.load %arg0[%c1, %c0_32, %c0_33] : memref<8x8x1xf32, #tpu.memory_space<vmem>>, vector<1x8x1xf32>
    %81 = vector.shape_cast %80 : vector<1x8x1xf32> to vector<8x1xf32>
    %c0_34 = arith.constant 0 : index
    %c0_35 = arith.constant 0 : index
    %82 = vector.load %arg1[%c0_34, %c0_35] : memref<8x512xf32, #tpu.memory_space<vmem>>, vector<8x512xf32>
    %83 = vector.broadcast %81 : vector<8x1xf32> to vector<8x512xf32>
    %84 = arith.mulf %83, %82 : vector<8x512xf32>
    %c0_36 = arith.constant 0 : index
    %c0_37 = arith.constant 0 : index
    %85 = vector.load %arg2[%c0_36, %c0_37] : memref<8x512xf32, #tpu.memory_space<vmem>>, vector<8x512xf32>
    %86 = arith.addf %84, %85 : vector<8x512xf32>
    %87 = arith.truncf %42 : vector<8x128xf32> to vector<8x128xbf16>
    %c0_38 = arith.constant 0 : index
    %c0_39 = arith.constant 0 : index
    %88 = vector.load %arg3[%c0_38, %c0_39] : memref<128x512xbf16, #tpu.memory_space<vmem>>, vector<128x512xbf16>
    %cst_40 = arith.constant dense<0.000000e+00> : vector<8x512xf32>
    %89 = tpu.matmul %87, %88, %cst_40 {dimension_numbers = #tpu.dot_dimension_numbers<[1], [0], [0], [1], [0, 0, 1, 1], [], []>} : vector<8x128xbf16>, vector<128x512xbf16>, vector<8x512xf32> -> vector<8x512xf32>
    %90 = arith.addf %86, %89 : vector<8x512xf32>
    %91 = vector.extract_strided_slice %90 {offsets = [0, 0], sizes = [8, 128], strides = [1, 1]} : vector<8x512xf32> to vector<8x128xf32>
    %cst_41 = arith.constant 5.000000e-01 : f32
    %92 = vector.broadcast %cst_41 : f32 to vector<8x128xf32>
    %93 = arith.mulf %92, %91 : vector<8x128xf32>
    %94 = math.tanh %93 : vector<8x128xf32>
    %cst_42 = arith.constant 5.000000e-01 : f32
    %95 = vector.broadcast %cst_42 : f32 to vector<8x128xf32>
    %96 = arith.mulf %95, %94 : vector<8x128xf32>
    %cst_43 = arith.constant 5.000000e-01 : f32
    %97 = vector.broadcast %cst_43 : f32 to vector<8x128xf32>
    %98 = arith.addf %97, %96 : vector<8x128xf32>
    %99 = vector.extract_strided_slice %90 {offsets = [0, 128], sizes = [8, 128], strides = [1, 1]} : vector<8x512xf32> to vector<8x128xf32>
    %cst_44 = arith.constant 5.000000e-01 : f32
    %100 = vector.broadcast %cst_44 : f32 to vector<8x128xf32>
    %101 = arith.mulf %100, %99 : vector<8x128xf32>
    %102 = math.tanh %101 : vector<8x128xf32>
    %cst_45 = arith.constant 5.000000e-01 : f32
    %103 = vector.broadcast %cst_45 : f32 to vector<8x128xf32>
    %104 = arith.mulf %103, %102 : vector<8x128xf32>
    %cst_46 = arith.constant 5.000000e-01 : f32
    %105 = vector.broadcast %cst_46 : f32 to vector<8x128xf32>
    %106 = arith.addf %105, %104 : vector<8x128xf32>
    %107 = vector.extract_strided_slice %90 {offsets = [0, 256], sizes = [8, 128], strides = [1, 1]} : vector<8x512xf32> to vector<8x128xf32>
    %108 = math.tanh %107 : vector<8x128xf32>
    %109 = vector.extract_strided_slice %90 {offsets = [0, 384], sizes = [8, 128], strides = [1, 1]} : vector<8x512xf32> to vector<8x128xf32>
    %cst_47 = arith.constant 5.000000e-01 : f32
    %110 = vector.broadcast %cst_47 : f32 to vector<8x128xf32>
    %111 = arith.mulf %110, %109 : vector<8x128xf32>
    %112 = math.tanh %111 : vector<8x128xf32>
    %cst_48 = arith.constant 5.000000e-01 : f32
    %113 = vector.broadcast %cst_48 : f32 to vector<8x128xf32>
    %114 = arith.mulf %113, %112 : vector<8x128xf32>
    %cst_49 = arith.constant 5.000000e-01 : f32
    %115 = vector.broadcast %cst_49 : f32 to vector<8x128xf32>
    %116 = arith.addf %115, %114 : vector<8x128xf32>
    %117 = arith.mulf %106, %40 : vector<8x128xf32>
    %118 = arith.mulf %98, %108 : vector<8x128xf32>
    %119 = arith.addf %117, %118 : vector<8x128xf32>
    %120 = math.tanh %119 : vector<8x128xf32>
    %121 = arith.mulf %116, %120 : vector<8x128xf32>
    %122 = tpu.concatenate %121, %79 in 1 : vector<8x128xf32>, vector<8x128xf32> -> vector<8x256xf32>
    %123 = arith.truncf %122 : vector<8x256xf32> to vector<8x256xbf16>
    %c0_50 = arith.constant 0 : index
    %c0_51 = arith.constant 0 : index
    %124 = vector.load %arg4[%c0_50, %c0_51] : memref<256x512xbf16, #tpu.memory_space<vmem>>, vector<256x512xbf16>
    %cst_52 = arith.constant dense<0.000000e+00> : vector<8x512xf32>
    %125 = tpu.matmul %123, %124, %cst_52 {dimension_numbers = #tpu.dot_dimension_numbers<[1], [0], [0], [1], [0, 0, 1, 1], [], []>} : vector<8x256xbf16>, vector<256x512xbf16>, vector<8x512xf32> -> vector<8x512xf32>
    %c0_53 = arith.constant 0 : index
    %c0_54 = arith.constant 0 : index
    %126 = vector.load %arg5[%c0_53, %c0_54] : memref<8x512xf32, #tpu.memory_space<vmem>>, vector<8x512xf32>
    %127 = arith.addf %125, %126 : vector<8x512xf32>
    %128 = vector.extract_strided_slice %127 {offsets = [0, 0], sizes = [8, 128], strides = [1, 1]} : vector<8x512xf32> to vector<8x128xf32>
    %cst_55 = arith.constant 5.000000e-01 : f32
    %129 = vector.broadcast %cst_55 : f32 to vector<8x128xf32>
    %130 = arith.mulf %129, %128 : vector<8x128xf32>
    %131 = math.tanh %130 : vector<8x128xf32>
    %cst_56 = arith.constant 5.000000e-01 : f32
    %132 = vector.broadcast %cst_56 : f32 to vector<8x128xf32>
    %133 = arith.mulf %132, %131 : vector<8x128xf32>
    %cst_57 = arith.constant 5.000000e-01 : f32
    %134 = vector.broadcast %cst_57 : f32 to vector<8x128xf32>
    %135 = arith.addf %134, %133 : vector<8x128xf32>
    %136 = vector.extract_strided_slice %127 {offsets = [0, 128], sizes = [8, 128], strides = [1, 1]} : vector<8x512xf32> to vector<8x128xf32>
    %cst_58 = arith.constant 5.000000e-01 : f32
    %137 = vector.broadcast %cst_58 : f32 to vector<8x128xf32>
    %138 = arith.mulf %137, %136 : vector<8x128xf32>
    %139 = math.tanh %138 : vector<8x128xf32>
    %cst_59 = arith.constant 5.000000e-01 : f32
    %140 = vector.broadcast %cst_59 : f32 to vector<8x128xf32>
    %141 = arith.mulf %140, %139 : vector<8x128xf32>
    %cst_60 = arith.constant 5.000000e-01 : f32
    %142 = vector.broadcast %cst_60 : f32 to vector<8x128xf32>
    %143 = arith.addf %142, %141 : vector<8x128xf32>
    %144 = vector.extract_strided_slice %127 {offsets = [0, 256], sizes = [8, 128], strides = [1, 1]} : vector<8x512xf32> to vector<8x128xf32>
    %145 = math.tanh %144 : vector<8x128xf32>
    %146 = vector.extract_strided_slice %127 {offsets = [0, 384], sizes = [8, 128], strides = [1, 1]} : vector<8x512xf32> to vector<8x128xf32>
    %cst_61 = arith.constant 5.000000e-01 : f32
    %147 = vector.broadcast %cst_61 : f32 to vector<8x128xf32>
    %148 = arith.mulf %147, %146 : vector<8x128xf32>
    %149 = math.tanh %148 : vector<8x128xf32>
    %cst_62 = arith.constant 5.000000e-01 : f32
    %150 = vector.broadcast %cst_62 : f32 to vector<8x128xf32>
    %151 = arith.mulf %150, %149 : vector<8x128xf32>
    %cst_63 = arith.constant 5.000000e-01 : f32
    %152 = vector.broadcast %cst_63 : f32 to vector<8x128xf32>
    %153 = arith.addf %152, %151 : vector<8x128xf32>
    %154 = arith.mulf %143, %77 : vector<8x128xf32>
    %155 = arith.mulf %135, %145 : vector<8x128xf32>
    %156 = arith.addf %154, %155 : vector<8x128xf32>
    %157 = math.tanh %156 : vector<8x128xf32>
    %158 = arith.mulf %153, %157 : vector<8x128xf32>
    %c2 = arith.constant 2 : index
    %c0_64 = arith.constant 0 : index
    %c0_65 = arith.constant 0 : index
    %159 = vector.load %arg0[%c2, %c0_64, %c0_65] : memref<8x8x1xf32, #tpu.memory_space<vmem>>, vector<1x8x1xf32>
    %160 = vector.shape_cast %159 : vector<1x8x1xf32> to vector<8x1xf32>
    %c0_66 = arith.constant 0 : index
    %c0_67 = arith.constant 0 : index
    %161 = vector.load %arg1[%c0_66, %c0_67] : memref<8x512xf32, #tpu.memory_space<vmem>>, vector<8x512xf32>
    %162 = vector.broadcast %160 : vector<8x1xf32> to vector<8x512xf32>
    %163 = arith.mulf %162, %161 : vector<8x512xf32>
    %c0_68 = arith.constant 0 : index
    %c0_69 = arith.constant 0 : index
    %164 = vector.load %arg2[%c0_68, %c0_69] : memref<8x512xf32, #tpu.memory_space<vmem>>, vector<8x512xf32>
    %165 = arith.addf %163, %164 : vector<8x512xf32>
    %166 = arith.truncf %121 : vector<8x128xf32> to vector<8x128xbf16>
    %c0_70 = arith.constant 0 : index
    %c0_71 = arith.constant 0 : index
    %167 = vector.load %arg3[%c0_70, %c0_71] : memref<128x512xbf16, #tpu.memory_space<vmem>>, vector<128x512xbf16>
    %cst_72 = arith.constant dense<0.000000e+00> : vector<8x512xf32>
    %168 = tpu.matmul %166, %167, %cst_72 {dimension_numbers = #tpu.dot_dimension_numbers<[1], [0], [0], [1], [0, 0, 1, 1], [], []>} : vector<8x128xbf16>, vector<128x512xbf16>, vector<8x512xf32> -> vector<8x512xf32>
    %169 = arith.addf %165, %168 : vector<8x512xf32>
    %170 = vector.extract_strided_slice %169 {offsets = [0, 0], sizes = [8, 128], strides = [1, 1]} : vector<8x512xf32> to vector<8x128xf32>
    %cst_73 = arith.constant 5.000000e-01 : f32
    %171 = vector.broadcast %cst_73 : f32 to vector<8x128xf32>
    %172 = arith.mulf %171, %170 : vector<8x128xf32>
    %173 = math.tanh %172 : vector<8x128xf32>
    %cst_74 = arith.constant 5.000000e-01 : f32
    %174 = vector.broadcast %cst_74 : f32 to vector<8x128xf32>
    %175 = arith.mulf %174, %173 : vector<8x128xf32>
    %cst_75 = arith.constant 5.000000e-01 : f32
    %176 = vector.broadcast %cst_75 : f32 to vector<8x128xf32>
    %177 = arith.addf %176, %175 : vector<8x128xf32>
    %178 = vector.extract_strided_slice %169 {offsets = [0, 128], sizes = [8, 128], strides = [1, 1]} : vector<8x512xf32> to vector<8x128xf32>
    %cst_76 = arith.constant 5.000000e-01 : f32
    %179 = vector.broadcast %cst_76 : f32 to vector<8x128xf32>
    %180 = arith.mulf %179, %178 : vector<8x128xf32>
    %181 = math.tanh %180 : vector<8x128xf32>
    %cst_77 = arith.constant 5.000000e-01 : f32
    %182 = vector.broadcast %cst_77 : f32 to vector<8x128xf32>
    %183 = arith.mulf %182, %181 : vector<8x128xf32>
    %cst_78 = arith.constant 5.000000e-01 : f32
    %184 = vector.broadcast %cst_78 : f32 to vector<8x128xf32>
    %185 = arith.addf %184, %183 : vector<8x128xf32>
    %186 = vector.extract_strided_slice %169 {offsets = [0, 256], sizes = [8, 128], strides = [1, 1]} : vector<8x512xf32> to vector<8x128xf32>
    %187 = math.tanh %186 : vector<8x128xf32>
    %188 = vector.extract_strided_slice %169 {offsets = [0, 384], sizes = [8, 128], strides = [1, 1]} : vector<8x512xf32> to vector<8x128xf32>
    %cst_79 = arith.constant 5.000000e-01 : f32
    %189 = vector.broadcast %cst_79 : f32 to vector<8x128xf32>
    %190 = arith.mulf %189, %188 : vector<8x128xf32>
    %191 = math.tanh %190 : vector<8x128xf32>
    %cst_80 = arith.constant 5.000000e-01 : f32
    %192 = vector.broadcast %cst_80 : f32 to vector<8x128xf32>
    %193 = arith.mulf %192, %191 : vector<8x128xf32>
    %cst_81 = arith.constant 5.000000e-01 : f32
    %194 = vector.broadcast %cst_81 : f32 to vector<8x128xf32>
    %195 = arith.addf %194, %193 : vector<8x128xf32>
    %196 = arith.mulf %185, %119 : vector<8x128xf32>
    %197 = arith.mulf %177, %187 : vector<8x128xf32>
    %198 = arith.addf %196, %197 : vector<8x128xf32>
    %199 = math.tanh %198 : vector<8x128xf32>
    %200 = arith.mulf %195, %199 : vector<8x128xf32>
    %201 = tpu.concatenate %200, %158 in 1 : vector<8x128xf32>, vector<8x128xf32> -> vector<8x256xf32>
    %202 = arith.truncf %201 : vector<8x256xf32> to vector<8x256xbf16>
    %c0_82 = arith.constant 0 : index
    %c0_83 = arith.constant 0 : index
    %203 = vector.load %arg4[%c0_82, %c0_83] : memref<256x512xbf16, #tpu.memory_space<vmem>>, vector<256x512xbf16>
    %cst_84 = arith.constant dense<0.000000e+00> : vector<8x512xf32>
    %204 = tpu.matmul %202, %203, %cst_84 {dimension_numbers = #tpu.dot_dimension_numbers<[1], [0], [0], [1], [0, 0, 1, 1], [], []>} : vector<8x256xbf16>, vector<256x512xbf16>, vector<8x512xf32> -> vector<8x512xf32>
    %c0_85 = arith.constant 0 : index
    %c0_86 = arith.constant 0 : index
    %205 = vector.load %arg5[%c0_85, %c0_86] : memref<8x512xf32, #tpu.memory_space<vmem>>, vector<8x512xf32>
    %206 = arith.addf %204, %205 : vector<8x512xf32>
    %207 = vector.extract_strided_slice %206 {offsets = [0, 0], sizes = [8, 128], strides = [1, 1]} : vector<8x512xf32> to vector<8x128xf32>
    %cst_87 = arith.constant 5.000000e-01 : f32
    %208 = vector.broadcast %cst_87 : f32 to vector<8x128xf32>
    %209 = arith.mulf %208, %207 : vector<8x128xf32>
    %210 = math.tanh %209 : vector<8x128xf32>
    %cst_88 = arith.constant 5.000000e-01 : f32
    %211 = vector.broadcast %cst_88 : f32 to vector<8x128xf32>
    %212 = arith.mulf %211, %210 : vector<8x128xf32>
    %cst_89 = arith.constant 5.000000e-01 : f32
    %213 = vector.broadcast %cst_89 : f32 to vector<8x128xf32>
    %214 = arith.addf %213, %212 : vector<8x128xf32>
    %215 = vector.extract_strided_slice %206 {offsets = [0, 128], sizes = [8, 128], strides = [1, 1]} : vector<8x512xf32> to vector<8x128xf32>
    %cst_90 = arith.constant 5.000000e-01 : f32
    %216 = vector.broadcast %cst_90 : f32 to vector<8x128xf32>
    %217 = arith.mulf %216, %215 : vector<8x128xf32>
    %218 = math.tanh %217 : vector<8x128xf32>
    %cst_91 = arith.constant 5.000000e-01 : f32
    %219 = vector.broadcast %cst_91 : f32 to vector<8x128xf32>
    %220 = arith.mulf %219, %218 : vector<8x128xf32>
    %cst_92 = arith.constant 5.000000e-01 : f32
    %221 = vector.broadcast %cst_92 : f32 to vector<8x128xf32>
    %222 = arith.addf %221, %220 : vector<8x128xf32>
    %223 = vector.extract_strided_slice %206 {offsets = [0, 256], sizes = [8, 128], strides = [1, 1]} : vector<8x512xf32> to vector<8x128xf32>
    %224 = math.tanh %223 : vector<8x128xf32>
    %225 = vector.extract_strided_slice %206 {offsets = [0, 384], sizes = [8, 128], strides = [1, 1]} : vector<8x512xf32> to vector<8x128xf32>
    %cst_93 = arith.constant 5.000000e-01 : f32
    %226 = vector.broadcast %cst_93 : f32 to vector<8x128xf32>
    %227 = arith.mulf %226, %225 : vector<8x128xf32>
    %228 = math.tanh %227 : vector<8x128xf32>
    %cst_94 = arith.constant 5.000000e-01 : f32
    %229 = vector.broadcast %cst_94 : f32 to vector<8x128xf32>
    %230 = arith.mulf %229, %228 : vector<8x128xf32>
    %cst_95 = arith.constant 5.000000e-01 : f32
    %231 = vector.broadcast %cst_95 : f32 to vector<8x128xf32>
    %232 = arith.addf %231, %230 : vector<8x128xf32>
    %233 = arith.mulf %222, %156 : vector<8x128xf32>
    %234 = arith.mulf %214, %224 : vector<8x128xf32>
    %235 = arith.addf %233, %234 : vector<8x128xf32>
    %236 = math.tanh %235 : vector<8x128xf32>
    %237 = arith.mulf %232, %236 : vector<8x128xf32>
    %c3 = arith.constant 3 : index
    %c0_96 = arith.constant 0 : index
    %c0_97 = arith.constant 0 : index
    %238 = vector.load %arg0[%c3, %c0_96, %c0_97] : memref<8x8x1xf32, #tpu.memory_space<vmem>>, vector<1x8x1xf32>
    %239 = vector.shape_cast %238 : vector<1x8x1xf32> to vector<8x1xf32>
    %c0_98 = arith.constant 0 : index
    %c0_99 = arith.constant 0 : index
    %240 = vector.load %arg1[%c0_98, %c0_99] : memref<8x512xf32, #tpu.memory_space<vmem>>, vector<8x512xf32>
    %241 = vector.broadcast %239 : vector<8x1xf32> to vector<8x512xf32>
    %242 = arith.mulf %241, %240 : vector<8x512xf32>
    %c0_100 = arith.constant 0 : index
    %c0_101 = arith.constant 0 : index
    %243 = vector.load %arg2[%c0_100, %c0_101] : memref<8x512xf32, #tpu.memory_space<vmem>>, vector<8x512xf32>
    %244 = arith.addf %242, %243 : vector<8x512xf32>
    %245 = arith.truncf %200 : vector<8x128xf32> to vector<8x128xbf16>
    %c0_102 = arith.constant 0 : index
    %c0_103 = arith.constant 0 : index
    %246 = vector.load %arg3[%c0_102, %c0_103] : memref<128x512xbf16, #tpu.memory_space<vmem>>, vector<128x512xbf16>
    %cst_104 = arith.constant dense<0.000000e+00> : vector<8x512xf32>
    %247 = tpu.matmul %245, %246, %cst_104 {dimension_numbers = #tpu.dot_dimension_numbers<[1], [0], [0], [1], [0, 0, 1, 1], [], []>} : vector<8x128xbf16>, vector<128x512xbf16>, vector<8x512xf32> -> vector<8x512xf32>
    %248 = arith.addf %244, %247 : vector<8x512xf32>
    %249 = vector.extract_strided_slice %248 {offsets = [0, 0], sizes = [8, 128], strides = [1, 1]} : vector<8x512xf32> to vector<8x128xf32>
    %cst_105 = arith.constant 5.000000e-01 : f32
    %250 = vector.broadcast %cst_105 : f32 to vector<8x128xf32>
    %251 = arith.mulf %250, %249 : vector<8x128xf32>
    %252 = math.tanh %251 : vector<8x128xf32>
    %cst_106 = arith.constant 5.000000e-01 : f32
    %253 = vector.broadcast %cst_106 : f32 to vector<8x128xf32>
    %254 = arith.mulf %253, %252 : vector<8x128xf32>
    %cst_107 = arith.constant 5.000000e-01 : f32
    %255 = vector.broadcast %cst_107 : f32 to vector<8x128xf32>
    %256 = arith.addf %255, %254 : vector<8x128xf32>
    %257 = vector.extract_strided_slice %248 {offsets = [0, 128], sizes = [8, 128], strides = [1, 1]} : vector<8x512xf32> to vector<8x128xf32>
    %cst_108 = arith.constant 5.000000e-01 : f32
    %258 = vector.broadcast %cst_108 : f32 to vector<8x128xf32>
    %259 = arith.mulf %258, %257 : vector<8x128xf32>
    %260 = math.tanh %259 : vector<8x128xf32>
    %cst_109 = arith.constant 5.000000e-01 : f32
    %261 = vector.broadcast %cst_109 : f32 to vector<8x128xf32>
    %262 = arith.mulf %261, %260 : vector<8x128xf32>
    %cst_110 = arith.constant 5.000000e-01 : f32
    %263 = vector.broadcast %cst_110 : f32 to vector<8x128xf32>
    %264 = arith.addf %263, %262 : vector<8x128xf32>
    %265 = vector.extract_strided_slice %248 {offsets = [0, 256], sizes = [8, 128], strides = [1, 1]} : vector<8x512xf32> to vector<8x128xf32>
    %266 = math.tanh %265 : vector<8x128xf32>
    %267 = vector.extract_strided_slice %248 {offsets = [0, 384], sizes = [8, 128], strides = [1, 1]} : vector<8x512xf32> to vector<8x128xf32>
    %cst_111 = arith.constant 5.000000e-01 : f32
    %268 = vector.broadcast %cst_111 : f32 to vector<8x128xf32>
    %269 = arith.mulf %268, %267 : vector<8x128xf32>
    %270 = math.tanh %269 : vector<8x128xf32>
    %cst_112 = arith.constant 5.000000e-01 : f32
    %271 = vector.broadcast %cst_112 : f32 to vector<8x128xf32>
    %272 = arith.mulf %271, %270 : vector<8x128xf32>
    %cst_113 = arith.constant 5.000000e-01 : f32
    %273 = vector.broadcast %cst_113 : f32 to vector<8x128xf32>
    %274 = arith.addf %273, %272 : vector<8x128xf32>
    %275 = arith.mulf %264, %198 : vector<8x128xf32>
    %276 = arith.mulf %256, %266 : vector<8x128xf32>
    %277 = arith.addf %275, %276 : vector<8x128xf32>
    %278 = math.tanh %277 : vector<8x128xf32>
    %279 = arith.mulf %274, %278 : vector<8x128xf32>
    %280 = tpu.concatenate %279, %237 in 1 : vector<8x128xf32>, vector<8x128xf32> -> vector<8x256xf32>
    %281 = arith.truncf %280 : vector<8x256xf32> to vector<8x256xbf16>
    %c0_114 = arith.constant 0 : index
    %c0_115 = arith.constant 0 : index
    %282 = vector.load %arg4[%c0_114, %c0_115] : memref<256x512xbf16, #tpu.memory_space<vmem>>, vector<256x512xbf16>
    %cst_116 = arith.constant dense<0.000000e+00> : vector<8x512xf32>
    %283 = tpu.matmul %281, %282, %cst_116 {dimension_numbers = #tpu.dot_dimension_numbers<[1], [0], [0], [1], [0, 0, 1, 1], [], []>} : vector<8x256xbf16>, vector<256x512xbf16>, vector<8x512xf32> -> vector<8x512xf32>
    %c0_117 = arith.constant 0 : index
    %c0_118 = arith.constant 0 : index
    %284 = vector.load %arg5[%c0_117, %c0_118] : memref<8x512xf32, #tpu.memory_space<vmem>>, vector<8x512xf32>
    %285 = arith.addf %283, %284 : vector<8x512xf32>
    %286 = vector.extract_strided_slice %285 {offsets = [0, 0], sizes = [8, 128], strides = [1, 1]} : vector<8x512xf32> to vector<8x128xf32>
    %cst_119 = arith.constant 5.000000e-01 : f32
    %287 = vector.broadcast %cst_119 : f32 to vector<8x128xf32>
    %288 = arith.mulf %287, %286 : vector<8x128xf32>
    %289 = math.tanh %288 : vector<8x128xf32>
    %cst_120 = arith.constant 5.000000e-01 : f32
    %290 = vector.broadcast %cst_120 : f32 to vector<8x128xf32>
    %291 = arith.mulf %290, %289 : vector<8x128xf32>
    %cst_121 = arith.constant 5.000000e-01 : f32
    %292 = vector.broadcast %cst_121 : f32 to vector<8x128xf32>
    %293 = arith.addf %292, %291 : vector<8x128xf32>
    %294 = vector.extract_strided_slice %285 {offsets = [0, 128], sizes = [8, 128], strides = [1, 1]} : vector<8x512xf32> to vector<8x128xf32>
    %cst_122 = arith.constant 5.000000e-01 : f32
    %295 = vector.broadcast %cst_122 : f32 to vector<8x128xf32>
    %296 = arith.mulf %295, %294 : vector<8x128xf32>
    %297 = math.tanh %296 : vector<8x128xf32>
    %cst_123 = arith.constant 5.000000e-01 : f32
    %298 = vector.broadcast %cst_123 : f32 to vector<8x128xf32>
    %299 = arith.mulf %298, %297 : vector<8x128xf32>
    %cst_124 = arith.constant 5.000000e-01 : f32
    %300 = vector.broadcast %cst_124 : f32 to vector<8x128xf32>
    %301 = arith.addf %300, %299 : vector<8x128xf32>
    %302 = vector.extract_strided_slice %285 {offsets = [0, 256], sizes = [8, 128], strides = [1, 1]} : vector<8x512xf32> to vector<8x128xf32>
    %303 = math.tanh %302 : vector<8x128xf32>
    %304 = vector.extract_strided_slice %285 {offsets = [0, 384], sizes = [8, 128], strides = [1, 1]} : vector<8x512xf32> to vector<8x128xf32>
    %cst_125 = arith.constant 5.000000e-01 : f32
    %305 = vector.broadcast %cst_125 : f32 to vector<8x128xf32>
    %306 = arith.mulf %305, %304 : vector<8x128xf32>
    %307 = math.tanh %306 : vector<8x128xf32>
    %cst_126 = arith.constant 5.000000e-01 : f32
    %308 = vector.broadcast %cst_126 : f32 to vector<8x128xf32>
    %309 = arith.mulf %308, %307 : vector<8x128xf32>
    %cst_127 = arith.constant 5.000000e-01 : f32
    %310 = vector.broadcast %cst_127 : f32 to vector<8x128xf32>
    %311 = arith.addf %310, %309 : vector<8x128xf32>
    %312 = arith.mulf %301, %235 : vector<8x128xf32>
    %313 = arith.mulf %293, %303 : vector<8x128xf32>
    %314 = arith.addf %312, %313 : vector<8x128xf32>
    %315 = math.tanh %314 : vector<8x128xf32>
    %316 = arith.mulf %311, %315 : vector<8x128xf32>
    %c4 = arith.constant 4 : index
    %c0_128 = arith.constant 0 : index
    %c0_129 = arith.constant 0 : index
    %317 = vector.load %arg0[%c4, %c0_128, %c0_129] : memref<8x8x1xf32, #tpu.memory_space<vmem>>, vector<1x8x1xf32>
    %318 = vector.shape_cast %317 : vector<1x8x1xf32> to vector<8x1xf32>
    %c0_130 = arith.constant 0 : index
    %c0_131 = arith.constant 0 : index
    %319 = vector.load %arg1[%c0_130, %c0_131] : memref<8x512xf32, #tpu.memory_space<vmem>>, vector<8x512xf32>
    %320 = vector.broadcast %318 : vector<8x1xf32> to vector<8x512xf32>
    %321 = arith.mulf %320, %319 : vector<8x512xf32>
    %c0_132 = arith.constant 0 : index
    %c0_133 = arith.constant 0 : index
    %322 = vector.load %arg2[%c0_132, %c0_133] : memref<8x512xf32, #tpu.memory_space<vmem>>, vector<8x512xf32>
    %323 = arith.addf %321, %322 : vector<8x512xf32>
    %324 = arith.truncf %279 : vector<8x128xf32> to vector<8x128xbf16>
    %c0_134 = arith.constant 0 : index
    %c0_135 = arith.constant 0 : index
    %325 = vector.load %arg3[%c0_134, %c0_135] : memref<128x512xbf16, #tpu.memory_space<vmem>>, vector<128x512xbf16>
    %cst_136 = arith.constant dense<0.000000e+00> : vector<8x512xf32>
    %326 = tpu.matmul %324, %325, %cst_136 {dimension_numbers = #tpu.dot_dimension_numbers<[1], [0], [0], [1], [0, 0, 1, 1], [], []>} : vector<8x128xbf16>, vector<128x512xbf16>, vector<8x512xf32> -> vector<8x512xf32>
    %327 = arith.addf %323, %326 : vector<8x512xf32>
    %328 = vector.extract_strided_slice %327 {offsets = [0, 0], sizes = [8, 128], strides = [1, 1]} : vector<8x512xf32> to vector<8x128xf32>
    %cst_137 = arith.constant 5.000000e-01 : f32
    %329 = vector.broadcast %cst_137 : f32 to vector<8x128xf32>
    %330 = arith.mulf %329, %328 : vector<8x128xf32>
    %331 = math.tanh %330 : vector<8x128xf32>
    %cst_138 = arith.constant 5.000000e-01 : f32
    %332 = vector.broadcast %cst_138 : f32 to vector<8x128xf32>
    %333 = arith.mulf %332, %331 : vector<8x128xf32>
    %cst_139 = arith.constant 5.000000e-01 : f32
    %334 = vector.broadcast %cst_139 : f32 to vector<8x128xf32>
    %335 = arith.addf %334, %333 : vector<8x128xf32>
    %336 = vector.extract_strided_slice %327 {offsets = [0, 128], sizes = [8, 128], strides = [1, 1]} : vector<8x512xf32> to vector<8x128xf32>
    %cst_140 = arith.constant 5.000000e-01 : f32
    %337 = vector.broadcast %cst_140 : f32 to vector<8x128xf32>
    %338 = arith.mulf %337, %336 : vector<8x128xf32>
    %339 = math.tanh %338 : vector<8x128xf32>
    %cst_141 = arith.constant 5.000000e-01 : f32
    %340 = vector.broadcast %cst_141 : f32 to vector<8x128xf32>
    %341 = arith.mulf %340, %339 : vector<8x128xf32>
    %cst_142 = arith.constant 5.000000e-01 : f32
    %342 = vector.broadcast %cst_142 : f32 to vector<8x128xf32>
    %343 = arith.addf %342, %341 : vector<8x128xf32>
    %344 = vector.extract_strided_slice %327 {offsets = [0, 256], sizes = [8, 128], strides = [1, 1]} : vector<8x512xf32> to vector<8x128xf32>
    %345 = math.tanh %344 : vector<8x128xf32>
    %346 = vector.extract_strided_slice %327 {offsets = [0, 384], sizes = [8, 128], strides = [1, 1]} : vector<8x512xf32> to vector<8x128xf32>
    %cst_143 = arith.constant 5.000000e-01 : f32
    %347 = vector.broadcast %cst_143 : f32 to vector<8x128xf32>
    %348 = arith.mulf %347, %346 : vector<8x128xf32>
    %349 = math.tanh %348 : vector<8x128xf32>
    %cst_144 = arith.constant 5.000000e-01 : f32
    %350 = vector.broadcast %cst_144 : f32 to vector<8x128xf32>
    %351 = arith.mulf %350, %349 : vector<8x128xf32>
    %cst_145 = arith.constant 5.000000e-01 : f32
    %352 = vector.broadcast %cst_145 : f32 to vector<8x128xf32>
    %353 = arith.addf %352, %351 : vector<8x128xf32>
    %354 = arith.mulf %343, %277 : vector<8x128xf32>
    %355 = arith.mulf %335, %345 : vector<8x128xf32>
    %356 = arith.addf %354, %355 : vector<8x128xf32>
    %357 = math.tanh %356 : vector<8x128xf32>
    %358 = arith.mulf %353, %357 : vector<8x128xf32>
    %359 = tpu.concatenate %358, %316 in 1 : vector<8x128xf32>, vector<8x128xf32> -> vector<8x256xf32>
    %360 = arith.truncf %359 : vector<8x256xf32> to vector<8x256xbf16>
    %c0_146 = arith.constant 0 : index
    %c0_147 = arith.constant 0 : index
    %361 = vector.load %arg4[%c0_146, %c0_147] : memref<256x512xbf16, #tpu.memory_space<vmem>>, vector<256x512xbf16>
    %cst_148 = arith.constant dense<0.000000e+00> : vector<8x512xf32>
    %362 = tpu.matmul %360, %361, %cst_148 {dimension_numbers = #tpu.dot_dimension_numbers<[1], [0], [0], [1], [0, 0, 1, 1], [], []>} : vector<8x256xbf16>, vector<256x512xbf16>, vector<8x512xf32> -> vector<8x512xf32>
    %c0_149 = arith.constant 0 : index
    %c0_150 = arith.constant 0 : index
    %363 = vector.load %arg5[%c0_149, %c0_150] : memref<8x512xf32, #tpu.memory_space<vmem>>, vector<8x512xf32>
    %364 = arith.addf %362, %363 : vector<8x512xf32>
    %365 = vector.extract_strided_slice %364 {offsets = [0, 0], sizes = [8, 128], strides = [1, 1]} : vector<8x512xf32> to vector<8x128xf32>
    %cst_151 = arith.constant 5.000000e-01 : f32
    %366 = vector.broadcast %cst_151 : f32 to vector<8x128xf32>
    %367 = arith.mulf %366, %365 : vector<8x128xf32>
    %368 = math.tanh %367 : vector<8x128xf32>
    %cst_152 = arith.constant 5.000000e-01 : f32
    %369 = vector.broadcast %cst_152 : f32 to vector<8x128xf32>
    %370 = arith.mulf %369, %368 : vector<8x128xf32>
    %cst_153 = arith.constant 5.000000e-01 : f32
    %371 = vector.broadcast %cst_153 : f32 to vector<8x128xf32>
    %372 = arith.addf %371, %370 : vector<8x128xf32>
    %373 = vector.extract_strided_slice %364 {offsets = [0, 128], sizes = [8, 128], strides = [1, 1]} : vector<8x512xf32> to vector<8x128xf32>
    %cst_154 = arith.constant 5.000000e-01 : f32
    %374 = vector.broadcast %cst_154 : f32 to vector<8x128xf32>
    %375 = arith.mulf %374, %373 : vector<8x128xf32>
    %376 = math.tanh %375 : vector<8x128xf32>
    %cst_155 = arith.constant 5.000000e-01 : f32
    %377 = vector.broadcast %cst_155 : f32 to vector<8x128xf32>
    %378 = arith.mulf %377, %376 : vector<8x128xf32>
    %cst_156 = arith.constant 5.000000e-01 : f32
    %379 = vector.broadcast %cst_156 : f32 to vector<8x128xf32>
    %380 = arith.addf %379, %378 : vector<8x128xf32>
    %381 = vector.extract_strided_slice %364 {offsets = [0, 256], sizes = [8, 128], strides = [1, 1]} : vector<8x512xf32> to vector<8x128xf32>
    %382 = math.tanh %381 : vector<8x128xf32>
    %383 = vector.extract_strided_slice %364 {offsets = [0, 384], sizes = [8, 128], strides = [1, 1]} : vector<8x512xf32> to vector<8x128xf32>
    %cst_157 = arith.constant 5.000000e-01 : f32
    %384 = vector.broadcast %cst_157 : f32 to vector<8x128xf32>
    %385 = arith.mulf %384, %383 : vector<8x128xf32>
    %386 = math.tanh %385 : vector<8x128xf32>
    %cst_158 = arith.constant 5.000000e-01 : f32
    %387 = vector.broadcast %cst_158 : f32 to vector<8x128xf32>
    %388 = arith.mulf %387, %386 : vector<8x128xf32>
    %cst_159 = arith.constant 5.000000e-01 : f32
    %389 = vector.broadcast %cst_159 : f32 to vector<8x128xf32>
    %390 = arith.addf %389, %388 : vector<8x128xf32>
    %391 = arith.mulf %380, %314 : vector<8x128xf32>
    %392 = arith.mulf %372, %382 : vector<8x128xf32>
    %393 = arith.addf %391, %392 : vector<8x128xf32>
    %394 = math.tanh %393 : vector<8x128xf32>
    %395 = arith.mulf %390, %394 : vector<8x128xf32>
    %c5 = arith.constant 5 : index
    %c0_160 = arith.constant 0 : index
    %c0_161 = arith.constant 0 : index
    %396 = vector.load %arg0[%c5, %c0_160, %c0_161] : memref<8x8x1xf32, #tpu.memory_space<vmem>>, vector<1x8x1xf32>
    %397 = vector.shape_cast %396 : vector<1x8x1xf32> to vector<8x1xf32>
    %c0_162 = arith.constant 0 : index
    %c0_163 = arith.constant 0 : index
    %398 = vector.load %arg1[%c0_162, %c0_163] : memref<8x512xf32, #tpu.memory_space<vmem>>, vector<8x512xf32>
    %399 = vector.broadcast %397 : vector<8x1xf32> to vector<8x512xf32>
    %400 = arith.mulf %399, %398 : vector<8x512xf32>
    %c0_164 = arith.constant 0 : index
    %c0_165 = arith.constant 0 : index
    %401 = vector.load %arg2[%c0_164, %c0_165] : memref<8x512xf32, #tpu.memory_space<vmem>>, vector<8x512xf32>
    %402 = arith.addf %400, %401 : vector<8x512xf32>
    %403 = arith.truncf %358 : vector<8x128xf32> to vector<8x128xbf16>
    %c0_166 = arith.constant 0 : index
    %c0_167 = arith.constant 0 : index
    %404 = vector.load %arg3[%c0_166, %c0_167] : memref<128x512xbf16, #tpu.memory_space<vmem>>, vector<128x512xbf16>
    %cst_168 = arith.constant dense<0.000000e+00> : vector<8x512xf32>
    %405 = tpu.matmul %403, %404, %cst_168 {dimension_numbers = #tpu.dot_dimension_numbers<[1], [0], [0], [1], [0, 0, 1, 1], [], []>} : vector<8x128xbf16>, vector<128x512xbf16>, vector<8x512xf32> -> vector<8x512xf32>
    %406 = arith.addf %402, %405 : vector<8x512xf32>
    %407 = vector.extract_strided_slice %406 {offsets = [0, 0], sizes = [8, 128], strides = [1, 1]} : vector<8x512xf32> to vector<8x128xf32>
    %cst_169 = arith.constant 5.000000e-01 : f32
    %408 = vector.broadcast %cst_169 : f32 to vector<8x128xf32>
    %409 = arith.mulf %408, %407 : vector<8x128xf32>
    %410 = math.tanh %409 : vector<8x128xf32>
    %cst_170 = arith.constant 5.000000e-01 : f32
    %411 = vector.broadcast %cst_170 : f32 to vector<8x128xf32>
    %412 = arith.mulf %411, %410 : vector<8x128xf32>
    %cst_171 = arith.constant 5.000000e-01 : f32
    %413 = vector.broadcast %cst_171 : f32 to vector<8x128xf32>
    %414 = arith.addf %413, %412 : vector<8x128xf32>
    %415 = vector.extract_strided_slice %406 {offsets = [0, 128], sizes = [8, 128], strides = [1, 1]} : vector<8x512xf32> to vector<8x128xf32>
    %cst_172 = arith.constant 5.000000e-01 : f32
    %416 = vector.broadcast %cst_172 : f32 to vector<8x128xf32>
    %417 = arith.mulf %416, %415 : vector<8x128xf32>
    %418 = math.tanh %417 : vector<8x128xf32>
    %cst_173 = arith.constant 5.000000e-01 : f32
    %419 = vector.broadcast %cst_173 : f32 to vector<8x128xf32>
    %420 = arith.mulf %419, %418 : vector<8x128xf32>
    %cst_174 = arith.constant 5.000000e-01 : f32
    %421 = vector.broadcast %cst_174 : f32 to vector<8x128xf32>
    %422 = arith.addf %421, %420 : vector<8x128xf32>
    %423 = vector.extract_strided_slice %406 {offsets = [0, 256], sizes = [8, 128], strides = [1, 1]} : vector<8x512xf32> to vector<8x128xf32>
    %424 = math.tanh %423 : vector<8x128xf32>
    %425 = vector.extract_strided_slice %406 {offsets = [0, 384], sizes = [8, 128], strides = [1, 1]} : vector<8x512xf32> to vector<8x128xf32>
    %cst_175 = arith.constant 5.000000e-01 : f32
    %426 = vector.broadcast %cst_175 : f32 to vector<8x128xf32>
    %427 = arith.mulf %426, %425 : vector<8x128xf32>
    %428 = math.tanh %427 : vector<8x128xf32>
    %cst_176 = arith.constant 5.000000e-01 : f32
    %429 = vector.broadcast %cst_176 : f32 to vector<8x128xf32>
    %430 = arith.mulf %429, %428 : vector<8x128xf32>
    %cst_177 = arith.constant 5.000000e-01 : f32
    %431 = vector.broadcast %cst_177 : f32 to vector<8x128xf32>
    %432 = arith.addf %431, %430 : vector<8x128xf32>
    %433 = arith.mulf %422, %356 : vector<8x128xf32>
    %434 = arith.mulf %414, %424 : vector<8x128xf32>
    %435 = arith.addf %433, %434 : vector<8x128xf32>
    %436 = math.tanh %435 : vector<8x128xf32>
    %437 = arith.mulf %432, %436 : vector<8x128xf32>
    %438 = tpu.concatenate %437, %395 in 1 : vector<8x128xf32>, vector<8x128xf32> -> vector<8x256xf32>
    %439 = arith.truncf %438 : vector<8x256xf32> to vector<8x256xbf16>
    %c0_178 = arith.constant 0 : index
    %c0_179 = arith.constant 0 : index
    %440 = vector.load %arg4[%c0_178, %c0_179] : memref<256x512xbf16, #tpu.memory_space<vmem>>, vector<256x512xbf16>
    %cst_180 = arith.constant dense<0.000000e+00> : vector<8x512xf32>
    %441 = tpu.matmul %439, %440, %cst_180 {dimension_numbers = #tpu.dot_dimension_numbers<[1], [0], [0], [1], [0, 0, 1, 1], [], []>} : vector<8x256xbf16>, vector<256x512xbf16>, vector<8x512xf32> -> vector<8x512xf32>
    %c0_181 = arith.constant 0 : index
    %c0_182 = arith.constant 0 : index
    %442 = vector.load %arg5[%c0_181, %c0_182] : memref<8x512xf32, #tpu.memory_space<vmem>>, vector<8x512xf32>
    %443 = arith.addf %441, %442 : vector<8x512xf32>
    %444 = vector.extract_strided_slice %443 {offsets = [0, 0], sizes = [8, 128], strides = [1, 1]} : vector<8x512xf32> to vector<8x128xf32>
    %cst_183 = arith.constant 5.000000e-01 : f32
    %445 = vector.broadcast %cst_183 : f32 to vector<8x128xf32>
    %446 = arith.mulf %445, %444 : vector<8x128xf32>
    %447 = math.tanh %446 : vector<8x128xf32>
    %cst_184 = arith.constant 5.000000e-01 : f32
    %448 = vector.broadcast %cst_184 : f32 to vector<8x128xf32>
    %449 = arith.mulf %448, %447 : vector<8x128xf32>
    %cst_185 = arith.constant 5.000000e-01 : f32
    %450 = vector.broadcast %cst_185 : f32 to vector<8x128xf32>
    %451 = arith.addf %450, %449 : vector<8x128xf32>
    %452 = vector.extract_strided_slice %443 {offsets = [0, 128], sizes = [8, 128], strides = [1, 1]} : vector<8x512xf32> to vector<8x128xf32>
    %cst_186 = arith.constant 5.000000e-01 : f32
    %453 = vector.broadcast %cst_186 : f32 to vector<8x128xf32>
    %454 = arith.mulf %453, %452 : vector<8x128xf32>
    %455 = math.tanh %454 : vector<8x128xf32>
    %cst_187 = arith.constant 5.000000e-01 : f32
    %456 = vector.broadcast %cst_187 : f32 to vector<8x128xf32>
    %457 = arith.mulf %456, %455 : vector<8x128xf32>
    %cst_188 = arith.constant 5.000000e-01 : f32
    %458 = vector.broadcast %cst_188 : f32 to vector<8x128xf32>
    %459 = arith.addf %458, %457 : vector<8x128xf32>
    %460 = vector.extract_strided_slice %443 {offsets = [0, 256], sizes = [8, 128], strides = [1, 1]} : vector<8x512xf32> to vector<8x128xf32>
    %461 = math.tanh %460 : vector<8x128xf32>
    %462 = vector.extract_strided_slice %443 {offsets = [0, 384], sizes = [8, 128], strides = [1, 1]} : vector<8x512xf32> to vector<8x128xf32>
    %cst_189 = arith.constant 5.000000e-01 : f32
    %463 = vector.broadcast %cst_189 : f32 to vector<8x128xf32>
    %464 = arith.mulf %463, %462 : vector<8x128xf32>
    %465 = math.tanh %464 : vector<8x128xf32>
    %cst_190 = arith.constant 5.000000e-01 : f32
    %466 = vector.broadcast %cst_190 : f32 to vector<8x128xf32>
    %467 = arith.mulf %466, %465 : vector<8x128xf32>
    %cst_191 = arith.constant 5.000000e-01 : f32
    %468 = vector.broadcast %cst_191 : f32 to vector<8x128xf32>
    %469 = arith.addf %468, %467 : vector<8x128xf32>
    %470 = arith.mulf %459, %393 : vector<8x128xf32>
    %471 = arith.mulf %451, %461 : vector<8x128xf32>
    %472 = arith.addf %470, %471 : vector<8x128xf32>
    %473 = math.tanh %472 : vector<8x128xf32>
    %474 = arith.mulf %469, %473 : vector<8x128xf32>
    %c6 = arith.constant 6 : index
    %c0_192 = arith.constant 0 : index
    %c0_193 = arith.constant 0 : index
    %475 = vector.load %arg0[%c6, %c0_192, %c0_193] : memref<8x8x1xf32, #tpu.memory_space<vmem>>, vector<1x8x1xf32>
    %476 = vector.shape_cast %475 : vector<1x8x1xf32> to vector<8x1xf32>
    %c0_194 = arith.constant 0 : index
    %c0_195 = arith.constant 0 : index
    %477 = vector.load %arg1[%c0_194, %c0_195] : memref<8x512xf32, #tpu.memory_space<vmem>>, vector<8x512xf32>
    %478 = vector.broadcast %476 : vector<8x1xf32> to vector<8x512xf32>
    %479 = arith.mulf %478, %477 : vector<8x512xf32>
    %c0_196 = arith.constant 0 : index
    %c0_197 = arith.constant 0 : index
    %480 = vector.load %arg2[%c0_196, %c0_197] : memref<8x512xf32, #tpu.memory_space<vmem>>, vector<8x512xf32>
    %481 = arith.addf %479, %480 : vector<8x512xf32>
    %482 = arith.truncf %437 : vector<8x128xf32> to vector<8x128xbf16>
    %c0_198 = arith.constant 0 : index
    %c0_199 = arith.constant 0 : index
    %483 = vector.load %arg3[%c0_198, %c0_199] : memref<128x512xbf16, #tpu.memory_space<vmem>>, vector<128x512xbf16>
    %cst_200 = arith.constant dense<0.000000e+00> : vector<8x512xf32>
    %484 = tpu.matmul %482, %483, %cst_200 {dimension_numbers = #tpu.dot_dimension_numbers<[1], [0], [0], [1], [0, 0, 1, 1], [], []>} : vector<8x128xbf16>, vector<128x512xbf16>, vector<8x512xf32> -> vector<8x512xf32>
    %485 = arith.addf %481, %484 : vector<8x512xf32>
    %486 = vector.extract_strided_slice %485 {offsets = [0, 0], sizes = [8, 128], strides = [1, 1]} : vector<8x512xf32> to vector<8x128xf32>
    %cst_201 = arith.constant 5.000000e-01 : f32
    %487 = vector.broadcast %cst_201 : f32 to vector<8x128xf32>
    %488 = arith.mulf %487, %486 : vector<8x128xf32>
    %489 = math.tanh %488 : vector<8x128xf32>
    %cst_202 = arith.constant 5.000000e-01 : f32
    %490 = vector.broadcast %cst_202 : f32 to vector<8x128xf32>
    %491 = arith.mulf %490, %489 : vector<8x128xf32>
    %cst_203 = arith.constant 5.000000e-01 : f32
    %492 = vector.broadcast %cst_203 : f32 to vector<8x128xf32>
    %493 = arith.addf %492, %491 : vector<8x128xf32>
    %494 = vector.extract_strided_slice %485 {offsets = [0, 128], sizes = [8, 128], strides = [1, 1]} : vector<8x512xf32> to vector<8x128xf32>
    %cst_204 = arith.constant 5.000000e-01 : f32
    %495 = vector.broadcast %cst_204 : f32 to vector<8x128xf32>
    %496 = arith.mulf %495, %494 : vector<8x128xf32>
    %497 = math.tanh %496 : vector<8x128xf32>
    %cst_205 = arith.constant 5.000000e-01 : f32
    %498 = vector.broadcast %cst_205 : f32 to vector<8x128xf32>
    %499 = arith.mulf %498, %497 : vector<8x128xf32>
    %cst_206 = arith.constant 5.000000e-01 : f32
    %500 = vector.broadcast %cst_206 : f32 to vector<8x128xf32>
    %501 = arith.addf %500, %499 : vector<8x128xf32>
    %502 = vector.extract_strided_slice %485 {offsets = [0, 256], sizes = [8, 128], strides = [1, 1]} : vector<8x512xf32> to vector<8x128xf32>
    %503 = math.tanh %502 : vector<8x128xf32>
    %504 = vector.extract_strided_slice %485 {offsets = [0, 384], sizes = [8, 128], strides = [1, 1]} : vector<8x512xf32> to vector<8x128xf32>
    %cst_207 = arith.constant 5.000000e-01 : f32
    %505 = vector.broadcast %cst_207 : f32 to vector<8x128xf32>
    %506 = arith.mulf %505, %504 : vector<8x128xf32>
    %507 = math.tanh %506 : vector<8x128xf32>
    %cst_208 = arith.constant 5.000000e-01 : f32
    %508 = vector.broadcast %cst_208 : f32 to vector<8x128xf32>
    %509 = arith.mulf %508, %507 : vector<8x128xf32>
    %cst_209 = arith.constant 5.000000e-01 : f32
    %510 = vector.broadcast %cst_209 : f32 to vector<8x128xf32>
    %511 = arith.addf %510, %509 : vector<8x128xf32>
    %512 = arith.mulf %501, %435 : vector<8x128xf32>
    %513 = arith.mulf %493, %503 : vector<8x128xf32>
    %514 = arith.addf %512, %513 : vector<8x128xf32>
    %515 = math.tanh %514 : vector<8x128xf32>
    %516 = arith.mulf %511, %515 : vector<8x128xf32>
    %517 = tpu.concatenate %516, %474 in 1 : vector<8x128xf32>, vector<8x128xf32> -> vector<8x256xf32>
    %518 = arith.truncf %517 : vector<8x256xf32> to vector<8x256xbf16>
    %c0_210 = arith.constant 0 : index
    %c0_211 = arith.constant 0 : index
    %519 = vector.load %arg4[%c0_210, %c0_211] : memref<256x512xbf16, #tpu.memory_space<vmem>>, vector<256x512xbf16>
    %cst_212 = arith.constant dense<0.000000e+00> : vector<8x512xf32>
    %520 = tpu.matmul %518, %519, %cst_212 {dimension_numbers = #tpu.dot_dimension_numbers<[1], [0], [0], [1], [0, 0, 1, 1], [], []>} : vector<8x256xbf16>, vector<256x512xbf16>, vector<8x512xf32> -> vector<8x512xf32>
    %c0_213 = arith.constant 0 : index
    %c0_214 = arith.constant 0 : index
    %521 = vector.load %arg5[%c0_213, %c0_214] : memref<8x512xf32, #tpu.memory_space<vmem>>, vector<8x512xf32>
    %522 = arith.addf %520, %521 : vector<8x512xf32>
    %523 = vector.extract_strided_slice %522 {offsets = [0, 0], sizes = [8, 128], strides = [1, 1]} : vector<8x512xf32> to vector<8x128xf32>
    %cst_215 = arith.constant 5.000000e-01 : f32
    %524 = vector.broadcast %cst_215 : f32 to vector<8x128xf32>
    %525 = arith.mulf %524, %523 : vector<8x128xf32>
    %526 = math.tanh %525 : vector<8x128xf32>
    %cst_216 = arith.constant 5.000000e-01 : f32
    %527 = vector.broadcast %cst_216 : f32 to vector<8x128xf32>
    %528 = arith.mulf %527, %526 : vector<8x128xf32>
    %cst_217 = arith.constant 5.000000e-01 : f32
    %529 = vector.broadcast %cst_217 : f32 to vector<8x128xf32>
    %530 = arith.addf %529, %528 : vector<8x128xf32>
    %531 = vector.extract_strided_slice %522 {offsets = [0, 128], sizes = [8, 128], strides = [1, 1]} : vector<8x512xf32> to vector<8x128xf32>
    %cst_218 = arith.constant 5.000000e-01 : f32
    %532 = vector.broadcast %cst_218 : f32 to vector<8x128xf32>
    %533 = arith.mulf %532, %531 : vector<8x128xf32>
    %534 = math.tanh %533 : vector<8x128xf32>
    %cst_219 = arith.constant 5.000000e-01 : f32
    %535 = vector.broadcast %cst_219 : f32 to vector<8x128xf32>
    %536 = arith.mulf %535, %534 : vector<8x128xf32>
    %cst_220 = arith.constant 5.000000e-01 : f32
    %537 = vector.broadcast %cst_220 : f32 to vector<8x128xf32>
    %538 = arith.addf %537, %536 : vector<8x128xf32>
    %539 = vector.extract_strided_slice %522 {offsets = [0, 256], sizes = [8, 128], strides = [1, 1]} : vector<8x512xf32> to vector<8x128xf32>
    %540 = math.tanh %539 : vector<8x128xf32>
    %541 = vector.extract_strided_slice %522 {offsets = [0, 384], sizes = [8, 128], strides = [1, 1]} : vector<8x512xf32> to vector<8x128xf32>
    %cst_221 = arith.constant 5.000000e-01 : f32
    %542 = vector.broadcast %cst_221 : f32 to vector<8x128xf32>
    %543 = arith.mulf %542, %541 : vector<8x128xf32>
    %544 = math.tanh %543 : vector<8x128xf32>
    %cst_222 = arith.constant 5.000000e-01 : f32
    %545 = vector.broadcast %cst_222 : f32 to vector<8x128xf32>
    %546 = arith.mulf %545, %544 : vector<8x128xf32>
    %cst_223 = arith.constant 5.000000e-01 : f32
    %547 = vector.broadcast %cst_223 : f32 to vector<8x128xf32>
    %548 = arith.addf %547, %546 : vector<8x128xf32>
    %549 = arith.mulf %538, %472 : vector<8x128xf32>
    %550 = arith.mulf %530, %540 : vector<8x128xf32>
    %551 = arith.addf %549, %550 : vector<8x128xf32>
    %552 = math.tanh %551 : vector<8x128xf32>
    %553 = arith.mulf %548, %552 : vector<8x128xf32>
    %c7 = arith.constant 7 : index
    %c0_224 = arith.constant 0 : index
    %c0_225 = arith.constant 0 : index
    %554 = vector.load %arg0[%c7, %c0_224, %c0_225] : memref<8x8x1xf32, #tpu.memory_space<vmem>>, vector<1x8x1xf32>
    %555 = vector.shape_cast %554 : vector<1x8x1xf32> to vector<8x1xf32>
    %c0_226 = arith.constant 0 : index
    %c0_227 = arith.constant 0 : index
    %556 = vector.load %arg1[%c0_226, %c0_227] : memref<8x512xf32, #tpu.memory_space<vmem>>, vector<8x512xf32>
    %557 = vector.broadcast %555 : vector<8x1xf32> to vector<8x512xf32>
    %558 = arith.mulf %557, %556 : vector<8x512xf32>
    %c0_228 = arith.constant 0 : index
    %c0_229 = arith.constant 0 : index
    %559 = vector.load %arg2[%c0_228, %c0_229] : memref<8x512xf32, #tpu.memory_space<vmem>>, vector<8x512xf32>
    %560 = arith.addf %558, %559 : vector<8x512xf32>
    %561 = arith.truncf %516 : vector<8x128xf32> to vector<8x128xbf16>
    %c0_230 = arith.constant 0 : index
    %c0_231 = arith.constant 0 : index
    %562 = vector.load %arg3[%c0_230, %c0_231] : memref<128x512xbf16, #tpu.memory_space<vmem>>, vector<128x512xbf16>
    %cst_232 = arith.constant dense<0.000000e+00> : vector<8x512xf32>
    %563 = tpu.matmul %561, %562, %cst_232 {dimension_numbers = #tpu.dot_dimension_numbers<[1], [0], [0], [1], [0, 0, 1, 1], [], []>} : vector<8x128xbf16>, vector<128x512xbf16>, vector<8x512xf32> -> vector<8x512xf32>
    %564 = arith.addf %560, %563 : vector<8x512xf32>
    %565 = vector.extract_strided_slice %564 {offsets = [0, 0], sizes = [8, 128], strides = [1, 1]} : vector<8x512xf32> to vector<8x128xf32>
    %cst_233 = arith.constant 5.000000e-01 : f32
    %566 = vector.broadcast %cst_233 : f32 to vector<8x128xf32>
    %567 = arith.mulf %566, %565 : vector<8x128xf32>
    %568 = math.tanh %567 : vector<8x128xf32>
    %cst_234 = arith.constant 5.000000e-01 : f32
    %569 = vector.broadcast %cst_234 : f32 to vector<8x128xf32>
    %570 = arith.mulf %569, %568 : vector<8x128xf32>
    %cst_235 = arith.constant 5.000000e-01 : f32
    %571 = vector.broadcast %cst_235 : f32 to vector<8x128xf32>
    %572 = arith.addf %571, %570 : vector<8x128xf32>
    %573 = vector.extract_strided_slice %564 {offsets = [0, 128], sizes = [8, 128], strides = [1, 1]} : vector<8x512xf32> to vector<8x128xf32>
    %cst_236 = arith.constant 5.000000e-01 : f32
    %574 = vector.broadcast %cst_236 : f32 to vector<8x128xf32>
    %575 = arith.mulf %574, %573 : vector<8x128xf32>
    %576 = math.tanh %575 : vector<8x128xf32>
    %cst_237 = arith.constant 5.000000e-01 : f32
    %577 = vector.broadcast %cst_237 : f32 to vector<8x128xf32>
    %578 = arith.mulf %577, %576 : vector<8x128xf32>
    %cst_238 = arith.constant 5.000000e-01 : f32
    %579 = vector.broadcast %cst_238 : f32 to vector<8x128xf32>
    %580 = arith.addf %579, %578 : vector<8x128xf32>
    %581 = vector.extract_strided_slice %564 {offsets = [0, 256], sizes = [8, 128], strides = [1, 1]} : vector<8x512xf32> to vector<8x128xf32>
    %582 = math.tanh %581 : vector<8x128xf32>
    %583 = vector.extract_strided_slice %564 {offsets = [0, 384], sizes = [8, 128], strides = [1, 1]} : vector<8x512xf32> to vector<8x128xf32>
    %cst_239 = arith.constant 5.000000e-01 : f32
    %584 = vector.broadcast %cst_239 : f32 to vector<8x128xf32>
    %585 = arith.mulf %584, %583 : vector<8x128xf32>
    %586 = math.tanh %585 : vector<8x128xf32>
    %cst_240 = arith.constant 5.000000e-01 : f32
    %587 = vector.broadcast %cst_240 : f32 to vector<8x128xf32>
    %588 = arith.mulf %587, %586 : vector<8x128xf32>
    %cst_241 = arith.constant 5.000000e-01 : f32
    %589 = vector.broadcast %cst_241 : f32 to vector<8x128xf32>
    %590 = arith.addf %589, %588 : vector<8x128xf32>
    %591 = arith.mulf %580, %514 : vector<8x128xf32>
    %592 = arith.mulf %572, %582 : vector<8x128xf32>
    %593 = arith.addf %591, %592 : vector<8x128xf32>
    %594 = math.tanh %593 : vector<8x128xf32>
    %595 = arith.mulf %590, %594 : vector<8x128xf32>
    %596 = tpu.concatenate %595, %553 in 1 : vector<8x128xf32>, vector<8x128xf32> -> vector<8x256xf32>
    %597 = arith.truncf %596 : vector<8x256xf32> to vector<8x256xbf16>
    %c0_242 = arith.constant 0 : index
    %c0_243 = arith.constant 0 : index
    %598 = vector.load %arg4[%c0_242, %c0_243] : memref<256x512xbf16, #tpu.memory_space<vmem>>, vector<256x512xbf16>
    %cst_244 = arith.constant dense<0.000000e+00> : vector<8x512xf32>
    %599 = tpu.matmul %597, %598, %cst_244 {dimension_numbers = #tpu.dot_dimension_numbers<[1], [0], [0], [1], [0, 0, 1, 1], [], []>} : vector<8x256xbf16>, vector<256x512xbf16>, vector<8x512xf32> -> vector<8x512xf32>
    %c0_245 = arith.constant 0 : index
    %c0_246 = arith.constant 0 : index
    %600 = vector.load %arg5[%c0_245, %c0_246] : memref<8x512xf32, #tpu.memory_space<vmem>>, vector<8x512xf32>
    %601 = arith.addf %599, %600 : vector<8x512xf32>
    %602 = vector.extract_strided_slice %601 {offsets = [0, 0], sizes = [8, 128], strides = [1, 1]} : vector<8x512xf32> to vector<8x128xf32>
    %cst_247 = arith.constant 5.000000e-01 : f32
    %603 = vector.broadcast %cst_247 : f32 to vector<8x128xf32>
    %604 = arith.mulf %603, %602 : vector<8x128xf32>
    %605 = math.tanh %604 : vector<8x128xf32>
    %cst_248 = arith.constant 5.000000e-01 : f32
    %606 = vector.broadcast %cst_248 : f32 to vector<8x128xf32>
    %607 = arith.mulf %606, %605 : vector<8x128xf32>
    %cst_249 = arith.constant 5.000000e-01 : f32
    %608 = vector.broadcast %cst_249 : f32 to vector<8x128xf32>
    %609 = arith.addf %608, %607 : vector<8x128xf32>
    %610 = vector.extract_strided_slice %601 {offsets = [0, 128], sizes = [8, 128], strides = [1, 1]} : vector<8x512xf32> to vector<8x128xf32>
    %cst_250 = arith.constant 5.000000e-01 : f32
    %611 = vector.broadcast %cst_250 : f32 to vector<8x128xf32>
    %612 = arith.mulf %611, %610 : vector<8x128xf32>
    %613 = math.tanh %612 : vector<8x128xf32>
    %cst_251 = arith.constant 5.000000e-01 : f32
    %614 = vector.broadcast %cst_251 : f32 to vector<8x128xf32>
    %615 = arith.mulf %614, %613 : vector<8x128xf32>
    %cst_252 = arith.constant 5.000000e-01 : f32
    %616 = vector.broadcast %cst_252 : f32 to vector<8x128xf32>
    %617 = arith.addf %616, %615 : vector<8x128xf32>
    %618 = vector.extract_strided_slice %601 {offsets = [0, 256], sizes = [8, 128], strides = [1, 1]} : vector<8x512xf32> to vector<8x128xf32>
    %619 = math.tanh %618 : vector<8x128xf32>
    %620 = vector.extract_strided_slice %601 {offsets = [0, 384], sizes = [8, 128], strides = [1, 1]} : vector<8x512xf32> to vector<8x128xf32>
    %cst_253 = arith.constant 5.000000e-01 : f32
    %621 = vector.broadcast %cst_253 : f32 to vector<8x128xf32>
    %622 = arith.mulf %621, %620 : vector<8x128xf32>
    %623 = math.tanh %622 : vector<8x128xf32>
    %cst_254 = arith.constant 5.000000e-01 : f32
    %624 = vector.broadcast %cst_254 : f32 to vector<8x128xf32>
    %625 = arith.mulf %624, %623 : vector<8x128xf32>
    %cst_255 = arith.constant 5.000000e-01 : f32
    %626 = vector.broadcast %cst_255 : f32 to vector<8x128xf32>
    %627 = arith.addf %626, %625 : vector<8x128xf32>
    %628 = arith.mulf %617, %551 : vector<8x128xf32>
    %629 = arith.mulf %609, %619 : vector<8x128xf32>
    %630 = arith.addf %628, %629 : vector<8x128xf32>
    %631 = math.tanh %630 : vector<8x128xf32>
    %632 = arith.mulf %627, %631 : vector<8x128xf32>
    %633 = arith.truncf %632 : vector<8x128xf32> to vector<8x128xbf16>
    %c0_256 = arith.constant 0 : index
    %c0_257 = arith.constant 0 : index
    %634 = vector.load %arg6[%c0_256, %c0_257] : memref<128x128xbf16, #tpu.memory_space<vmem>>, vector<128x128xbf16>
    %cst_258 = arith.constant dense<0.000000e+00> : vector<8x128xf32>
    %635 = tpu.matmul %633, %634, %cst_258 {dimension_numbers = #tpu.dot_dimension_numbers<[1], [0], [0], [1], [0, 0, 1, 1], [], []>} : vector<8x128xbf16>, vector<128x128xbf16>, vector<8x128xf32> -> vector<8x128xf32>
    %c0_259 = arith.constant 0 : index
    %c0_260 = arith.constant 0 : index
    %636 = vector.load %arg7[%c0_259, %c0_260] : memref<8x128xf32, #tpu.memory_space<vmem>>, vector<8x128xf32>
    %637 = arith.addf %635, %636 : vector<8x128xf32>
    %c0_261 = arith.constant 0 : index
    %c0_262 = arith.constant 0 : index
    %638 = vector.load %arg8[%c0_261, %c0_262] : memref<8x128xf32, #tpu.memory_space<vmem>>, vector<8x128xf32>
    tpu.vector_store %arg8[%c0_261, %c0_262], %637 {strides = array<i32>} : memref<8x128xf32, #tpu.memory_space<vmem>>, vector<8x128xf32>,
    return
  }
}

</mosaic_0001>

<bundles_post_ra>
// kernel: stock_predictor_forward.1
= control target key start
LH: loop header
LB: loop body
LE: loop exit
PB: predicated region body
PF: predicated region fallthrough
CT: control target
= control target key end

     0   :  { %13 = vsyncpa [#allocation3], 0  ;;  %s4637_s0 = inlined_call_operand.vmem [shape: f32[8,8,1], index: 0, kind: input, shape index: {}]   ;;  %s4638_s1 = inlined_call_operand.vmem [shape: f32[8,512], index: 1, kind: input, shape index: {}]   ;;  %s4639_s2 = inlined_call_operand.hbm [shape: f32[8,512], index: 2, kind: input, shape index: {}]   ;;  %s4640_s3 = inlined_call_operand.hbm [shape: bf16[128,512], index: 3, kind: input, shape index: {}]   ;;  %s4641_s4 = inlined_call_operand.hbm [shape: bf16[256,512], index: 4, kind: input, shape index: {}]   ;;  %s4642_s5 = inlined_call_operand.hbm [shape: f32[8,512], index: 5, kind: input, shape index: {}]   ;;  %s4643_s6 = inlined_call_operand.vmem [shape: bf16[128,128], index: 6, kind: input, shape index: {}]   ;;  %s4644_s7 = inlined_call_operand.vmem [shape: f32[8,128], index: 7, kind: input, shape index: {}]   ;;  %s4645_s8 = inlined_call_operand.vmem [shape: f32[8,128], index: 8, kind: output, shape index: {}]  }
   0x1   :  { %14 = vsyncpa [#allocation5], 0  ;;  %s35_s29 = sshll.u32 %s4640_s3, 4  ;;  %s36_s29 = int_to_ptr.hbm [resolvable:$true] %s35_s29 }
   0x2   :  { %15 = vsyncpa [#allocation8], 0  ;;  %s3291_s30 = smov [#allocation4]   ;;  %s25_s12 = sshll.u32 %s4639_s2, 4  ;;  %s26_s12 = int_to_ptr.hbm [resolvable:$true] %s25_s12 }
   0x3   :  { %s37_s9 = sshll.u32 %s3291_s30, 4  ;;  %s3292_s13 = smov 256   ;;  %s38_s9 = int_to_ptr.vmem [resolvable:$true] %s37_s9 }
   0x4   :  { %s3293_s14 = smov 16   ;;  %s3294_s15 = smov [#allocation2]  }
   0x5   :  { %43 = dma.hbm_to_vmem [thread:$0]  %s36_s29, 4096, %s38_s9, [#allocation5], %s3292_s13, %s3292_s13, %s3293_s14  }
   0x6   :  { %s27_s16 = sshll.u32 %s3294_s15, 4  ;;  %s48_s19 = sshll.u32 %s4641_s4, 4  ;;  %s28_s16 = int_to_ptr.vmem [resolvable:$true] %s27_s16  ;;  %s49_s19 = int_to_ptr.hbm [resolvable:$true] %s48_s19 }
   0x7   :  { %30 = dma.hbm_to_vmem [thread:$0]  %s26_s12, 512, %s28_s16, [#allocation3]  }
   0x8   :  { %s62_s21 = sshll.u32 %s4642_s5, 4  ;;  %s3295_s22 = smov [#allocation6]   ;;  %s63_s21 = int_to_ptr.hbm [resolvable:$true] %s62_s21 }
   0x9   :  { %s50_s23 = sshll.u32 %s3295_s22, 4  ;;  %s3296_s2 = smov [#allocation7]   ;;  %s51_s23 = int_to_ptr.vmem [resolvable:$true] %s50_s23 }
   0xa   :  { %56 = dma.hbm_to_vmem [thread:$0]  %s49_s19, 8192, %s51_s23, [#allocation5], %s3292_s13, %s3292_s13, %s3293_s14  }
   0xb   :  { %s64_s24 = sshll.u32 %s3296_s2, 4  ;;  %s65_s24 = int_to_ptr.vmem [resolvable:$true] %s64_s24 }
   0xc   :  { %67 = dma.hbm_to_vmem [thread:$0]  %s63_s21, 512, %s65_s24, [#allocation8]  }
   0xd   :  { %3285 = dma.done.wait [#allocation3], 512  }
   0xe   :  { %3286 = vsyncadd [#allocation3], 4294966784 }
   0xf   :  { %3287 = dma.done.wait [#allocation5], 12288  }
  0x10   :  { %3288 = vsyncadd [#allocation5], 4294955008 }
  0x11   :  { %3289 = dma.done.wait [#allocation8], 512  }
  0x12   :  { %3290 = vsyncadd [#allocation8], 4294966784  ;;  %v3297_v0 = vmov 0   ;;  %v2581_v1 = vld [vmem:[#allocation4 + $0xe0] sm:$0xf] }
  0x13   :  { %3002 = vset.pattern.permute.xlu0 %v3297_v0  ;;  %3003 = vset.pattern.permute.xlu1 %v3297_v0  ;;  %v2920_v2 = vld [vmem:[#allocation4 + $0xec] sm:$0xf0]  ;;  %v2918_v3 = vld [vmem:[#allocation4 + $0xe4] sm:$0xf]  ;;  %v2583_v5 = vld [vmem:[#allocation4 + $0xf0] sm:$0xf0] }
  0x14   :  { %3004 = vset.pattern.permute.xlu2 %v3297_v0  ;;  %v3359_v4 = vor.u32 %v2920_v2, %v2581_v1  ;;  %v2589_v6 = vld [vmem:[#allocation4 + $0xe8] sm:$0xf]  ;;  %v2921_v7 = vld [vmem:[#allocation4 + $0xf4] sm:$0xf0]  ;;  %v3361_v8 = vor.u32 %v2918_v3, %v2583_v5  ;;  %v2919_v10 = vld [vmem:[#allocation4 + $0xec] sm:$0xf] }
  0x15   :  { %v3363_v9 = vor.u32 %v2921_v7, %v2589_v6  ;;  %v2591_v11 = vld [vmem:[#allocation4 + $0xf8] sm:$0xf0]  ;;  %v2565_v12 = vld [vmem:[#allocation4 + $0xc0] sm:$0xf]  ;;  %v2916_v14 = vld [vmem:[#allocation4 + $0xcc] sm:$0xf0] }
  0x16   :  { %4874 = vst [vmem:[#allocation12_spill] sm:$0xff] %v3361_v8  ;;  %303 = vmatpush.bf16.msra.mxu0 %v3359_v4  ;;  %v3366_v13 = vor.u32 %v2919_v10, %v2591_v11  ;;  %v2914_v15 = vld [vmem:[#allocation4 + $0xc4] sm:$0xf]  ;;  %v2567_v16 = vld [vmem:[#allocation4 + $0xd0] sm:$0xf0]  ;;  %316 = vmatpush.bf16.msra.mxu1 %v3361_v8  ;;  %v3370_v17 = vor.u32 %v2916_v14, %v2565_v12 }
  0x17   :  { %329 = vmatpush.bf16.msra.mxu2 %v3363_v9  ;;  %v3372_v18 = vor.u32 %v2914_v15, %v2567_v16  ;;  %v2573_v19 = vld [vmem:[#allocation4 + $0xc8] sm:$0xf]  ;;  %v2917_v20 = vld [vmem:[#allocation4 + $0xd4] sm:$0xf0]  ;;  %v2915_v21 = vld [vmem:[#allocation4 + $0xcc] sm:$0xf] }
  0x18   :  { %4875 = vst [vmem:[#allocation13_spill] sm:$0xff] %v3366_v13  ;;  %342 = vmatpush.bf16.msra.mxu3 %v3366_v13  ;;  %v3375_v22 = vor.u32 %v2917_v20, %v2573_v19  ;;  %v2575_v23 = vld [vmem:[#allocation4 + $0xd8] sm:$0xf0]  ;;  %v2549_v24 = vld [vmem:[#allocation4 + $0xa0] sm:$0xf] }
  0x19   :  { %4876 = vst [vmem:[#allocation14_spill] sm:$0xff] %v3372_v18  ;;  %v2912_v25 = vld [vmem:[#allocation4 + $0xac] sm:$0xf0]  ;;  %v3377_v26 = vor.u32 %v2915_v21, %v2575_v23  ;;  %v2910_v27 = vld [vmem:[#allocation4 + $0xa4] sm:$0xf] }
  0x1a   :  { %v2551_v28 = vld [vmem:[#allocation4 + $0xb0] sm:$0xf0]  ;;  %v2557_v29 = vld [vmem:[#allocation4 + $0xa8] sm:$0xf]  ;;  %304 = vmatpush.bf16.msra.mxu0 %v3370_v17  ;;  %v3380_v30 = vor.u32 %v2912_v25, %v2549_v24  ;;  %v2913_v31 = vld [vmem:[#allocation4 + $0xb4] sm:$0xf0]  ;;  %317 = vmatpush.bf16.msra.mxu1 %v3372_v18 }
  0x1b   :  { %4877 = vst [vmem:[#allocation15_spill] sm:$0xff] %v3377_v26  ;;  %v2911_v32 = vld [vmem:[#allocation4 + $0xac] sm:$0xf]  ;;  %v2559_v33 = vld [vmem:[#allocation4 + $0xb8] sm:$0xf0]  ;;  %330 = vmatpush.bf16.msra.mxu2 %v3375_v22  ;;  %v3384_v34 = vor.u32 %v2910_v27, %v2551_v28  ;;  %v3386_v35 = vor.u32 %v2913_v31, %v2557_v29  ;;  %v89_v63 = vld [vmem:[%s4637_s0] sm:$0xff] }
  0x1c   :  { %v2533_v36 = vld [vmem:[#allocation4 + $0x80] sm:$0xf]  ;;  %v2908_v37 = vld [vmem:[#allocation4 + $0x8c] sm:$0xf0]  ;;  %v2906_v38 = vld [vmem:[#allocation4 + $0x84] sm:$0xf]  ;;  %343 = vmatpush.bf16.msra.mxu3 %v3377_v26  ;;  %v3389_v39 = vor.u32 %v2911_v32, %v2559_v33  ;;  %96 = vperm.xlu0 %3002, %v89_v63  }
  0x1d   :  { %4878 = vst [vmem:[#allocation16_spill] sm:$0xff] %v3384_v34  ;;  %v2535_v40 = vld [vmem:[#allocation4 + $0x90] sm:$0xf0]  ;;  %v2541_v41 = vld [vmem:[#allocation4 + $0x88] sm:$0xf]  ;;  %v3392_v45 = vor.u32 %v2908_v37, %v2533_v36 }
  0x1e   :  { %4879 = vst [vmem:[#allocation17_spill] sm:$0xff] %v3389_v39  ;;  %v2909_v42 = vld [vmem:[#allocation4 + $0x94] sm:$0xf0]  ;;  %v2907_v43 = vld [vmem:[#allocation4 + $0x8c] sm:$0xf]  ;;  %305 = vmatpush.bf16.msra.mxu0 %v3380_v30  ;;  %318 = vmatpush.bf16.msra.mxu1 %v3384_v34  ;;  %v3396_v46 = vor.u32 %v2906_v38, %v2535_v40 }
  0x1f   :  { %v2543_v44 = vld [vmem:[#allocation4 + $0x98] sm:$0xf0]  ;;  %4880 = vst [vmem:[#allocation18_spill] sm:$0xff] %v3392_v45  ;;  %331 = vmatpush.bf16.msra.mxu2 %v3386_v35  ;;  %v3398_v47 = vor.u32 %v2909_v42, %v2541_v41  ;;  %v2517_v48 = vld [vmem:[#allocation4 + $0x60] sm:$0xf]  ;;  %v2851_v27 = vld [vmem:[%s4637_s0 + $0x8] sm:$0xff] }
  0x20   :  { %4881 = vst [vmem:[#allocation19_spill] sm:$0xff] %v3396_v46  ;;  %v2904_v49 = vld [vmem:[#allocation4 + $0x6c] sm:$0xf0]  ;;  %v2902_v50 = vld [vmem:[#allocation4 + $0x64] sm:$0xf]  ;;  %344 = vmatpush.bf16.msra.mxu3 %v3389_v39  ;;  %v3401_v51 = vor.u32 %v2907_v43, %v2543_v44 }
  0x21   :  { %4882 = vst [vmem:[#allocation20_spill] sm:$0xff] %v3398_v47  ;;  %v2519_v52 = vld [vmem:[#allocation4 + $0x70] sm:$0xf0]  ;;  %v2525_v53 = vld [vmem:[#allocation4 + $0x68] sm:$0xf]  ;;  %v3404_v57 = vor.u32 %v2904_v49, %v2517_v48 }
  0x22   :  { %4883 = vst [vmem:[#allocation21_spill] sm:$0xff] %v3401_v51  ;;  %v2905_v54 = vld [vmem:[#allocation4 + $0x74] sm:$0xf0]  ;;  %v2903_v55 = vld [vmem:[#allocation4 + $0x6c] sm:$0xf]  ;;  %306 = vmatpush.bf16.msra.mxu0 %v3392_v45  ;;  %319 = vmatpush.bf16.msra.mxu1 %v3396_v46  ;;  %v3408_v59 = vor.u32 %v2902_v50, %v2519_v52 }
  0x23   :  { %v2527_v56 = vld [vmem:[#allocation4 + $0x78] sm:$0xf0]  ;;  %4884 = vst [vmem:[#allocation22_spill] sm:$0xff] %v3404_v57  ;;  %v2501_v58 = vld [vmem:[#allocation4 + $0x40] sm:$0xf]  ;;  %332 = vmatpush.bf16.msra.mxu2 %v3398_v47  ;;  %v3410_v60 = vor.u32 %v2905_v54, %v2525_v53  ;;  %v2856_v54 = vld [vmem:[%s4637_s0 + $0x30] sm:$0xff] }
  0x24   :  { %4885 = vst [vmem:[#allocation23_spill] sm:$0xff] %v3408_v59  ;;  %v2900_v61 = vld [vmem:[#allocation4 + $0x4c] sm:$0xf0]  ;;  %v2898_v62 = vld [vmem:[#allocation4 + $0x44] sm:$0xf]  ;;  %345 = vmatpush.bf16.msra.mxu3 %v3401_v51  ;;  %v3416_v1 = vor.u32 %v2903_v55, %v2527_v56  ;;  %893 = vperm.xlu0 %3002, %v2851_v27  }
  0x25   :  { %4886 = vst [vmem:[#allocation24_spill] sm:$0xff] %v3410_v60  ;;  %v2503_v2 = vld [vmem:[#allocation4 + $0x50] sm:$0xf0]  ;;  %v2509_v3 = vld [vmem:[#allocation4 + $0x48] sm:$0xf]  ;;  %v3419_v10 = vor.u32 %v2900_v61, %v2501_v58 }
  0x26   :  { %4887 = vst [vmem:[#allocation25_spill] sm:$0xff] %v3416_v1  ;;  %v2901_v5 = vld [vmem:[#allocation4 + $0x54] sm:$0xf0]  ;;  %v2899_v6 = vld [vmem:[#allocation4 + $0x4c] sm:$0xf]  ;;  %307 = vmatpush.bf16.msra.mxu0 %v3404_v57  ;;  %320 = vmatpush.bf16.msra.mxu1 %v3408_v59  ;;  %v3423_v11 = vor.u32 %v2898_v62, %v2503_v2 }
  0x27   :  { %v2511_v7 = vld [vmem:[#allocation4 + $0x58] sm:$0xf0]  ;;  %4888 = vst [vmem:[#allocation26_spill] sm:$0xff] %v3419_v10  ;;  %333 = vmatpush.bf16.msra.mxu2 %v3410_v60  ;;  %v3425_v12 = vor.u32 %v2901_v5, %v2509_v3  ;;  %v2485_v14 = vld [vmem:[#allocation4 + $0x20] sm:$0xf] }
  0x28   :  { %4889 = vst [vmem:[#allocation27_spill] sm:$0xff] %v3423_v11  ;;  %v2896_v15 = vld [vmem:[#allocation4 + $0x2c] sm:$0xf0]  ;;  %v2894_v16 = vld [vmem:[#allocation4 + $0x24] sm:$0xf]  ;;  %346 = vmatpush.bf16.msra.mxu3 %v3416_v1  ;;  %v3428_v19 = vor.u32 %v2899_v6, %v2511_v7 }
  0x29   :  { %4890 = vst [vmem:[#allocation28_spill] sm:$0xff] %v3425_v12  ;;  %v2487_v20 = vld [vmem:[#allocation4 + $0x30] sm:$0xf0]  ;;  %v2493_v21 = vld [vmem:[#allocation4 + $0x28] sm:$0xf]  ;;  %v3434_v28 = vor.u32 %v2896_v15, %v2485_v14 }
  0x2a   :  { %4891 = vst [vmem:[#allocation29_spill] sm:$0xff] %v3428_v19  ;;  %v2897_v23 = vld [vmem:[#allocation4 + $0x34] sm:$0xf0]  ;;  %v2895_v24 = vld [vmem:[#allocation4 + $0x2c] sm:$0xf]  ;;  %308 = vmatpush.bf16.msra.mxu0 %v3419_v10  ;;  %321 = vmatpush.bf16.msra.mxu1 %v3423_v11  ;;  %v3438_v29 = vor.u32 %v2894_v16, %v2487_v20 }
  0x2b   :  { %v2495_v25 = vld [vmem:[#allocation4 + $0x38] sm:$0xf0]  ;;  %4892 = vst [vmem:[#allocation30_spill] sm:$0xff] %v3434_v28  ;;  %334 = vmatpush.bf16.msra.mxu2 %v3425_v12  ;;  %v3440_v31 = vor.u32 %v2897_v23, %v2493_v21  ;;  %v2469_v32 = vld [vmem:[#allocation4] sm:$0xf] }
  0x2c   :  { %4893 = vst [vmem:[#allocation31_spill] sm:$0xff] %v3438_v29  ;;  %v2892_v33 = vld [vmem:[#allocation4 + $0xc] sm:$0xf0]  ;;  %v2890_v36 = vld [vmem:[#allocation4 + $0x4] sm:$0xf]  ;;  %347 = vmatpush.bf16.msra.mxu3 %v3428_v19  ;;  %v3443_v37 = vor.u32 %v2895_v24, %v2495_v25  ;;  %1958 = vperm.xlu0 %3002, %v2856_v54  }
  0x2d   :  { %4894 = vst [vmem:[#allocation32_spill] sm:$0xff] %v3440_v31  ;;  %v2471_v38 = vld [vmem:[#allocation4 + $0x10] sm:$0xf0]  ;;  %v2477_v40 = vld [vmem:[#allocation4 + $0x8] sm:$0xf]  ;;  %v3446_v44 = vor.u32 %v2892_v33, %v2469_v32 }
  0x2e   :  { %4895 = vst [vmem:[#allocation33_spill] sm:$0xff] %v3443_v37  ;;  %v2893_v41 = vld [vmem:[#allocation4 + $0x14] sm:$0xf0]  ;;  %v2891_v42 = vld [vmem:[#allocation4 + $0xc] sm:$0xf]  ;;  %309 = vmatpush.bf16.msra.mxu0 %v3434_v28  ;;  %322 = vmatpush.bf16.msra.mxu1 %v3438_v29  ;;  %v3450_v50 = vor.u32 %v2890_v36, %v2471_v38 }
  0x2f   :  { %v2479_v43 = vld [vmem:[#allocation4 + $0x18] sm:$0xf0]  ;;  %4896 = vst [vmem:[#allocation34_spill] sm:$0xff] %v3446_v44  ;;  %v2837_v48 = vld [vmem:[#allocation6 + $0x1e0] sm:$0xf]  ;;  %335 = vmatpush.bf16.msra.mxu2 %v3440_v31  ;;  %v3452_v52 = vor.u32 %v2893_v41, %v2477_v40 }
  0x30   :  { %v2984_v49 = vld [vmem:[#allocation6 + $0x1ec] sm:$0xf0]  ;;  %4897 = vst [vmem:[#allocation35_spill] sm:$0xff] %v3450_v50  ;;  %348 = vmatpush.bf16.msra.mxu3 %v3443_v37  ;;  %v3455_v53 = vor.u32 %v2891_v42, %v2479_v43  ;;  %v2982_v56 = vld [vmem:[#allocation6 + $0x1e4] sm:$0xf] }
  0x31   :  { %4898 = vst [vmem:[#allocation36_spill] sm:$0xff] %v3452_v52  ;;  %v3460_v55 = vor.u32 %v2984_v49, %v2837_v48  ;;  %v2839_v58 = vld [vmem:[#allocation6 + $0x1f0] sm:$0xf0]  ;;  %v2821_v61 = vld [vmem:[#allocation6 + $0x1c0] sm:$0xf] }
  0x32   :  { %4899 = vst [vmem:[#allocation37_spill] sm:$0xff] %v3455_v53  ;;  %310 = vmatpush.bf16.msra.mxu0 %v3446_v44  ;;  %v2980_v62 = vld [vmem:[#allocation6 + $0x1cc] sm:$0xf0]  ;;  %323 = vmatpush.bf16.msra.mxu1 %v3450_v50  ;;  %v3466_v63 = vor.u32 %v2982_v56, %v2839_v58  ;;  %v2978_v2 = vld [vmem:[#allocation6 + $0x1c4] sm:$0xf] }
  0x33   :  { %4900 = vst [vmem:[#allocation38_spill] sm:$0xff] %v3460_v55  ;;  %336 = vmatpush.bf16.msra.mxu2 %v3452_v52  ;;  %v2823_v3 = vld [vmem:[#allocation6 + $0x1d0] sm:$0xf0]  ;;  %v3470_v5 = vor.u32 %v2980_v62, %v2821_v61  ;;  %v2805_v6 = vld [vmem:[#allocation6 + $0x1a0] sm:$0xf] }
  0x34   :  { %349 = vmatpush.bf16.msra.mxu3 %v3455_v53  ;;  %4901 = vst [vmem:[#allocation39_spill] sm:$0xff] %v3466_v63  ;;  %v2709_v7 = vld [vmem:[#allocation6 + $0xe0] sm:$0xf]  ;;  %v2952_v14 = vld [vmem:[#allocation6 + $0xec] sm:$0xf0]  ;;  %v3480_v24 = vor.u32 %v2978_v2, %v2823_v3 }
  0x35   :  { %311 = vmatmul.bf16.vlgmr.msra.gmra.mxu0 %v3297_v0  ;;  %4902 = vst [vmem:[#allocation40_spill] sm:$0xff] %v3470_v5  ;;  %324 = vmatmul.bf16.vlgmr.msra.gmra.mxu1 %v3297_v0  ;;  %v2976_v15 = vld [vmem:[#allocation6 + $0x1ac] sm:$0xf0]  ;;  %v3474_v16 = vor.u32 %v2952_v14, %v2709_v7  ;;  %v2950_v20 = vld [vmem:[#allocation6 + $0xe4] sm:$0xf] }
  0x36   :  { %780 = vmatpush.bf16.msrb.mxu1 %v3460_v55  ;;  %337 = vmatmul.bf16.vlgmr.msra.gmra.mxu2 %v3297_v0  ;;  %v2711_v21 = vld [vmem:[#allocation6 + $0xf0] sm:$0xf0]  ;;  %4905 = vst [vmem:[#allocation43_spill] sm:$0xff] %v3480_v24  ;;  %v2974_v25 = vld [vmem:[#allocation6 + $0x1a4] sm:$0xf]  ;;  %v3484_v32 = vor.u32 %v2976_v15, %v2805_v6 }
  0x37   :  { %4903 = vst [vmem:[#allocation41_spill] sm:$0xff] %v3474_v16  ;;  %350 = vmatmul.bf16.vlgmr.msra.gmra.mxu3 %v3297_v0  ;;  %v3477_v23 = vor.u32 %v2950_v20, %v2711_v21  ;;  %v2807_v27 = vld [vmem:[#allocation6 + $0x1b0] sm:$0xf0]  ;;  %767 = vmatpush.bf16.msrb.mxu0 %v3474_v16  ;;  %v2693_v33 = vld [vmem:[#allocation6 + $0xc0] sm:$0xf] }
  0x38   :  { %806 = vmatpush.bf16.msrb.mxu3 %v3466_v63  ;;  %4906 = vst [vmem:[#allocation44_spill] sm:$0xff] %v3484_v32  ;;  %v2948_v36 = vld [vmem:[#allocation6 + $0xcc] sm:$0xf0]  ;;  %v2946_v38 = vld [vmem:[#allocation6 + $0xc4] sm:$0xf]  ;;  %v3492_v48 = vor.u32 %v2974_v25, %v2807_v27 }
  0x39   :  { %4904 = vst [vmem:[#allocation42_spill] sm:$0xff] %v3477_v23  ;;  %793 = vmatpush.bf16.msrb.mxu2 %v3477_v23  ;;  %v2789_v0 = vld [vmem:[#allocation6 + $0x180] sm:$0xf]  ;;  %v2972_v40 = vld [vmem:[#allocation6 + $0x18c] sm:$0xf0]  ;;  %v3487_v41 = vor.u32 %v2948_v36, %v2693_v33 }
  0x3a   :  { %781 = vmatpush.bf16.msrb.mxu1 %v3470_v5  ;;  %v2695_v42 = vld [vmem:[#allocation6 + $0xd0] sm:$0xf0]  ;;  %4909 = vst [vmem:[#allocation47_spill] sm:$0xff] %v3492_v48  ;;  %v3496_v49 = vor.u32 %v2972_v40, %v2789_v0  ;;  %v2970_v54 = vld [vmem:[#allocation6 + $0x184] sm:$0xf] }
  0x3b   :  { %4907 = vst [vmem:[#allocation45_spill] sm:$0xff] %v3487_v41  ;;  %v3489_v43 = vor.u32 %v2946_v38, %v2695_v42  ;;  %768 = vmatpush.bf16.msrb.mxu0 %v3487_v41  ;;  %v2791_v56 = vld [vmem:[#allocation6 + $0x190] sm:$0xf0]  ;;  %v2773_v58 = vld [vmem:[#allocation6 + $0x160] sm:$0xf] }
  0x3c   :  { %807 = vmatpush.bf16.msrb.mxu3 %v3480_v24  ;;  %4910 = vst [vmem:[#allocation48_spill] sm:$0xff] %v3496_v49  ;;  %v2968_v61 = vld [vmem:[#allocation6 + $0x16c] sm:$0xf0]  ;;  %v3500_v62 = vor.u32 %v2970_v54, %v2791_v56  ;;  %v2966_v3 = vld [vmem:[#allocation6 + $0x164] sm:$0xf] }
  0x3d   :  { %4908 = vst [vmem:[#allocation46_spill] sm:$0xff] %v3489_v43  ;;  %794 = vmatpush.bf16.msrb.mxu2 %v3489_v43  ;;  %v3503_v2 = vor.u32 %v2968_v61, %v2773_v58  ;;  %v2775_v6 = vld [vmem:[#allocation6 + $0x170] sm:$0xf0]  ;;  %v2757_v7 = vld [vmem:[#allocation6 + $0x140] sm:$0xf] }
  0x3e   :  { %782 = vmatpush.bf16.msrb.mxu1 %v3484_v32  ;;  %4911 = vst [vmem:[#allocation49_spill] sm:$0xff] %v3500_v62  ;;  %v2964_v14 = vld [vmem:[#allocation6 + $0x14c] sm:$0xf0]  ;;  %v3506_v15 = vor.u32 %v2966_v3, %v2775_v6  ;;  %v2962_v21 = vld [vmem:[#allocation6 + $0x144] sm:$0xf] }
  0x3f   :  { %4912 = vst [vmem:[#allocation50_spill] sm:$0xff] %v3503_v2  ;;  %v3509_v20 = vor.u32 %v2964_v14, %v2757_v7  ;;  %v2759_v25 = vld [vmem:[#allocation6 + $0x150] sm:$0xf0]  ;;  %v2741_v27 = vld [vmem:[#allocation6 + $0x120] sm:$0xf] }
  0x40   :  { %808 = vmatpush.bf16.msrb.mxu3 %v3492_v48  ;;  %4913 = vst [vmem:[#allocation51_spill] sm:$0xff] %v3506_v15  ;;  %v2960_v33 = vld [vmem:[#allocation6 + $0x12c] sm:$0xf0]  ;;  %v3512_v36 = vor.u32 %v2962_v21, %v2759_v25  ;;  %v2958_v0 = vld [vmem:[#allocation6 + $0x124] sm:$0xf] }
  0x41   :  { %4914 = vst [vmem:[#allocation52_spill] sm:$0xff] %v3509_v20  ;;  %v3515_v38 = vor.u32 %v2960_v33, %v2741_v27  ;;  %v2743_v40 = vld [vmem:[#allocation6 + $0x130] sm:$0xf0]  ;;  %v2725_v42 = vld [vmem:[#allocation6 + $0x100] sm:$0xf] }
  0x42   :  { %783 = vmatpush.bf16.msrb.mxu1 %v3496_v49  ;;  %4915 = vst [vmem:[#allocation53_spill] sm:$0xff] %v3512_v36  ;;  %v2956_v54 = vld [vmem:[#allocation6 + $0x10c] sm:$0xf0]  ;;  %v2845_v56 = vld [vmem:[#allocation6 + $0x1e8] sm:$0xf]  ;;  %v3518_v61 = vor.u32 %v2958_v0, %v2743_v40 }
  0x43   :  { %4916 = vst [vmem:[#allocation54_spill] sm:$0xff] %v3515_v38  ;;  %v2985_v58 = vld [vmem:[#allocation6 + $0x1f4] sm:$0xf0]  ;;  %v3521_v3 = vor.u32 %v2956_v54, %v2725_v42  ;;  %v2954_v6 = vld [vmem:[#allocation6 + $0x104] sm:$0xf] }
  0x44   :  { %809 = vmatpush.bf16.msrb.mxu3 %v3500_v62  ;;  %4917 = vst [vmem:[#allocation55_spill] sm:$0xff] %v3518_v61  ;;  %v2727_v7 = vld [vmem:[#allocation6 + $0x110] sm:$0xf0]  ;;  %v3523_v14 = vor.u32 %v2985_v58, %v2845_v56  ;;  %v2983_v21 = vld [vmem:[#allocation6 + $0x1ec] sm:$0xf] }
  0x45   :  { %4918 = vst [vmem:[#allocation56_spill] sm:$0xff] %v3521_v3  ;;  %v2847_v25 = vld [vmem:[#allocation6 + $0x1f8] sm:$0xf0]  ;;  %v2829_v27 = vld [vmem:[#allocation6 + $0x1c8] sm:$0xf]  ;;  %v3526_v43 = vor.u32 %v2954_v6, %v2727_v7 }
  0x46   :  { %784 = vmatpush.bf16.msrb.mxu1 %v3503_v2  ;;  %4919 = vst [vmem:[#allocation57_spill] sm:$0xff] %v3523_v14  ;;  %v2981_v33 = vld [vmem:[#allocation6 + $0x1d4] sm:$0xf0]  ;;  %v3529_v0 = vor.u32 %v2983_v21, %v2847_v25  ;;  %v2979_v42 = vld [vmem:[#allocation6 + $0x1cc] sm:$0xf] }
  0x47   :  { %4920 = vst [vmem:[#allocation58_spill] sm:$0xff] %v3526_v43  ;;  %v3532_v40 = vor.u32 %v2981_v33, %v2829_v27  ;;  %v2831_v54 = vld [vmem:[#allocation6 + $0x1d8] sm:$0xf0]  ;;  %v2813_v56 = vld [vmem:[#allocation6 + $0x1a8] sm:$0xf] }
  0x48   :  { %810 = vmatpush.bf16.msrb.mxu3 %v3506_v15  ;;  %4921 = vst [vmem:[#allocation59_spill] sm:$0xff] %v3529_v0  ;;  %v2977_v58 = vld [vmem:[#allocation6 + $0x1b4] sm:$0xf0]  ;;  %v3536_v41 = vor.u32 %v2979_v42, %v2831_v54  ;;  %v2975_v7 = vld [vmem:[#allocation6 + $0x1ac] sm:$0xf] }
  0x49   :  { %4922 = vst [vmem:[#allocation60_spill] sm:$0xff] %v3532_v40  ;;  %v3539_v6 = vor.u32 %v2977_v58, %v2813_v56  ;;  %v2815_v21 = vld [vmem:[#allocation6 + $0x1b8] sm:$0xf0]  ;;  %v2677_v27 = vld [vmem:[#allocation6 + $0xa0] sm:$0xf] }
  0x4a   :  { %785 = vmatpush.bf16.msrb.mxu1 %v3509_v20  ;;  %4923 = vst [vmem:[#allocation61_spill] sm:$0xff] %v3536_v41  ;;  %v3542_v25 = vor.u32 %v2975_v7, %v2815_v21  ;;  %v2944_v33 = vld [vmem:[#allocation6 + $0xac] sm:$0xf0]  ;;  %v2942_v23 = vld [vmem:[#allocation6 + $0xa4] sm:$0xf] }
  0x4b   :  { %4924 = vst [vmem:[#allocation62_spill] sm:$0xff] %v3539_v6  ;;  %v3546_v16 = vor.u32 %v2944_v33, %v2677_v27  ;;  %v2679_v42 = vld [vmem:[#allocation6 + $0xb0] sm:$0xf0]  ;;  %v2797_v54 = vld [vmem:[#allocation6 + $0x188] sm:$0xf] }
  0x4c   :  { %811 = vmatpush.bf16.msrb.mxu3 %v3512_v36  ;;  %4925 = vst [vmem:[#allocation63_spill] sm:$0xff] %v3542_v25  ;;  %v2973_v52 = vld [vmem:[#allocation6 + $0x194] sm:$0xf0]  ;;  %v3548_v56 = vor.u32 %v2942_v23, %v2679_v42  ;;  %v2971_v44 = vld [vmem:[#allocation6 + $0x18c] sm:$0xf] }
  0x4d   :  { %4926 = vst [vmem:[#allocation64_spill] sm:$0xff] %v3546_v16  ;;  %v3550_v58 = vor.u32 %v2973_v52, %v2797_v54  ;;  %v2799_v31 = vld [vmem:[#allocation6 + $0x198] sm:$0xf0]  ;;  %v2661_v7 = vld [vmem:[#allocation6 + $0x80] sm:$0xf]  ;;  %769 = vmatpush.bf16.msrb.mxu0 %v3546_v16 }
  0x4e   :  { %786 = vmatpush.bf16.msrb.mxu1 %v3515_v38  ;;  %4927 = vst [vmem:[#allocation65_spill] sm:$0xff] %v3548_v56  ;;  %v3553_v21 = vor.u32 %v2971_v44, %v2799_v31  ;;  %v2940_v28 = vld [vmem:[#allocation6 + $0x8c] sm:$0xf0]  ;;  %v2938_v12 = vld [vmem:[#allocation6 + $0x84] sm:$0xf]  ;;  %795 = vmatpush.bf16.msrb.mxu2 %v3548_v56 }
  0x4f   :  { %4928 = vst [vmem:[#allocation66_spill] sm:$0xff] %v3550_v58  ;;  %v2663_v10 = vld [vmem:[#allocation6 + $0x90] sm:$0xf0]  ;;  %v3557_v27 = vor.u32 %v2940_v28, %v2661_v7  ;;  %v2781_v52 = vld [vmem:[#allocation6 + $0x168] sm:$0xf] }
  0x50   :  { %812 = vmatpush.bf16.msrb.mxu3 %v3518_v61  ;;  %4929 = vst [vmem:[#allocation67_spill] sm:$0xff] %v3553_v21  ;;  %v3559_v23 = vor.u32 %v2938_v12, %v2663_v10  ;;  %v2969_v33 = vld [vmem:[#allocation6 + $0x174] sm:$0xf0]  ;;  %v2967_v42 = vld [vmem:[#allocation6 + $0x16c] sm:$0xf] }
  0x51   :  { %4930 = vst [vmem:[#allocation68_spill] sm:$0xff] %v3557_v27  ;;  %v3562_v54 = vor.u32 %v2969_v33, %v2781_v52  ;;  %v2783_v31 = vld [vmem:[#allocation6 + $0x178] sm:$0xf0]  ;;  %770 = vmatpush.bf16.msrb.mxu0 %v3557_v27  ;;  %v2645_v28 = vld [vmem:[#allocation6 + $0x60] sm:$0xf] }
  0x52   :  { %787 = vmatpush.bf16.msrb.mxu1 %v3521_v3  ;;  %4931 = vst [vmem:[#allocation69_spill] sm:$0xff] %v3559_v23  ;;  %v3564_v44 = vor.u32 %v2967_v42, %v2783_v31  ;;  %796 = vmatpush.bf16.msrb.mxu2 %v3559_v23  ;;  %v2936_v7 = vld [vmem:[#allocation6 + $0x6c] sm:$0xf0]  ;;  %v2934_v10 = vld [vmem:[#allocation6 + $0x64] sm:$0xf] }
  0x53   :  { %4932 = vst [vmem:[#allocation70_spill] sm:$0xff] %v3562_v54  ;;  %v3570_v12 = vor.u32 %v2936_v7, %v2645_v28  ;;  %v2647_v56 = vld [vmem:[#allocation6 + $0x70] sm:$0xf0]  ;;  %v2765_v16 = vld [vmem:[#allocation6 + $0x148] sm:$0xf] }
  0x54   :  { %813 = vmatpush.bf16.msrb.mxu3 %v3526_v43  ;;  %4933 = vst [vmem:[#allocation71_spill] sm:$0xff] %v3564_v44  ;;  %v2965_v52 = vld [vmem:[#allocation6 + $0x154] sm:$0xf0]  ;;  %v3572_v33 = vor.u32 %v2934_v10, %v2647_v56  ;;  %v2963_v31 = vld [vmem:[#allocation6 + $0x14c] sm:$0xf] }
  0x55   :  { %4934 = vst [vmem:[#allocation72_spill] sm:$0xff] %v3570_v12  ;;  %v3574_v42 = vor.u32 %v2965_v52, %v2765_v16  ;;  %v2767_v27 = vld [vmem:[#allocation6 + $0x158] sm:$0xf0]  ;;  %v2629_v60 = vld [vmem:[#allocation6 + $0x40] sm:$0xf]  ;;  %771 = vmatpush.bf16.msrb.mxu0 %v3570_v12 }
  0x56   :  { %832 = vmatpush.bf16.msra.mxu1 %v3523_v14  ;;  %4935 = vst [vmem:[#allocation73_spill] sm:$0xff] %v3572_v33  ;;  %v3577_v23 = vor.u32 %v2963_v31, %v2767_v27  ;;  %v2930_v57 = vld [vmem:[#allocation6 + $0x44] sm:$0xf]  ;;  %797 = vmatpush.bf16.msrb.mxu2 %v3572_v33  ;;  %v2749_v16 = vld [vmem:[#allocation6 + $0x128] sm:$0xf] }
  0x57   :  { %4936 = vst [vmem:[#allocation74_spill] sm:$0xff] %v3574_v42  ;;  %v2961_v7 = vld [vmem:[#allocation6 + $0x134] sm:$0xf0]  ;;  %v2959_v10 = vld [vmem:[#allocation6 + $0x12c] sm:$0xf] }
  0x58   :  { %858 = vmatpush.bf16.msra.mxu3 %v3529_v0  ;;  %4937 = vst [vmem:[#allocation75_spill] sm:$0xff] %v3577_v23  ;;  %v3586_v52 = vor.u32 %v2961_v7, %v2749_v16  ;;  %v2751_v27 = vld [vmem:[#allocation6 + $0x138] sm:$0xf0]  ;;  %v2615_v33 = vld [vmem:[#allocation6 + $0x30] sm:$0xf0]  ;;  %v3298_v7 = vmov 0.0|0.0  }
  0x59   :  { %v3588_v31 = vor.u32 %v2959_v10, %v2751_v27  ;;  %v2733_v12 = vld [vmem:[#allocation6 + $0x108] sm:$0xf]  ;;  %788 = vmatmul.bf16.vlgmr.msrb.gmra.mxu1 %v3298_v7  ;;  %814 = vmatmul.bf16.vlgmr.msrb.gmra.mxu3 %v3298_v7  ;;  %v2957_v10 = vld [vmem:[#allocation6 + $0x114] sm:$0xf0]  ;;  %v2955_v27 = vld [vmem:[#allocation6 + $0x10c] sm:$0xf] }
  0x5a   :  { %833 = vmatpush.bf16.msra.mxu1 %v3532_v40  ;;  %4940 = vst [vmem:[#allocation78_spill] sm:$0xff] %v3586_v52 }
  0x5b   :  { %4941 = vst [vmem:[#allocation79_spill] sm:$0xff] %v3588_v31 }
  0x5c   :  { %859 = vmatpush.bf16.msra.mxu3 %v3536_v41 }
  0x5e   :  { %834 = vmatpush.bf16.msra.mxu1 %v3539_v6 }
  0x60   :  { %860 = vmatpush.bf16.msra.mxu3 %v3542_v25 }
  0x62   :  { %835 = vmatpush.bf16.msra.mxu1 %v3550_v58 }
  0x64   :  { %861 = vmatpush.bf16.msra.mxu3 %v3553_v21  ;;  %v2631_v21 = vld [vmem:[#allocation6 + $0x50] sm:$0xf0] }
  0x65   :  { %v3583_v56 = vor.u32 %v2930_v57, %v2631_v21  ;;  %v2613_v57 = vld [vmem:[#allocation6 + $0x20] sm:$0xf]  ;;  %v2926_v21 = vld [vmem:[#allocation6 + $0x24] sm:$0xf] }
  0x66   :  { %836 = vmatpush.bf16.msra.mxu1 %v3562_v54  ;;  %v2932_v54 = vld [vmem:[#allocation6 + $0x4c] sm:$0xf0]  ;;  %v3596_v16 = vor.u32 %v2926_v21, %v2615_v33  ;;  %v2597_v33 = vld [vmem:[#allocation6] sm:$0xf]  ;;  %v2717_v21 = vld [vmem:[#allocation6 + $0xe8] sm:$0xf] }
  0x67   :  { %v3581_v28 = vor.u32 %v2932_v54, %v2629_v60  ;;  %4939 = vst [vmem:[#allocation77_spill] sm:$0xff] %v3583_v56  ;;  %798 = vmatpush.bf16.msrb.mxu2 %v3583_v56  ;;  %v2928_v60 = vld [vmem:[#allocation6 + $0x2c] sm:$0xf0]  ;;  %v3599_v56 = vor.u32 %v2957_v10, %v2733_v12  ;;  %v2922_v12 = vld [vmem:[#allocation6 + $0x4] sm:$0xf] }
  0x68   :  { %862 = vmatpush.bf16.msra.mxu3 %v3564_v44  ;;  %v3594_v54 = vor.u32 %v2928_v60, %v2613_v57  ;;  %4943 = vst [vmem:[#allocation81_spill] sm:$0xff] %v3596_v16  ;;  %v2924_v57 = vld [vmem:[#allocation6 + $0xc] sm:$0xf0]  ;;  %v2953_v10 = vld [vmem:[#allocation6 + $0xf4] sm:$0xf0] }
  0x69   :  { %4938 = vst [vmem:[#allocation76_spill] sm:$0xff] %v3581_v28  ;;  %772 = vmatpush.bf16.msrb.mxu0 %v3581_v28  ;;  %v2735_v28 = vld [vmem:[#allocation6 + $0x118] sm:$0xf0]  ;;  %v3610_v60 = vor.u32 %v2924_v57, %v2597_v33  ;;  %v2701_v33 = vld [vmem:[#allocation6 + $0xc8] sm:$0xf] }
  0x6a   :  { %837 = vmatpush.bf16.msra.mxu1 %v3574_v42  ;;  %4942 = vst [vmem:[#allocation80_spill] sm:$0xff] %v3594_v54  ;;  %v2949_v57 = vld [vmem:[#allocation6 + $0xd4] sm:$0xf0] }
  0x6b   :  { %4944 = vst [vmem:[#allocation82_spill] sm:$0xff] %v3599_v56  ;;  %799 = vmatpush.bf16.msrb.mxu2 %v3596_v16  ;;  %v3614_v16 = vor.u32 %v2953_v10, %v2717_v21  ;;  %v2703_v21 = vld [vmem:[#allocation6 + $0xd8] sm:$0xf0] }
  0x6c   :  { %863 = vmatpush.bf16.msra.mxu3 %v3577_v23  ;;  %4946 = vst [vmem:[#allocation84_spill] sm:$0xff] %v3610_v60 }
  0x6d   :  { %773 = vmatpush.bf16.msrb.mxu0 %v3594_v54  ;;  %4948 = vst [vmem:[#allocation86_spill] sm:$0xff] %v3614_v16  ;;  %v2951_v54 = vld [vmem:[#allocation6 + $0xec] sm:$0xf] }
  0x6e   :  { %838 = vmatpush.bf16.msra.mxu1 %v3586_v52 }
  0x70   :  { %864 = vmatpush.bf16.msra.mxu3 %v3588_v31  ;;  %v3601_v31 = vor.u32 %v2955_v27, %v2735_v28  ;;  %v2599_v28 = vld [vmem:[#allocation6 + $0x10] sm:$0xf0] }
  0x71   :  { %v3612_v27 = vor.u32 %v2922_v12, %v2599_v28  ;;  %774 = vmatpush.bf16.msrb.mxu0 %v3610_v60  ;;  %v2947_v12 = vld [vmem:[#allocation6 + $0xcc] sm:$0xf]  ;;  %v3624_v28 = vor.u32 %v2949_v57, %v2701_v33  ;;  %v2687_v33 = vld [vmem:[#allocation6 + $0xb8] sm:$0xf0] }
  0x72   :  { %4945 = vst [vmem:[#allocation83_spill] sm:$0xff] %v3601_v31  ;;  %839 = vmatpush.bf16.msra.mxu1 %v3599_v56  ;;  %v3627_v10 = vor.u32 %v2947_v12, %v2703_v21  ;;  %v2669_v12 = vld [vmem:[#allocation6 + $0x88] sm:$0xf]  ;;  %v2939_v21 = vld [vmem:[#allocation6 + $0x8c] sm:$0xf] }
  0x73   :  { %4947 = vst [vmem:[#allocation85_spill] sm:$0xff] %v3612_v27  ;;  %800 = vmatpush.bf16.msrb.mxu2 %v3612_v27 }
  0x74   :  { %865 = vmatpush.bf16.msra.mxu3 %v3601_v31  ;;  %4950 = vst [vmem:[#allocation88_spill] sm:$0xff] %v3624_v28 }
  0x75   :  { %819 = vmatpush.bf16.msra.mxu0 %v3614_v16  ;;  %4951 = vst [vmem:[#allocation89_spill] sm:$0xff] %v3627_v10  ;;  %840 = vmatmul.bf16.vlgmr.msra.gmra.mxu1 %v3298_v7 }
  0x76   :  { %917 = vmatpush.bf16.msrb.mxu1 %v3361_v8  ;;  %v2719_v8 = vld [vmem:[#allocation6 + $0xf8] sm:$0xf0] }
  0x77   :  { %866 = vmatmul.bf16.vlgmr.msra.gmra.mxu3 %v3298_v7  ;;  %v2941_v7 = vld [vmem:[#allocation6 + $0x94] sm:$0xf0] }
  0x78   :  { %943 = vmatpush.bf16.msrb.mxu3 %v3366_v13 }
  0x79   :  { %820 = vmatpush.bf16.msra.mxu0 %v3624_v28 }
  0x7a   :  { %918 = vmatpush.bf16.msrb.mxu1 %v3372_v18 }
  0x7c   :  { %944 = vmatpush.bf16.msrb.mxu3 %v3377_v26  ;;  %v3619_v26 = vor.u32 %v2951_v54, %v2719_v8  ;;  %v2685_v8 = vld [vmem:[#allocation6 + $0xa8] sm:$0xf]  ;;  %v2945_v54 = vld [vmem:[#allocation6 + $0xb4] sm:$0xf0] }
  0x7e   :  { %919 = vmatpush.bf16.msrb.mxu1 %v3384_v34  ;;  %4949 = vst [vmem:[#allocation87_spill] sm:$0xff] %v3619_v26  ;;  %845 = vmatpush.bf16.msra.mxu2 %v3619_v26  ;;  %v3632_v34 = vor.u32 %v2945_v54, %v2685_v8  ;;  %v2937_v54 = vld [vmem:[#allocation6 + $0x74] sm:$0xf0] }
  0x80   :  { %945 = vmatpush.bf16.msrb.mxu3 %v3389_v39  ;;  %v2943_v39 = vld [vmem:[#allocation6 + $0xac] sm:$0xf]  ;;  %4952 = vst [vmem:[#allocation90_spill] sm:$0xff] %v3632_v34  ;;  %821 = vmatpush.bf16.msra.mxu0 %v3632_v34 }
  0x81   :  { %v3635_v57 = vor.u32 %v2943_v39, %v2687_v33  ;;  %v2653_v39 = vld [vmem:[#allocation6 + $0x68] sm:$0xf]  ;;  %v2935_v33 = vld [vmem:[#allocation6 + $0x6c] sm:$0xf] }
  0x82   :  { %920 = vmatpush.bf16.msrb.mxu1 %v3396_v46  ;;  %846 = vmatpush.bf16.msra.mxu2 %v3627_v10  ;;  %v2671_v46 = vld [vmem:[#allocation6 + $0x98] sm:$0xf0] }
  0x83   :  { %4953 = vst [vmem:[#allocation91_spill] sm:$0xff] %v3635_v57  ;;  %v3643_v8 = vor.u32 %v2939_v21, %v2671_v46  ;;  %v3657_v46 = vld [vmem:[%s4638_s1] sm:$0xff]  ;;  %v2933_v21 = vld [vmem:[#allocation6 + $0x54] sm:$0xf0] }
  0x84   :  { %946 = vmatpush.bf16.msrb.mxu3 %v3401_v51  ;;  %v3640_v51 = vor.u32 %v2941_v7, %v2669_v12  ;;  %4958 = vst [vmem:[#allocation96_spill] sm:$0xff] %v3657_v46  ;;  %v2637_v7 = vld [vmem:[#allocation6 + $0x48] sm:$0xf] }
  0x85   :  { %4955 = vst [vmem:[#allocation93_spill] sm:$0xff] %v3643_v8 }
  0x86   :  { %921 = vmatpush.bf16.msrb.mxu1 %v3408_v59  ;;  %847 = vmatpush.bf16.msra.mxu2 %v3635_v57  ;;  %4954 = vst [vmem:[#allocation92_spill] sm:$0xff] %v3640_v51  ;;  %v2655_v59 = vld [vmem:[#allocation6 + $0x78] sm:$0xf0] }
  0x87   :  { %822 = vmatpush.bf16.msra.mxu0 %v3640_v51  ;;  %v3651_v12 = vor.u32 %v2935_v33, %v2655_v59  ;;  %v3666_v59 = vor.u32 %v2933_v21, %v2637_v7  ;;  %v2639_v33 = vld [vmem:[#allocation6 + $0x58] sm:$0xf0]  ;;  %v2621_v21 = vld [vmem:[#allocation6 + $0x28] sm:$0xf] }
  0x88   :  { %947 = vmatpush.bf16.msrb.mxu3 %v3416_v1  ;;  %v3648_v1 = vor.u32 %v2937_v54, %v2653_v39  ;;  %v2931_v39 = vld [vmem:[#allocation6 + $0x4c] sm:$0xf] }
  0x89   :  { %4957 = vst [vmem:[#allocation95_spill] sm:$0xff] %v3651_v12  ;;  %v3664_v54 = vld [vmem:[%s4638_s1 + $0x8] sm:$0xff] }
  0x8a   :  { %922 = vmatpush.bf16.msrb.mxu1 %v3423_v11  ;;  %848 = vmatpush.bf16.msra.mxu2 %v3643_v8  ;;  %4956 = vst [vmem:[#allocation94_spill] sm:$0xff] %v3648_v1  ;;  %v3674_v11 = vld [vmem:[#allocation2] sm:$0xff] }
  0x8b   :  { %823 = vmatpush.bf16.msra.mxu0 %v3648_v1  ;;  %4959 = vst [vmem:[#allocation97_spill] sm:$0xff] %v3664_v54 }
  0x8c   :  { %948 = vmatpush.bf16.msrb.mxu3 %v3428_v19  ;;  %4960 = vst [vmem:[#allocation98_spill] sm:$0xff] %v3666_v59 }
  0x8d   :  { %4962 = vst [vmem:[#allocation100_spill] sm:$0xff] %v3674_v11 }
  0x8e   :  { %923 = vmatpush.bf16.msrb.mxu1 %v3438_v29  ;;  %849 = vmatpush.bf16.msra.mxu2 %v3651_v12  ;;  %v3669_v29 = vor.u32 %v2931_v39, %v2639_v33  ;;  %v2927_v39 = vld [vmem:[#allocation6 + $0x2c] sm:$0xf] }
  0x8f   :  { %824 = vmatpush.bf16.msra.mxu0 %v3666_v59  ;;  %v3680_v33 = vld [vmem:[#allocation2 + $0x8] sm:$0xff] }
  0x90   :  { %949 = vmatpush.bf16.msrb.mxu3 %v3443_v37  ;;  %v97_v37 = vpop.permute.xlu0 %96  ;;  %4961 = vst [vmem:[#allocation99_spill] sm:$0xff] %v3669_v29 }
  0x91   :  { %v99_v19 = vmul.f32 %v97_v37, %v3657_v46  ;;  %v100_v7 = vmul.f32 %v97_v37, %v3664_v54  ;;  %4963 = vst [vmem:[#allocation101_spill] sm:$0xff] %v3680_v33  ;;  %v2605_v46 = vld [vmem:[#allocation6 + $0x8] sm:$0xf]  ;;  %v2925_v54 = vld [vmem:[#allocation6 + $0x14] sm:$0xf0] }
  0x92   :  { %924 = vmatpush.bf16.msrb.mxu1 %v3450_v50  ;;  %850 = vmatpush.bf16.msra.mxu2 %v3669_v29  ;;  %v2929_v50 = vld [vmem:[#allocation6 + $0x34] sm:$0xf0]  ;;  %v2923_v29 = vld [vmem:[#allocation6 + $0xc] sm:$0xf] }
  0x93   :  { %v107_v13 = vadd.f32 %v3674_v11, %v99_v19  ;;  %v3702_v19 = vld [vmem:[%s4638_s1 + $0x18] sm:$0xff] }
  0x94   :  { %950 = vmatpush.bf16.msrb.mxu3 %v3455_v53  ;;  %v3682_v53 = vor.u32 %v2929_v50, %v2621_v21  ;;  %v3695_v50 = vld [vmem:[%s4638_s1 + $0x10] sm:$0xff]  ;;  %v2607_v21 = vld [vmem:[#allocation6 + $0x18] sm:$0xf0] }
  0x96   :  { %993 = vmatpush.bf16.msra.mxu1 %v3460_v55  ;;  %4964 = vst [vmem:[#allocation102_spill] sm:$0xff] %v3682_v53  ;;  %v2623_v55 = vld [vmem:[#allocation6 + $0x38] sm:$0xf0]  ;;  %825 = vmatpush.bf16.msra.mxu0 %v3682_v53 }
  0x97   :  { %v3684_v18 = vor.u32 %v2927_v39, %v2623_v55  ;;  %v3697_v55 = vor.u32 %v2925_v54, %v2605_v46  ;;  %v101_v46 = vmul.f32 %v97_v37, %v3695_v50 }
  0x98   :  { %1019 = vmatpush.bf16.msra.mxu3 %v3466_v63  ;;  %v108_v63 = vadd.f32 %v3680_v33, %v100_v7  ;;  %v3704_v7 = vor.u32 %v2923_v29, %v2607_v21  ;;  %v3711_v33 = vld [vmem:[#allocation2 + $0x10] sm:$0xff]  ;;  %v3714_v21 = vld [vmem:[#allocation2 + $0x18] sm:$0xff] }
  0x99   :  { %4965 = vst [vmem:[#allocation103_spill] sm:$0xff] %v3684_v18  ;;  %851 = vmatpush.bf16.msra.mxu2 %v3684_v18  ;;  %v102_v18 = vmul.f32 %v97_v37, %v3702_v19 }
  0x9a   :  { %994 = vmatpush.bf16.msra.mxu1 %v3470_v5  ;;  %4966 = vst [vmem:[#allocation104_spill] sm:$0xff] %v3697_v55  ;;  %826 = vmatpush.bf16.msra.mxu0 %v3697_v55 }
  0x9b   :  { %4967 = vst [vmem:[#allocation105_spill] sm:$0xff] %v3704_v7 }
  0x9c   :  { %1020 = vmatpush.bf16.msra.mxu3 %v3480_v24 }
  0x9d   :  { %852 = vmatpush.bf16.msra.mxu2 %v3704_v7 }
  0x9e   :  { %995 = vmatpush.bf16.msra.mxu1 %v3484_v32 }
  0xa0   :  { %1021 = vmatpush.bf16.msra.mxu3 %v3492_v48 }
  0xa2   :  { %996 = vmatpush.bf16.msra.mxu1 %v3496_v49 }
  0xa4   :  { %1022 = vmatpush.bf16.msra.mxu3 %v3500_v62 }
  0xa6   :  { %997 = vmatpush.bf16.msra.mxu1 %v3503_v2 }
  0xa8   :  { %1023 = vmatpush.bf16.msra.mxu3 %v3506_v15 }
  0xaa   :  { %998 = vmatpush.bf16.msra.mxu1 %v3509_v20 }
  0xac   :  { %1024 = vmatpush.bf16.msra.mxu3 %v3512_v36 }
  0xae   :  { %999 = vmatpush.bf16.msra.mxu1 %v3515_v38 }
  0xb0   :  { %1025 = vmatpush.bf16.msra.mxu3 %v3518_v61 }
  0xb2   :  { %v312_v39 = vpop.f32.mrf.mxu0  ;;  %v325_v5 = vpop.f32.mrf.mxu1  ;;  %1000 = vmatpush.bf16.msra.mxu1 %v3521_v3 }
  0xb3   :  { %v355_v24 = vadd.f32 %v312_v39, %v107_v13  ;;  %v356_v11 = vadd.f32 %v325_v5, %v108_v63  ;;  %v109_v13 = vadd.f32 %v3711_v33, %v101_v46  ;;  %v110_v5 = vadd.f32 %v3714_v21, %v102_v18 }
  0xb4   :  { %1026 = vmatpush.bf16.msra.mxu3 %v3526_v43 }
  0xb5   :  { %v359_v54 = vmul.f32 0.5, %v355_v24  ;;  %v363_v29 = vmul.f32 0.5, %v356_v11 }
  0xb7   :  { %3005 = vtanh.f32 %v359_v54 }
  0xb8   :  { %3007 = vtanh.f32 %v363_v29 }
  0xb9   :  { %v338_v63 = vpop.f32.mrf.mxu2 }
  0xba   :  { %v357_v39 = vadd.f32 %v338_v63, %v109_v13  ;;  %v351_v24 = vpop.f32.mrf.mxu3  ;;  %v314_v48 = vpop.f32.mrf.mxu0 }
  0xbb   :  { %v358_v37 = vadd.f32 %v351_v24, %v110_v5  ;;  %v327_v11 = vpop.f32.mrf.mxu1 }
  0xbc   :  { %3009 = vtanh.f32 %v357_v39 }
  0xbd   :  { %v3006_v49 = vpop.eup %3005  ;;  %v368_v54 = vmul.f32 0.5, %v358_v37 }
  0xbe   :  { %v3008_v32 = vpop.eup %3007  ;;  %v361_v62 = vmul.f32 0.5, %v3006_v49 }
  0xbf   :  { %v365_v46 = vmul.f32 0.5, %v3008_v32  ;;  %3011 = vtanh.f32 %v368_v54 }
  0xc0   :  { %v362_v18 = vadd.f32 0.5, %v361_v62 }
  0xc1   :  { %v366_v29 = vadd.f32 0.5, %v365_v46  ;;  %v340_v48 = vpop.f32.mrf.mxu2  ;;  %v4968_v46 = vld [vmem:[#allocation67_spill] sm:$0xff] }
  0xc2   :  { %v3010_v13 = vpop.eup %3009  ;;  %v353_v63 = vpop.f32.mrf.mxu3  ;;  %v4971_v48 = vld [vmem:[#allocation70_spill] sm:$0xff] }
  0xc3   :  { %v372_v5 = vmul.f32 0.0, %v366_v29  ;;  %v373_v24 = vmul.f32 %v3010_v13, %v362_v18  ;;  %v4969_v18 = vld [vmem:[#allocation22_spill] sm:$0xff]  ;;  %v4970_v29 = vld [vmem:[#allocation24_spill] sm:$0xff] }
  0xc4   :  { %v4972_v13 = vld [vmem:[#allocation26_spill] sm:$0xff]  ;;  %v4973_v63 = vld [vmem:[#allocation28_spill] sm:$0xff] }
  0xc5   :  { %v3012_v39 = vpop.eup %3011  ;;  %v3726_v37 = vadd.f32 %v373_v24, %v372_v5  ;;  %v4974_v5 = vld [vmem:[#allocation30_spill] sm:$0xff]  ;;  %v4975_v24 = vld [vmem:[#allocation32_spill] sm:$0xff] }
  0xc6   :  { %v370_v32 = vmul.f32 0.5, %v3012_v39  ;;  %v4976_v39 = vld [vmem:[#allocation79_spill] sm:$0xff] }
  0xc7   :  { %3013 = vtanh.f32 %v3726_v37 }
  0xc8   :  { %v371_v49 = vadd.f32 0.5, %v370_v32  ;;  %v4977_v32 = vld [vmem:[#allocation34_spill] sm:$0xff] }
  0xcd   :  { %v3014_v62 = vpop.eup %3013 }
  0xce   :  { %v376_v11 = vmul.f32 %v3014_v62, %v371_v49  ;;  %v4978_v49 = vld [vmem:[#allocation36_spill] sm:$0xff]  ;;  %v4979_v62 = vld [vmem:[#allocation41_spill] sm:$0xff] }
  0xd0   :  { %v377_v54 = vpack.c.bf16 %v376_v11, %v376_v11  ;;  %v4980_v11 = vld [vmem:[#allocation42_spill] sm:$0xff] }
  0xd2   :  { %775 = vmatmul.bf16.vlgmr.msrb.gmra.mxu0 %v377_v54  ;;  %801 = vmatmul.bf16.vlgmr.msrb.gmra.mxu2 %v377_v54 }
  0xd3   :  { %925 = vmatmul.bf16.vlgmr.msrb.gmra.mxu1 %v377_v54  ;;  %951 = vmatmul.bf16.vlgmr.msrb.gmra.mxu3 %v377_v54 }
  0xd4   :  { %904 = vmatpush.bf16.msrb.mxu0 %v3359_v4  ;;  %930 = vmatpush.bf16.msrb.mxu2 %v3363_v9 }
  0xd5   :  { %1045 = vmatpush.bf16.msrb.mxu1 %v3523_v14  ;;  %1071 = vmatpush.bf16.msrb.mxu3 %v3529_v0 }
  0xd8   :  { %905 = vmatpush.bf16.msrb.mxu0 %v3370_v17  ;;  %931 = vmatpush.bf16.msrb.mxu2 %v3375_v22 }
  0xd9   :  { %1046 = vmatpush.bf16.msrb.mxu1 %v3532_v40  ;;  %1072 = vmatpush.bf16.msrb.mxu3 %v3536_v41 }
  0xdc   :  { %906 = vmatpush.bf16.msrb.mxu0 %v3380_v30  ;;  %932 = vmatpush.bf16.msrb.mxu2 %v3386_v35  ;;  %v815_v41 = vpop.f32.mrf.mxu3 }
  0xdd   :  { %1047 = vmatpush.bf16.msrb.mxu1 %v3539_v6  ;;  %1073 = vmatpush.bf16.msrb.mxu3 %v3542_v25  ;;  %v4991_v25 = vld [vmem:[#allocation80_spill] sm:$0xff]  ;;  %v4992_v6 = vld [vmem:[#allocation81_spill] sm:$0xff] }
  0xe0   :  { %907 = vmatpush.bf16.msrb.mxu0 %v3392_v45  ;;  %933 = vmatpush.bf16.msrb.mxu2 %v3398_v47 }
  0xe1   :  { %1048 = vmatpush.bf16.msrb.mxu1 %v3550_v58  ;;  %1074 = vmatpush.bf16.msrb.mxu3 %v4968_v46  ;;  %v4987_v46 = vld [vmem:[#allocation72_spill] sm:$0xff]  ;;  %v4988_v58 = vld [vmem:[#allocation73_spill] sm:$0xff] }
  0xe2   :  { %827 = vmatmul.bf16.vlgmr.msra.gmra.mxu0 %v377_v54  ;;  %853 = vmatmul.bf16.vlgmr.msra.gmra.mxu2 %v377_v54 }
  0xe4   :  { %908 = vmatpush.bf16.msrb.mxu0 %v4969_v18  ;;  %934 = vmatpush.bf16.msrb.mxu2 %v4970_v29 }
  0xe5   :  { %1049 = vmatpush.bf16.msrb.mxu1 %v4971_v48  ;;  %1075 = vmatpush.bf16.msrb.mxu3 %v3564_v44  ;;  %v4985_v44 = vld [vmem:[#allocation68_spill] sm:$0xff]  ;;  %v4986_v48 = vld [vmem:[#allocation69_spill] sm:$0xff] }
  0xe8   :  { %909 = vmatpush.bf16.msrb.mxu0 %v4972_v13  ;;  %935 = vmatpush.bf16.msrb.mxu2 %v4973_v63 }
  0xe9   :  { %1050 = vmatpush.bf16.msrb.mxu1 %v3574_v42  ;;  %1076 = vmatpush.bf16.msrb.mxu3 %v3577_v23  ;;  %v4981_v23 = vld [vmem:[#allocation45_spill] sm:$0xff]  ;;  %v4982_v42 = vld [vmem:[#allocation46_spill] sm:$0xff] }
  0xec   :  { %910 = vmatpush.bf16.msrb.mxu0 %v4974_v5  ;;  %936 = vmatpush.bf16.msrb.mxu2 %v4975_v24 }
  0xed   :  { %1051 = vmatpush.bf16.msrb.mxu1 %v3586_v52  ;;  %1077 = vmatpush.bf16.msrb.mxu3 %v4976_v39  ;;  %v4983_v52 = vld [vmem:[#allocation64_spill] sm:$0xff]  ;;  %v4984_v39 = vld [vmem:[#allocation65_spill] sm:$0xff] }
  0xf0   :  { %911 = vmatpush.bf16.msrb.mxu0 %v4977_v32  ;;  %937 = vmatpush.bf16.msrb.mxu2 %v4978_v49 }
  0xf1   :  { %1052 = vmatpush.bf16.msrb.mxu1 %v3599_v56  ;;  %1078 = vmatpush.bf16.msrb.mxu3 %v3601_v31  ;;  %v4989_v56 = vld [vmem:[#allocation76_spill] sm:$0xff]  ;;  %v4990_v31 = vld [vmem:[#allocation77_spill] sm:$0xff] }
  0xf3   :  { %912 = vmatmul.bf16.vlgmr.msrb.gmra.mxu0 %v377_v54  ;;  %938 = vmatmul.bf16.vlgmr.msrb.gmra.mxu2 %v377_v54  ;;  %v789_v54 = vpop.f32.mrf.mxu1 }
  0xf4   :  { %980 = vmatpush.bf16.msra.mxu0 %v4979_v62  ;;  %1006 = vmatpush.bf16.msra.mxu2 %v4980_v11 }
  0xf8   :  { %981 = vmatpush.bf16.msra.mxu0 %v4981_v23  ;;  %1007 = vmatpush.bf16.msra.mxu2 %v4982_v42 }
  0xfb   :  { %v791_v40 = vpop.f32.mrf.mxu1 }
  0xfc   :  { %982 = vmatpush.bf16.msra.mxu0 %v4983_v52  ;;  %1008 = vmatpush.bf16.msra.mxu2 %v4984_v39 }
 0x100   :  { %983 = vmatpush.bf16.msra.mxu0 %v4985_v44  ;;  %1009 = vmatpush.bf16.msra.mxu2 %v4986_v48 }
 0x104   :  { %984 = vmatpush.bf16.msra.mxu0 %v4987_v46  ;;  %1010 = vmatpush.bf16.msra.mxu2 %v4988_v58 }
 0x108   :  { %985 = vmatpush.bf16.msra.mxu0 %v4989_v56  ;;  %1011 = vmatpush.bf16.msra.mxu2 %v4990_v31  ;;  %v817_v31 = vpop.f32.mrf.mxu3 }
 0x10c   :  { %986 = vmatpush.bf16.msra.mxu0 %v4991_v25  ;;  %1012 = vmatpush.bf16.msra.mxu2 %v4992_v6  ;;  %v841_v6 = vpop.f32.mrf.mxu1 }
 0x110   :  { %987 = vmatpush.bf16.msra.mxu0 %v3610_v60  ;;  %1013 = vmatpush.bf16.msra.mxu2 %v3612_v27  ;;  %v867_v27 = vpop.f32.mrf.mxu3 }
 0x114   :  { %1032 = vmatpush.bf16.msrb.mxu0 %v3614_v16  ;;  %1058 = vmatpush.bf16.msrb.mxu2 %v3619_v26  ;;  %v843_v40 = vpop.f32.mrf.mxu1  ;;  %v3801_v16 = vld [vmem:[#allocation7 + $0x10] sm:$0xff] }
 0x115   :  { %4997 = vst [vmem:[#allocation106_spill] sm:$0xff] %v3801_v16 }
 0x118   :  { %1033 = vmatpush.bf16.msrb.mxu0 %v3624_v28  ;;  %1059 = vmatpush.bf16.msrb.mxu2 %v3627_v10  ;;  %v4993_v28 = vld [vmem:[#allocation99_spill] sm:$0xff]  ;;  %v869_v31 = vpop.f32.mrf.mxu3 }
 0x11c   :  { %1034 = vmatpush.bf16.msrb.mxu0 %v3632_v34  ;;  %1060 = vmatpush.bf16.msrb.mxu2 %v3635_v57  ;;  %v4994_v34 = vld [vmem:[#allocation103_spill] sm:$0xff]  ;;  %v3798_v57 = vld [vmem:[#allocation7 + $0x8] sm:$0xff] }
 0x11d   :  { %4996 = vst [vmem:[#allocation24_spill] sm:$0xff] %v3798_v57 }
 0x120   :  { %1035 = vmatpush.bf16.msrb.mxu0 %v3640_v51  ;;  %1061 = vmatpush.bf16.msrb.mxu2 %v3643_v8  ;;  %v3795_v8 = vld [vmem:[#allocation7] sm:$0xff] }
 0x121   :  { %4995 = vst [vmem:[#allocation22_spill] sm:$0xff] %v3795_v8 }
 0x124   :  { %1036 = vmatpush.bf16.msrb.mxu0 %v3648_v1  ;;  %1062 = vmatpush.bf16.msrb.mxu2 %v3651_v12 }
 0x128   :  { %1037 = vmatpush.bf16.msrb.mxu0 %v3666_v59  ;;  %1063 = vmatpush.bf16.msrb.mxu2 %v4993_v28 }
 0x12c   :  { %1038 = vmatpush.bf16.msrb.mxu0 %v3682_v53  ;;  %1064 = vmatpush.bf16.msrb.mxu2 %v4994_v34 }
 0x130   :  { %1039 = vmatpush.bf16.msrb.mxu0 %v3697_v55  ;;  %1065 = vmatpush.bf16.msrb.mxu2 %v3704_v7 }
 0x14f   :  { %v776_v51 = vpop.f32.mrf.mxu0 }
 0x150   :  { %v777_v1 = vadd.f32 %v776_v51, %v3795_v8  ;;  %v926_v12 = vpop.f32.mrf.mxu1  ;;  %v894_v51 = vpop.permute.xlu0 %893 }
 0x152   :  { %v790_v40 = vadd.f32 %v789_v54, %v777_v1  ;;  %v4998_v1 = vld [vmem:[#allocation97_spill] sm:$0xff] }
 0x153   :  { %v897_v54 = vmul.f32 %v894_v51, %v4998_v1 }
 0x154   :  { %v871_v53 = vmul.f32 0.5, %v790_v40 }
 0x155   :  { %v802_v59 = vpop.f32.mrf.mxu2 }
 0x156   :  { %v803_v31 = vadd.f32 %v802_v59, %v3798_v57  ;;  %v952_v28 = vpop.f32.mrf.mxu3  ;;  %3015 = vtanh.f32 %v871_v53 }
 0x157   :  { %v778_v10 = vpop.f32.mrf.mxu0 }
 0x158   :  { %v816_v34 = vadd.f32 %v815_v41, %v803_v31  ;;  %v928_v26 = vpop.f32.mrf.mxu1  ;;  %v3805_v10 = vld [vmem:[#allocation7 + $0x18] sm:$0xff] }
 0x159   :  { %v4999_v26 = vld [vmem:[#allocation101_spill] sm:$0xff] }
 0x15a   :  { %v875_v55 = vmul.f32 0.5, %v816_v34  ;;  %v901_v34 = vadd.f32 %v897_v54, %v4999_v26 }
 0x15c   :  { %3017 = vtanh.f32 %v875_v55  ;;  %v3016_v56 = vpop.eup %3015  ;;  %v957_v55 = vadd.f32 %v926_v12, %v901_v34  ;;  %v5001_v12 = vld [vmem:[#allocation100_spill] sm:$0xff]  ;;  %v898_v34 = vmul.f32 %v894_v51, %v3695_v50 }
 0x15d   :  { %v804_v7 = vpop.f32.mrf.mxu2  ;;  %v873_v53 = vmul.f32 0.5, %v3016_v56  ;;  %v899_v56 = vmul.f32 %v894_v51, %v3702_v19 }
 0x15e   :  { %v954_v60 = vpop.f32.mrf.mxu3 }
 0x15f   :  { %v828_v8 = vpop.f32.mrf.mxu0  ;;  %v874_v1 = vadd.f32 0.5, %v873_v53 }
 0x160   :  { %v829_v25 = vadd.f32 %v828_v8, %v3801_v16  ;;  %v964_v8 = vmul.f32 0.5, %v957_v55 }
 0x162   :  { %v3018_v59 = vpop.eup %3017  ;;  %v842_v57 = vadd.f32 %v841_v6, %v829_v25  ;;  %v5000_v25 = vld [vmem:[#allocation96_spill] sm:$0xff] }
 0x163   :  { %v877_v40 = vmul.f32 0.5, %v3018_v59  ;;  %v896_v59 = vmul.f32 %v894_v51, %v5000_v25 }
 0x164   :  { %3019 = vtanh.f32 %v842_v57 }
 0x165   :  { %v854_v41 = vpop.f32.mrf.mxu2  ;;  %v878_v7 = vadd.f32 0.5, %v877_v40  ;;  %v900_v54 = vadd.f32 %v896_v59, %v5001_v12 }
 0x166   :  { %v855_v60 = vadd.f32 %v854_v41, %v3805_v10 }
 0x167   :  { %v830_v31 = vpop.f32.mrf.mxu0  ;;  %v884_v48 = vmul.f32 0.0, %v878_v7 }
 0x168   :  { %v868_v58 = vadd.f32 %v867_v27, %v855_v60  ;;  %v902_v60 = vadd.f32 %v898_v34, %v3711_v33 }
 0x16a   :  { %v3020_v46 = vpop.eup %3019  ;;  %v880_v16 = vmul.f32 0.5, %v868_v58 }
 0x16b   :  { %v885_v6 = vmul.f32 %v3020_v46, %v874_v1  ;;  %v903_v46 = vadd.f32 %v899_v56, %v3714_v21 }
 0x16c   :  { %3021 = vtanh.f32 %v880_v16 }
 0x16d   :  { %v3810_v44 = vadd.f32 %v885_v6, %v884_v48  ;;  %v856_v57 = vpop.f32.mrf.mxu2  ;;  %3023 = vtanh.f32 %v964_v8  ;;  %v959_v48 = vadd.f32 %v952_v28, %v903_v46  ;;  %v5002_v28 = vld [vmem:[#allocation12_spill] sm:$0xff] }
 0x16f   :  { %3025 = vtanh.f32 %v3810_v44  ;;  %v969_v59 = vmul.f32 0.5, %v959_v48  ;;  %v5005_v48 = vld [vmem:[#allocation15_spill] sm:$0xff] }
 0x170   :  { %v913_v27 = vpop.f32.mrf.mxu0 }
 0x171   :  { %v956_v40 = vadd.f32 %v913_v27, %v900_v54 }
 0x172   :  { %v3022_v58 = vpop.eup %3021 }
 0x173   :  { %v882_v1 = vmul.f32 0.5, %v3022_v58  ;;  %v960_v53 = vmul.f32 0.5, %v956_v40  ;;  %v3024_v16 = vpop.eup %3023  ;;  %v5003_v40 = vld [vmem:[#allocation13_spill] sm:$0xff] }
 0x174   :  { %v966_v6 = vmul.f32 0.5, %v3024_v16  ;;  %v5004_v16 = vld [vmem:[#allocation14_spill] sm:$0xff] }
 0x175   :  { %v3026_v41 = vpop.eup %3025  ;;  %v883_v55 = vadd.f32 0.5, %v882_v1  ;;  %3027 = vtanh.f32 %v960_v53 }
 0x176   :  { %v939_v7 = vpop.f32.mrf.mxu2  ;;  %v967_v56 = vadd.f32 0.5, %v966_v6  ;;  %v5009_v6 = vld [vmem:[#allocation21_spill] sm:$0xff] }
 0x177   :  { %v888_v31 = vmul.f32 %v3026_v41, %v883_v55  ;;  %v958_v8 = vadd.f32 %v939_v7, %v902_v60  ;;  %v2852_v41 = vld [vmem:[%s4637_s0 + $0x10] sm:$0xff]  ;;  %v5006_v7 = vld [vmem:[#allocation16_spill] sm:$0xff] }
 0x178   :  { %v915_v57 = vpop.f32.mrf.mxu0  ;;  %v973_v1 = vmul.f32 %v967_v56, %v3726_v37  ;;  %1106 = vperm.xlu1 %3003, %v2852_v41   ;;  %v5010_v56 = vld [vmem:[#allocation23_spill] sm:$0xff]  ;;  %v5015_v41 = vld [vmem:[#allocation33_spill] sm:$0xff] }
 0x179   :  { %3029 = vtanh.f32 %v958_v8  ;;  %v979_v51 = vpack.c.bf16 %v888_v31, %v888_v31  ;;  %v5007_v31 = vld [vmem:[#allocation17_spill] sm:$0xff]  ;;  %v5008_v8 = vld [vmem:[#allocation19_spill] sm:$0xff] }
 0x17a   :  { %3031 = vtanh.f32 %v969_v59 }
 0x17b   :  { %v3028_v54 = vpop.eup %3027  ;;  %1001 = vmatmul.bf16.vlgmr.msra.gmra.mxu1 %v979_v51  ;;  %1027 = vmatmul.bf16.vlgmr.msra.gmra.mxu3 %v979_v51 }
 0x17c   :  { %v962_v27 = vmul.f32 0.5, %v3028_v54  ;;  %1130 = vmatpush.bf16.msra.mxu1 %v5002_v28  ;;  %1156 = vmatpush.bf16.msra.mxu3 %v5003_v40 }
 0x17e   :  { %v963_v58 = vadd.f32 0.5, %v962_v27  ;;  %v941_v34 = vpop.f32.mrf.mxu2  ;;  %v5011_v27 = vld [vmem:[#allocation25_spill] sm:$0xff] }
 0x17f   :  { %v3030_v46 = vpop.eup %3029  ;;  %v2853_v34 = vld [vmem:[%s4637_s0 + $0x18] sm:$0xff] }
 0x180   :  { %v974_v53 = vmul.f32 %v3030_v46, %v963_v58  ;;  %1131 = vmatpush.bf16.msra.mxu1 %v5004_v16  ;;  %1157 = vmatpush.bf16.msra.mxu3 %v5005_v48  ;;  %v3032_v55 = vpop.eup %3031  ;;  %v5012_v46 = vld [vmem:[#allocation27_spill] sm:$0xff] }
 0x181   :  { %v971_v37 = vmul.f32 0.5, %v3032_v55  ;;  %1319 = vperm.xlu1 %3003, %v2853_v34   ;;  %v5016_v55 = vld [vmem:[#allocation35_spill] sm:$0xff] }
 0x182   :  { %v3826_v60 = vadd.f32 %v974_v53, %v973_v1  ;;  %v5013_v1 = vld [vmem:[#allocation29_spill] sm:$0xff]  ;;  %v5014_v53 = vld [vmem:[#allocation31_spill] sm:$0xff] }
 0x183   :  { %v972_v59 = vadd.f32 0.5, %v971_v37  ;;  %v5017_v37 = vld [vmem:[#allocation37_spill] sm:$0xff]  ;;  %v5021_v34 = vld [vmem:[#allocation43_spill] sm:$0xff] }
 0x184   :  { %3033 = vtanh.f32 %v3826_v60  ;;  %1132 = vmatpush.bf16.msra.mxu1 %v5006_v7  ;;  %1158 = vmatpush.bf16.msra.mxu3 %v5007_v31 }
 0x188   :  { %1133 = vmatpush.bf16.msra.mxu1 %v5008_v8  ;;  %1159 = vmatpush.bf16.msra.mxu3 %v5009_v6 }
 0x18a   :  { %v3034_v57 = vpop.eup %3033 }
 0x18b   :  { %v977_v54 = vmul.f32 %v3034_v57, %v972_v59  ;;  %1053 = vmatmul.bf16.vlgmr.msrb.gmra.mxu1 %v979_v51  ;;  %1079 = vmatmul.bf16.vlgmr.msrb.gmra.mxu3 %v979_v51  ;;  %v2857_v51 = vld [vmem:[%s4637_s0 + $0x38] sm:$0xff]  ;;  %v5018_v59 = vld [vmem:[#allocation38_spill] sm:$0xff] }
 0x18c   :  { %1134 = vmatpush.bf16.msra.mxu1 %v5010_v56  ;;  %1160 = vmatpush.bf16.msra.mxu3 %v5011_v27  ;;  %v5019_v57 = vld [vmem:[#allocation39_spill] sm:$0xff] }
 0x18d   :  { %v978_v58 = vpack.c.bf16 %v977_v54, %v977_v54  ;;  %2171 = vperm.xlu1 %3003, %v2857_v51   ;;  %v5020_v54 = vld [vmem:[#allocation40_spill] sm:$0xff] }
 0x18e   :  { %v5022_v51 = vld [vmem:[#allocation44_spill] sm:$0xff] }
 0x18f   :  { %988 = vmatmul.bf16.vlgmr.msra.gmra.mxu0 %v978_v58  ;;  %1014 = vmatmul.bf16.vlgmr.msra.gmra.mxu2 %v978_v58 }
 0x190   :  { %1117 = vmatpush.bf16.msra.mxu0 %v3359_v4  ;;  %1143 = vmatpush.bf16.msra.mxu2 %v3363_v9 }
 0x191   :  { %1135 = vmatpush.bf16.msra.mxu1 %v5012_v46  ;;  %1161 = vmatpush.bf16.msra.mxu3 %v5013_v1 }
 0x194   :  { %1118 = vmatpush.bf16.msra.mxu0 %v3370_v17  ;;  %1144 = vmatpush.bf16.msra.mxu2 %v3375_v22 }
 0x195   :  { %1136 = vmatpush.bf16.msra.mxu1 %v5014_v53  ;;  %1162 = vmatpush.bf16.msra.mxu3 %v5015_v41 }
 0x198   :  { %1119 = vmatpush.bf16.msra.mxu0 %v3380_v30  ;;  %1145 = vmatpush.bf16.msra.mxu2 %v3386_v35 }
 0x199   :  { %1137 = vmatpush.bf16.msra.mxu1 %v5016_v55  ;;  %1163 = vmatpush.bf16.msra.mxu3 %v5017_v37 }
 0x19c   :  { %1120 = vmatpush.bf16.msra.mxu0 %v3392_v45  ;;  %1138 = vmatmul.bf16.vlgmr.msra.gmra.mxu1 %v978_v58  ;;  %v5025_v45 = vld [vmem:[#allocation49_spill] sm:$0xff] }
 0x19d   :  { %1206 = vmatpush.bf16.msrb.mxu1 %v5018_v59  ;;  %1232 = vmatpush.bf16.msrb.mxu3 %v5019_v57  ;;  %v5023_v59 = vld [vmem:[#allocation47_spill] sm:$0xff] }
 0x19e   :  { %1146 = vmatpush.bf16.msra.mxu2 %v3398_v47  ;;  %1164 = vmatmul.bf16.vlgmr.msra.gmra.mxu3 %v978_v58  ;;  %v5024_v47 = vld [vmem:[#allocation48_spill] sm:$0xff] }
 0x19f   :  { %1040 = vmatmul.bf16.vlgmr.msrb.gmra.mxu0 %v978_v58  ;;  %1066 = vmatmul.bf16.vlgmr.msrb.gmra.mxu2 %v978_v58 }
 0x1a0   :  { %1121 = vmatpush.bf16.msra.mxu0 %v4969_v18 }
 0x1a1   :  { %1207 = vmatpush.bf16.msrb.mxu1 %v5020_v54  ;;  %1233 = vmatpush.bf16.msrb.mxu3 %v5021_v34 }
 0x1a2   :  { %1147 = vmatpush.bf16.msra.mxu2 %v4970_v29 }
 0x1a4   :  { %1122 = vmatpush.bf16.msra.mxu0 %v4972_v13 }
 0x1a5   :  { %1208 = vmatpush.bf16.msrb.mxu1 %v5022_v51  ;;  %1234 = vmatpush.bf16.msrb.mxu3 %v5023_v59 }
 0x1a6   :  { %1148 = vmatpush.bf16.msra.mxu2 %v4973_v63 }
 0x1a8   :  { %1123 = vmatpush.bf16.msra.mxu0 %v4974_v5  ;;  %v5068_v5 = vld [vmem:[#allocation97_spill] sm:$0xff] }
 0x1a9   :  { %1209 = vmatpush.bf16.msrb.mxu1 %v5024_v47  ;;  %1235 = vmatpush.bf16.msrb.mxu3 %v5025_v45 }
 0x1aa   :  { %1149 = vmatpush.bf16.msra.mxu2 %v4975_v24 }
 0x1ac   :  { %1124 = vmatpush.bf16.msra.mxu0 %v4977_v32  ;;  %v5067_v32 = vld [vmem:[#allocation24_spill] sm:$0xff] }
 0x1ad   :  { %1210 = vmatpush.bf16.msrb.mxu1 %v3503_v2  ;;  %1236 = vmatpush.bf16.msrb.mxu3 %v3506_v15 }
 0x1ae   :  { %1150 = vmatpush.bf16.msra.mxu2 %v4978_v49 }
 0x1af   :  { %1125 = vmatmul.bf16.vlgmr.msra.gmra.mxu0 %v978_v58 }
 0x1b0   :  { %1193 = vmatpush.bf16.msrb.mxu0 %v4979_v62 }
 0x1b1   :  { %1211 = vmatpush.bf16.msrb.mxu1 %v3509_v20  ;;  %1237 = vmatpush.bf16.msrb.mxu3 %v3512_v36 }
 0x1b2   :  { %1219 = vmatpush.bf16.msrb.mxu2 %v4980_v11  ;;  %v5066_v11 = vld [vmem:[#allocation22_spill] sm:$0xff] }
 0x1b3   :  { %1151 = vmatmul.bf16.vlgmr.msra.gmra.mxu2 %v978_v58  ;;  %v5026_v58 = vld [vmem:[#allocation68_spill] sm:$0xff] }
 0x1b4   :  { %1194 = vmatpush.bf16.msrb.mxu0 %v4981_v23  ;;  %v5027_v23 = vld [vmem:[#allocation69_spill] sm:$0xff] }
 0x1b5   :  { %1212 = vmatpush.bf16.msrb.mxu1 %v3515_v38  ;;  %1238 = vmatpush.bf16.msrb.mxu3 %v3518_v61  ;;  %v5029_v38 = vld [vmem:[#allocation61_spill] sm:$0xff]  ;;  %v5030_v61 = vld [vmem:[#allocation72_spill] sm:$0xff] }
 0x1b6   :  { %1220 = vmatpush.bf16.msrb.mxu2 %v4982_v42  ;;  %v5028_v42 = vld [vmem:[#allocation60_spill] sm:$0xff] }
 0x1b8   :  { %1195 = vmatpush.bf16.msrb.mxu0 %v4983_v52  ;;  %v5031_v52 = vld [vmem:[#allocation73_spill] sm:$0xff] }
 0x1b9   :  { %1213 = vmatpush.bf16.msrb.mxu1 %v3521_v3  ;;  %1239 = vmatpush.bf16.msrb.mxu3 %v3526_v43  ;;  %v5033_v3 = vld [vmem:[#allocation63_spill] sm:$0xff]  ;;  %v5034_v43 = vld [vmem:[#allocation76_spill] sm:$0xff] }
 0x1ba   :  { %1221 = vmatpush.bf16.msrb.mxu2 %v4984_v39  ;;  %v5032_v39 = vld [vmem:[#allocation62_spill] sm:$0xff] }
 0x1bc   :  { %1196 = vmatpush.bf16.msrb.mxu0 %v5026_v58  ;;  %v5037_v58 = vld [vmem:[#allocation67_spill] sm:$0xff] }
 0x1bd   :  { %1258 = vmatpush.bf16.msra.mxu1 %v3523_v14  ;;  %1284 = vmatpush.bf16.msra.mxu3 %v3529_v0  ;;  %v5035_v14 = vld [vmem:[#allocation77_spill] sm:$0xff]  ;;  %v5036_v0 = vld [vmem:[#allocation66_spill] sm:$0xff] }
 0x1be   :  { %1222 = vmatpush.bf16.msrb.mxu2 %v5027_v23  ;;  %v5038_v23 = vld [vmem:[#allocation80_spill] sm:$0xff] }
 0x1c0   :  { %1197 = vmatpush.bf16.msrb.mxu0 %v5030_v61  ;;  %v5041_v61 = vld [vmem:[#allocation71_spill] sm:$0xff] }
 0x1c1   :  { %1259 = vmatpush.bf16.msra.mxu1 %v5028_v42  ;;  %1285 = vmatpush.bf16.msra.mxu3 %v5029_v38  ;;  %v5039_v42 = vld [vmem:[#allocation81_spill] sm:$0xff]  ;;  %v5040_v38 = vld [vmem:[#allocation70_spill] sm:$0xff] }
 0x1c2   :  { %1223 = vmatpush.bf16.msrb.mxu2 %v5031_v52  ;;  %v5042_v52 = vld [vmem:[#allocation84_spill] sm:$0xff] }
 0x1c4   :  { %1198 = vmatpush.bf16.msrb.mxu0 %v5034_v43  ;;  %v5045_v43 = vld [vmem:[#allocation87_spill] sm:$0xff] }
 0x1c5   :  { %1260 = vmatpush.bf16.msra.mxu1 %v5032_v39  ;;  %1286 = vmatpush.bf16.msra.mxu3 %v5033_v3  ;;  %v5043_v39 = vld [vmem:[#allocation85_spill] sm:$0xff]  ;;  %v5044_v3 = vld [vmem:[#allocation86_spill] sm:$0xff] }
 0x1c6   :  { %1224 = vmatpush.bf16.msrb.mxu2 %v5035_v14  ;;  %v5046_v14 = vld [vmem:[#allocation74_spill] sm:$0xff] }
 0x1c8   :  { %1199 = vmatpush.bf16.msrb.mxu0 %v5038_v23  ;;  %v5049_v23 = vld [vmem:[#allocation89_spill] sm:$0xff] }
 0x1c9   :  { %1261 = vmatpush.bf16.msra.mxu1 %v5036_v0  ;;  %1287 = vmatpush.bf16.msra.mxu3 %v5037_v58  ;;  %v5047_v0 = vld [vmem:[#allocation75_spill] sm:$0xff]  ;;  %v5048_v58 = vld [vmem:[#allocation88_spill] sm:$0xff] }
 0x1ca   :  { %1225 = vmatpush.bf16.msrb.mxu2 %v5039_v42  ;;  %v5050_v42 = vld [vmem:[#allocation78_spill] sm:$0xff] }
 0x1cc   :  { %1200 = vmatpush.bf16.msrb.mxu0 %v5042_v52  ;;  %v5053_v52 = vld [vmem:[#allocation91_spill] sm:$0xff] }
 0x1cd   :  { %1262 = vmatpush.bf16.msra.mxu1 %v5040_v38  ;;  %1288 = vmatpush.bf16.msra.mxu3 %v5041_v61  ;;  %v5051_v38 = vld [vmem:[#allocation79_spill] sm:$0xff]  ;;  %v5052_v61 = vld [vmem:[#allocation90_spill] sm:$0xff] }
 0x1ce   :  { %1226 = vmatpush.bf16.msrb.mxu2 %v5043_v39  ;;  %v5054_v39 = vld [vmem:[#allocation82_spill] sm:$0xff] }
 0x1d0   :  { %1245 = vmatpush.bf16.msra.mxu0 %v5044_v3  ;;  %v5055_v3 = vld [vmem:[#allocation83_spill] sm:$0xff] }
 0x1d1   :  { %1263 = vmatpush.bf16.msra.mxu1 %v5046_v14  ;;  %1289 = vmatpush.bf16.msra.mxu3 %v5047_v0  ;;  %v5057_v14 = vld [vmem:[#allocation93_spill] sm:$0xff]  ;;  %v5058_v0 = vld [vmem:[#allocation94_spill] sm:$0xff] }
 0x1d2   :  { %1271 = vmatpush.bf16.msra.mxu2 %v5045_v43  ;;  %v5056_v43 = vld [vmem:[#allocation92_spill] sm:$0xff] }
 0x1d4   :  { %1246 = vmatpush.bf16.msra.mxu0 %v5048_v58  ;;  %v5059_v58 = vld [vmem:[#allocation95_spill] sm:$0xff] }
 0x1d5   :  { %1264 = vmatpush.bf16.msra.mxu1 %v5050_v42  ;;  %1290 = vmatpush.bf16.msra.mxu3 %v5051_v38  ;;  %v5061_v42 = vld [vmem:[#allocation99_spill] sm:$0xff]  ;;  %v5062_v38 = vld [vmem:[#allocation102_spill] sm:$0xff] }
 0x1d6   :  { %1272 = vmatpush.bf16.msra.mxu2 %v5049_v23  ;;  %v5060_v23 = vld [vmem:[#allocation98_spill] sm:$0xff] }
 0x1d8   :  { %1247 = vmatpush.bf16.msra.mxu0 %v5052_v61  ;;  %v5063_v61 = vld [vmem:[#allocation103_spill] sm:$0xff] }
 0x1d9   :  { %1265 = vmatpush.bf16.msra.mxu1 %v5054_v39  ;;  %1291 = vmatpush.bf16.msra.mxu3 %v5055_v3  ;;  %v5065_v39 = vld [vmem:[#allocation105_spill] sm:$0xff] }
 0x1da   :  { %1273 = vmatpush.bf16.msra.mxu2 %v5053_v52  ;;  %v5064_v52 = vld [vmem:[#allocation104_spill] sm:$0xff] }
 0x1dc   :  { %1248 = vmatpush.bf16.msra.mxu0 %v5056_v43 }
 0x1de   :  { %1274 = vmatpush.bf16.msra.mxu2 %v5057_v14 }
 0x1e0   :  { %1249 = vmatpush.bf16.msra.mxu0 %v5058_v0 }
 0x1e2   :  { %1275 = vmatpush.bf16.msra.mxu2 %v5059_v58 }
 0x1e4   :  { %1250 = vmatpush.bf16.msra.mxu0 %v5060_v23 }
 0x1e6   :  { %1276 = vmatpush.bf16.msra.mxu2 %v5061_v42 }
 0x1e8   :  { %1251 = vmatpush.bf16.msra.mxu0 %v5062_v38 }
 0x1ea   :  { %1277 = vmatpush.bf16.msra.mxu2 %v5063_v61 }
 0x1ec   :  { %1252 = vmatpush.bf16.msra.mxu0 %v5064_v52 }
 0x1ee   :  { %1278 = vmatpush.bf16.msra.mxu2 %v5065_v39  ;;  %v1107_v39 = vpop.permute.xlu1 %1106 }
 0x1ef   :  { %v1110_v45 = vmul.f32 %v1107_v39, %v5068_v5 }
 0x1f8   :  { %v1002_v3 = vpop.f32.mrf.mxu1 }
 0x1fe   :  { %v1028_v43 = vpop.f32.mrf.mxu3 }
 0x200   :  { %v1004_v36 = vpop.f32.mrf.mxu1 }
 0x206   :  { %v1030_v14 = vpop.f32.mrf.mxu3 }
 0x208   :  { %v1054_v20 = vpop.f32.mrf.mxu1 }
 0x20c   :  { %v989_v0 = vpop.f32.mrf.mxu0 }
 0x20d   :  { %v990_v58 = vadd.f32 %v989_v0, %v5066_v11  ;;  %v5069_v0 = vld [vmem:[#allocation106_spill] sm:$0xff] }
 0x20e   :  { %v1080_v62 = vpop.f32.mrf.mxu3 }
 0x20f   :  { %v1003_v23 = vadd.f32 %v1002_v3, %v990_v58  ;;  %v1114_v58 = vadd.f32 %v1110_v45, %v4999_v26  ;;  %v1112_v26 = vmul.f32 %v1107_v39, %v3702_v19 }
 0x210   :  { %v1056_v49 = vpop.f32.mrf.mxu1 }
 0x211   :  { %v1084_v15 = vmul.f32 0.5, %v1003_v23 }
 0x212   :  { %v1015_v42 = vpop.f32.mrf.mxu2 }
 0x213   :  { %v1016_v38 = vadd.f32 %v1015_v42, %v5067_v32  ;;  %3035 = vtanh.f32 %v1084_v15  ;;  %v1109_v32 = vmul.f32 %v1107_v39, %v5000_v25  ;;  %v1116_v25 = vadd.f32 %v1112_v26, %v3714_v21 }
 0x214   :  { %v991_v61 = vpop.f32.mrf.mxu0 }
 0x215   :  { %v1029_v2 = vadd.f32 %v1028_v43, %v1016_v38 }
 0x216   :  { %v1082_v52 = vpop.f32.mrf.mxu3 }
 0x217   :  { %v1088_v24 = vmul.f32 0.5, %v1029_v2 }
 0x219   :  { %3037 = vtanh.f32 %v1088_v24  ;;  %v1139_v36 = vpop.f32.mrf.mxu1  ;;  %v3036_v3 = vpop.eup %3035 }
 0x21a   :  { %v1017_v14 = vpop.f32.mrf.mxu2  ;;  %v1086_v2 = vmul.f32 0.5, %v3036_v3  ;;  %v1170_v38 = vadd.f32 %v1139_v36, %v1114_v58  ;;  %v1113_v36 = vadd.f32 %v1109_v32, %v5001_v12 }
 0x21c   :  { %v1041_v47 = vpop.f32.mrf.mxu0  ;;  %v1177_v63 = vmul.f32 0.5, %v1170_v38 }
 0x21d   :  { %v1042_v11 = vadd.f32 %v1041_v47, %v5069_v0  ;;  %v1087_v47 = vadd.f32 0.5, %v1086_v2 }
 0x21f   :  { %v3038_v49 = vpop.eup %3037  ;;  %v1055_v42 = vadd.f32 %v1054_v20, %v1042_v11 }
 0x220   :  { %v1090_v23 = vmul.f32 0.5, %v3038_v49 }
 0x221   :  { %v1165_v61 = vpop.f32.mrf.mxu3  ;;  %3039 = vtanh.f32 %v1055_v42  ;;  %v1141_v43 = vpop.f32.mrf.mxu1  ;;  %v1111_v42 = vmul.f32 %v1107_v39, %v3695_v50 }
 0x222   :  { %v1067_v15 = vpop.f32.mrf.mxu2  ;;  %v1091_v24 = vadd.f32 0.5, %v1090_v23  ;;  %v1172_v19 = vadd.f32 %v1165_v61, %v1116_v25  ;;  %v5070_v25 = vld [vmem:[#allocation38_spill] sm:$0xff] }
 0x223   :  { %v1068_v52 = vadd.f32 %v1067_v15, %v3805_v10  ;;  %v1115_v12 = vadd.f32 %v1111_v42, %v3711_v33  ;;  %v5072_v42 = vld [vmem:[#allocation20_spill] sm:$0xff] }
 0x224   :  { %v1043_v14 = vpop.f32.mrf.mxu0  ;;  %v1097_v45 = vmul.f32 %v1091_v24, %v3810_v44  ;;  %v1182_v24 = vmul.f32 0.5, %v1172_v19  ;;  %v5077_v19 = vld [vmem:[#allocation30_spill] sm:$0xff] }
 0x225   :  { %v1081_v5 = vadd.f32 %v1080_v62, %v1068_v52 }
 0x227   :  { %v3040_v0 = vpop.eup %3039  ;;  %v1093_v13 = vmul.f32 0.5, %v1081_v5 }
 0x228   :  { %v1098_v20 = vmul.f32 %v3040_v0, %v1087_v47 }
 0x229   :  { %v1167_v11 = vpop.f32.mrf.mxu3  ;;  %3041 = vtanh.f32 %v1093_v13 }
 0x22a   :  { %v3937_v3 = vadd.f32 %v1098_v20, %v1097_v45  ;;  %v1069_v49 = vpop.f32.mrf.mxu2  ;;  %3043 = vtanh.f32 %v1177_v63 }
 0x22c   :  { %3045 = vtanh.f32 %v3937_v3  ;;  %v1126_v62 = vpop.f32.mrf.mxu0 }
 0x22d   :  { %v1169_v58 = vadd.f32 %v1126_v62, %v1113_v36 }
 0x22f   :  { %v3042_v44 = vpop.eup %3041  ;;  %v1173_v0 = vmul.f32 0.5, %v1169_v58  ;;  %v5071_v58 = vld [vmem:[#allocation18_spill] sm:$0xff] }
 0x230   :  { %v1095_v23 = vmul.f32 0.5, %v3042_v44  ;;  %v3044_v43 = vpop.eup %3043  ;;  %v5073_v44 = vld [vmem:[#allocation26_spill] sm:$0xff] }
 0x231   :  { %3047 = vtanh.f32 %v1173_v0  ;;  %v1179_v52 = vmul.f32 0.5, %v3044_v43  ;;  %v5074_v0 = vld [vmem:[#allocation28_spill] sm:$0xff]  ;;  %v5076_v43 = vld [vmem:[#allocation49_spill] sm:$0xff] }
 0x232   :  { %v3046_v13 = vpop.eup %3045  ;;  %v1096_v32 = vadd.f32 0.5, %v1095_v23  ;;  %v5075_v23 = vld [vmem:[#allocation48_spill] sm:$0xff] }
 0x233   :  { %v1180_v39 = vadd.f32 0.5, %v1179_v52  ;;  %v5085_v52 = vld [vmem:[#allocation52_spill] sm:$0xff] }
 0x234   :  { %v1101_v63 = vmul.f32 %v3046_v13, %v1096_v32  ;;  %v1128_v38 = vpop.f32.mrf.mxu0  ;;  %v5078_v13 = vld [vmem:[#allocation32_spill] sm:$0xff]  ;;  %v5079_v32 = vld [vmem:[#allocation50_spill] sm:$0xff] }
 0x235   :  { %v1186_v47 = vmul.f32 %v1180_v39, %v3826_v60  ;;  %v5084_v38 = vld [vmem:[#allocation42_spill] sm:$0xff]  ;;  %v5090_v39 = vld [vmem:[#allocation55_spill] sm:$0xff] }
 0x236   :  { %v1152_v2 = vpop.f32.mrf.mxu2  ;;  %v1192_v21 = vpack.c.bf16 %v1101_v63, %v1101_v63  ;;  %v5082_v63 = vld [vmem:[#allocation36_spill] sm:$0xff] }
 0x237   :  { %v1171_v15 = vadd.f32 %v1152_v2, %v1115_v12  ;;  %v3048_v14 = vpop.eup %3047  ;;  %v5080_v12 = vld [vmem:[#allocation51_spill] sm:$0xff]  ;;  %v5081_v2 = vld [vmem:[#allocation34_spill] sm:$0xff] }
 0x238   :  { %v1175_v50 = vmul.f32 0.5, %v3048_v14  ;;  %1214 = vmatmul.bf16.vlgmr.msrb.gmra.mxu1 %v1192_v21  ;;  %1240 = vmatmul.bf16.vlgmr.msrb.gmra.mxu3 %v1192_v21  ;;  %v5088_v14 = vld [vmem:[#allocation46_spill] sm:$0xff] }
 0x239   :  { %3049 = vtanh.f32 %v1171_v15  ;;  %1343 = vmatpush.bf16.msrb.mxu1 %v5002_v28  ;;  %1369 = vmatpush.bf16.msrb.mxu3 %v5003_v40  ;;  %v5083_v15 = vld [vmem:[#allocation41_spill] sm:$0xff] }
 0x23a   :  { %3051 = vtanh.f32 %v1182_v24  ;;  %v1176_v61 = vadd.f32 0.5, %v1175_v50  ;;  %v5086_v24 = vld [vmem:[#allocation53_spill] sm:$0xff]  ;;  %v5089_v50 = vld [vmem:[#allocation54_spill] sm:$0xff] }
 0x23d   :  { %1344 = vmatpush.bf16.msrb.mxu1 %v5004_v16  ;;  %1370 = vmatpush.bf16.msrb.mxu3 %v5005_v48 }
 0x23e   :  { %v1154_v33 = vpop.f32.mrf.mxu2 }
 0x23f   :  { %v3050_v5 = vpop.eup %3049  ;;  %v5092_v33 = vld [vmem:[#allocation65_spill] sm:$0xff] }
 0x240   :  { %v1187_v45 = vmul.f32 %v3050_v5, %v1176_v61  ;;  %v3052_v20 = vpop.eup %3051  ;;  %v5091_v61 = vld [vmem:[#allocation64_spill] sm:$0xff] }
 0x241   :  { %1345 = vmatpush.bf16.msrb.mxu1 %v5006_v7  ;;  %1371 = vmatpush.bf16.msrb.mxu3 %v5007_v31  ;;  %v1184_v26 = vmul.f32 0.5, %v3052_v20  ;;  %v5093_v5 = vld [vmem:[#allocation56_spill] sm:$0xff]  ;;  %v5096_v20 = vld [vmem:[#allocation59_spill] sm:$0xff] }
 0x242   :  { %v3948_v11 = vadd.f32 %v1187_v45, %v1186_v47  ;;  %v5094_v47 = vld [vmem:[#allocation58_spill] sm:$0xff]  ;;  %v5095_v45 = vld [vmem:[#allocation57_spill] sm:$0xff] }
 0x243   :  { %v1185_v60 = vadd.f32 0.5, %v1184_v26  ;;  %v5097_v26 = vld [vmem:[#allocation68_spill] sm:$0xff] }
 0x244   :  { %3053 = vtanh.f32 %v3948_v11 }
 0x245   :  { %1346 = vmatpush.bf16.msrb.mxu1 %v5008_v8  ;;  %1372 = vmatpush.bf16.msrb.mxu3 %v5009_v6 }
 0x248   :  { %1266 = vmatmul.bf16.vlgmr.msra.gmra.mxu1 %v1192_v21  ;;  %1292 = vmatmul.bf16.vlgmr.msra.gmra.mxu3 %v1192_v21  ;;  %v5087_v21 = vld [vmem:[#allocation45_spill] sm:$0xff] }
 0x249   :  { %1347 = vmatpush.bf16.msrb.mxu1 %v5010_v56  ;;  %1373 = vmatpush.bf16.msrb.mxu3 %v5011_v27 }
 0x24a   :  { %v3054_v36 = vpop.eup %3053 }
 0x24b   :  { %v1190_v49 = vmul.f32 %v3054_v36, %v1185_v60  ;;  %v5098_v60 = vld [vmem:[#allocation69_spill] sm:$0xff]  ;;  %v5099_v36 = vld [vmem:[#allocation60_spill] sm:$0xff] }
 0x24d   :  { %v1191_v62 = vpack.c.bf16 %v1190_v49, %v1190_v49  ;;  %1348 = vmatpush.bf16.msrb.mxu1 %v5012_v46  ;;  %1374 = vmatpush.bf16.msrb.mxu3 %v5013_v1  ;;  %v5100_v49 = vld [vmem:[#allocation61_spill] sm:$0xff] }
 0x24f   :  { %1201 = vmatmul.bf16.vlgmr.msrb.gmra.mxu0 %v1191_v62  ;;  %1227 = vmatmul.bf16.vlgmr.msrb.gmra.mxu2 %v1191_v62 }
 0x250   :  { %1330 = vmatpush.bf16.msrb.mxu0 %v3359_v4  ;;  %1356 = vmatpush.bf16.msrb.mxu2 %v3363_v9 }
 0x251   :  { %1349 = vmatpush.bf16.msrb.mxu1 %v5014_v53  ;;  %1375 = vmatpush.bf16.msrb.mxu3 %v5015_v41 }
 0x254   :  { %1331 = vmatpush.bf16.msrb.mxu0 %v3370_v17  ;;  %1357 = vmatpush.bf16.msrb.mxu2 %v3375_v22 }
 0x255   :  { %1350 = vmatpush.bf16.msrb.mxu1 %v5016_v55  ;;  %1376 = vmatpush.bf16.msrb.mxu3 %v5017_v37 }
 0x258   :  { %1332 = vmatpush.bf16.msrb.mxu0 %v3380_v30  ;;  %1358 = vmatpush.bf16.msrb.mxu2 %v3386_v35 }
 0x259   :  { %1419 = vmatpush.bf16.msra.mxu1 %v5070_v25  ;;  %1445 = vmatpush.bf16.msra.mxu3 %v5019_v57 }
 0x25a   :  { %1351 = vmatmul.bf16.vlgmr.msrb.gmra.mxu1 %v1191_v62  ;;  %1377 = vmatmul.bf16.vlgmr.msrb.gmra.mxu3 %v1191_v62 }
 0x25c   :  { %1333 = vmatpush.bf16.msrb.mxu0 %v5071_v58  ;;  %1359 = vmatpush.bf16.msrb.mxu2 %v5072_v42 }
 0x25d   :  { %1420 = vmatpush.bf16.msra.mxu1 %v5020_v54  ;;  %1446 = vmatpush.bf16.msra.mxu3 %v5021_v34 }
 0x25f   :  { %1253 = vmatmul.bf16.vlgmr.msra.gmra.mxu0 %v1191_v62  ;;  %1279 = vmatmul.bf16.vlgmr.msra.gmra.mxu2 %v1191_v62 }
 0x260   :  { %1334 = vmatpush.bf16.msrb.mxu0 %v4969_v18  ;;  %1360 = vmatpush.bf16.msrb.mxu2 %v4970_v29 }
 0x261   :  { %1421 = vmatpush.bf16.msra.mxu1 %v5022_v51  ;;  %1447 = vmatpush.bf16.msra.mxu3 %v5023_v59 }
 0x264   :  { %1335 = vmatpush.bf16.msrb.mxu0 %v5073_v44  ;;  %1361 = vmatpush.bf16.msrb.mxu2 %v5074_v0 }
 0x265   :  { %1422 = vmatpush.bf16.msra.mxu1 %v5075_v23  ;;  %1448 = vmatpush.bf16.msra.mxu3 %v5076_v43 }
 0x268   :  { %1336 = vmatpush.bf16.msrb.mxu0 %v5077_v19  ;;  %1362 = vmatpush.bf16.msrb.mxu2 %v5078_v13 }
 0x269   :  { %1423 = vmatpush.bf16.msra.mxu1 %v5079_v32  ;;  %1449 = vmatpush.bf16.msra.mxu3 %v5080_v12 }
 0x26c   :  { %1337 = vmatpush.bf16.msrb.mxu0 %v5081_v2  ;;  %1363 = vmatpush.bf16.msrb.mxu2 %v5082_v63 }
 0x26d   :  { %1424 = vmatpush.bf16.msra.mxu1 %v5085_v52  ;;  %1450 = vmatpush.bf16.msra.mxu3 %v5086_v24  ;;  %v5138_v52 = vld [vmem:[#allocation24_spill] sm:$0xff] }
 0x26f   :  { %1338 = vmatmul.bf16.vlgmr.msrb.gmra.mxu0 %v1191_v62  ;;  %1364 = vmatmul.bf16.vlgmr.msrb.gmra.mxu2 %v1191_v62  ;;  %v5101_v62 = vld [vmem:[#allocation72_spill] sm:$0xff] }
 0x270   :  { %1406 = vmatpush.bf16.msra.mxu0 %v5083_v15  ;;  %1432 = vmatpush.bf16.msra.mxu2 %v5084_v38 }
 0x271   :  { %1425 = vmatpush.bf16.msra.mxu1 %v5089_v50  ;;  %1451 = vmatpush.bf16.msra.mxu3 %v5090_v39 }
 0x274   :  { %1407 = vmatpush.bf16.msra.mxu0 %v5087_v21  ;;  %1433 = vmatpush.bf16.msra.mxu2 %v5088_v14  ;;  %v5137_v14 = vld [vmem:[#allocation22_spill] sm:$0xff] }
 0x275   :  { %1426 = vmatpush.bf16.msra.mxu1 %v5093_v5  ;;  %1452 = vmatpush.bf16.msra.mxu3 %v5094_v47  ;;  %v5104_v5 = vld [vmem:[#allocation63_spill] sm:$0xff]  ;;  %v5105_v47 = vld [vmem:[#allocation76_spill] sm:$0xff] }
 0x278   :  { %1408 = vmatpush.bf16.msra.mxu0 %v5091_v61  ;;  %1434 = vmatpush.bf16.msra.mxu2 %v5092_v33  ;;  %v5102_v61 = vld [vmem:[#allocation73_spill] sm:$0xff]  ;;  %v5103_v33 = vld [vmem:[#allocation62_spill] sm:$0xff] }
 0x279   :  { %1471 = vmatpush.bf16.msrb.mxu1 %v5095_v45  ;;  %1497 = vmatpush.bf16.msrb.mxu3 %v5096_v20  ;;  %v5106_v45 = vld [vmem:[#allocation77_spill] sm:$0xff]  ;;  %v5107_v20 = vld [vmem:[#allocation66_spill] sm:$0xff] }
 0x27c   :  { %1409 = vmatpush.bf16.msra.mxu0 %v5097_v26  ;;  %1435 = vmatpush.bf16.msra.mxu2 %v5098_v60  ;;  %v5108_v26 = vld [vmem:[#allocation67_spill] sm:$0xff]  ;;  %v5109_v60 = vld [vmem:[#allocation80_spill] sm:$0xff] }
 0x27d   :  { %1472 = vmatpush.bf16.msrb.mxu1 %v5099_v36  ;;  %1498 = vmatpush.bf16.msrb.mxu3 %v5100_v49  ;;  %v5110_v36 = vld [vmem:[#allocation81_spill] sm:$0xff]  ;;  %v5111_v49 = vld [vmem:[#allocation70_spill] sm:$0xff] }
 0x280   :  { %1410 = vmatpush.bf16.msra.mxu0 %v5101_v62  ;;  %1436 = vmatpush.bf16.msra.mxu2 %v5102_v61  ;;  %v5112_v62 = vld [vmem:[#allocation71_spill] sm:$0xff]  ;;  %v5113_v61 = vld [vmem:[#allocation84_spill] sm:$0xff] }
 0x281   :  { %1473 = vmatpush.bf16.msrb.mxu1 %v5103_v33  ;;  %1499 = vmatpush.bf16.msrb.mxu3 %v5104_v5  ;;  %v5114_v33 = vld [vmem:[#allocation85_spill] sm:$0xff]  ;;  %v5115_v5 = vld [vmem:[#allocation86_spill] sm:$0xff] }
 0x284   :  { %1411 = vmatpush.bf16.msra.mxu0 %v5105_v47  ;;  %1437 = vmatpush.bf16.msra.mxu2 %v5106_v45  ;;  %v5116_v47 = vld [vmem:[#allocation87_spill] sm:$0xff]  ;;  %v5117_v45 = vld [vmem:[#allocation74_spill] sm:$0xff] }
 0x285   :  { %1474 = vmatpush.bf16.msrb.mxu1 %v5107_v20  ;;  %1500 = vmatpush.bf16.msrb.mxu3 %v5108_v26  ;;  %v5118_v20 = vld [vmem:[#allocation75_spill] sm:$0xff]  ;;  %v5119_v26 = vld [vmem:[#allocation88_spill] sm:$0xff] }
 0x288   :  { %1412 = vmatpush.bf16.msra.mxu0 %v5109_v60  ;;  %1438 = vmatpush.bf16.msra.mxu2 %v5110_v36  ;;  %v5120_v60 = vld [vmem:[#allocation89_spill] sm:$0xff]  ;;  %v5121_v36 = vld [vmem:[#allocation78_spill] sm:$0xff] }
 0x289   :  { %1475 = vmatpush.bf16.msrb.mxu1 %v5111_v49  ;;  %1501 = vmatpush.bf16.msrb.mxu3 %v5112_v62  ;;  %v5122_v49 = vld [vmem:[#allocation79_spill] sm:$0xff]  ;;  %v5123_v62 = vld [vmem:[#allocation90_spill] sm:$0xff] }
 0x28c   :  { %1413 = vmatpush.bf16.msra.mxu0 %v5113_v61  ;;  %1439 = vmatpush.bf16.msra.mxu2 %v5114_v33  ;;  %v5124_v61 = vld [vmem:[#allocation91_spill] sm:$0xff]  ;;  %v5125_v33 = vld [vmem:[#allocation82_spill] sm:$0xff] }
 0x28d   :  { %1476 = vmatpush.bf16.msrb.mxu1 %v5117_v45  ;;  %1502 = vmatpush.bf16.msrb.mxu3 %v5118_v20  ;;  %v5128_v45 = vld [vmem:[#allocation93_spill] sm:$0xff]  ;;  %v5129_v20 = vld [vmem:[#allocation94_spill] sm:$0xff] }
 0x290   :  { %1458 = vmatpush.bf16.msrb.mxu0 %v5115_v5  ;;  %1484 = vmatpush.bf16.msrb.mxu2 %v5116_v47  ;;  %v5126_v5 = vld [vmem:[#allocation83_spill] sm:$0xff]  ;;  %v5127_v47 = vld [vmem:[#allocation92_spill] sm:$0xff] }
 0x291   :  { %1477 = vmatpush.bf16.msrb.mxu1 %v5121_v36  ;;  %1503 = vmatpush.bf16.msrb.mxu3 %v5122_v49  ;;  %v5132_v36 = vld [vmem:[#allocation99_spill] sm:$0xff]  ;;  %v5133_v49 = vld [vmem:[#allocation102_spill] sm:$0xff] }
 0x294   :  { %1459 = vmatpush.bf16.msrb.mxu0 %v5119_v26  ;;  %1485 = vmatpush.bf16.msrb.mxu2 %v5120_v60  ;;  %v5130_v26 = vld [vmem:[#allocation95_spill] sm:$0xff]  ;;  %v5131_v60 = vld [vmem:[#allocation98_spill] sm:$0xff] }
 0x295   :  { %1478 = vmatpush.bf16.msrb.mxu1 %v5125_v33  ;;  %1504 = vmatpush.bf16.msrb.mxu3 %v5126_v5  ;;  %v5136_v33 = vld [vmem:[#allocation105_spill] sm:$0xff] }
 0x298   :  { %1460 = vmatpush.bf16.msrb.mxu0 %v5123_v62  ;;  %1486 = vmatpush.bf16.msrb.mxu2 %v5124_v61  ;;  %v5134_v62 = vld [vmem:[#allocation103_spill] sm:$0xff]  ;;  %v5135_v61 = vld [vmem:[#allocation104_spill] sm:$0xff] }
 0x29c   :  { %1461 = vmatpush.bf16.msrb.mxu0 %v5127_v47  ;;  %1487 = vmatpush.bf16.msrb.mxu2 %v5128_v45 }
 0x2a0   :  { %1462 = vmatpush.bf16.msrb.mxu0 %v5129_v20  ;;  %1488 = vmatpush.bf16.msrb.mxu2 %v5130_v26 }
 0x2a4   :  { %1463 = vmatpush.bf16.msrb.mxu0 %v5131_v60  ;;  %1489 = vmatpush.bf16.msrb.mxu2 %v5132_v36 }
 0x2a8   :  { %1464 = vmatpush.bf16.msrb.mxu0 %v5133_v49  ;;  %1490 = vmatpush.bf16.msrb.mxu2 %v5134_v62 }
 0x2ac   :  { %1465 = vmatpush.bf16.msrb.mxu0 %v5135_v61  ;;  %1491 = vmatpush.bf16.msrb.mxu2 %v5136_v33 }
 0x2b5   :  { %v1215_v5 = vpop.f32.mrf.mxu1 }
 0x2bb   :  { %v1241_v47 = vpop.f32.mrf.mxu3 }
 0x2bd   :  { %v1217_v39 = vpop.f32.mrf.mxu1 }
 0x2c3   :  { %v1243_v45 = vpop.f32.mrf.mxu3 }
 0x2c4   :  { %v1320_v45 = vpop.permute.xlu1 %1319 }
 0x2c5   :  { %v1267_v50 = vpop.f32.mrf.mxu1 }
 0x2cb   :  { %v1293_v21 = vpop.f32.mrf.mxu3 }
 0x2cc   :  { %v1202_v20 = vpop.f32.mrf.mxu0 }
 0x2cd   :  { %v1203_v26 = vadd.f32 %v1202_v20, %v5137_v14  ;;  %v1269_v24 = vpop.f32.mrf.mxu1  ;;  %v4048_v14 = vld [vmem:[%s4638_s1 + $0x8] sm:$0xff] }
 0x2ce   :  { %5139 = vst [vmem:[#allocation101_spill] sm:$0xff] %v4048_v14  ;;  %v1323_v24 = vmul.f32 %v4048_v14, %v1320_v45 }
 0x2cf   :  { %v1216_v60 = vadd.f32 %v1215_v5, %v1203_v26  ;;  %v5140_v5 = vld [vmem:[#allocation106_spill] sm:$0xff] }
 0x2d1   :  { %v1297_v38 = vmul.f32 0.5, %v1216_v60 }
 0x2d2   :  { %v1228_v36 = vpop.f32.mrf.mxu2 }
 0x2d3   :  { %v1229_v49 = vadd.f32 %v1228_v36, %v5138_v52  ;;  %v1295_v61 = vpop.f32.mrf.mxu3  ;;  %3055 = vtanh.f32 %v1297_v38  ;;  %v4052_v38 = vld [vmem:[#allocation2 + $0x8] sm:$0xff] }
 0x2d4   :  { %v1204_v62 = vpop.f32.mrf.mxu0 }
 0x2d5   :  { %v1242_v15 = vadd.f32 %v1241_v47, %v1229_v49 }
 0x2d7   :  { %v1301_v63 = vmul.f32 0.5, %v1242_v15  ;;  %v1352_v33 = vpop.f32.mrf.mxu1 }
 0x2d9   :  { %3057 = vtanh.f32 %v1301_v63  ;;  %v3056_v20 = vpop.eup %3055  ;;  %v1327_v63 = vadd.f32 %v4052_v38, %v1323_v24 }
 0x2da   :  { %v1230_v39 = vpop.f32.mrf.mxu2  ;;  %v1299_v36 = vmul.f32 0.5, %v3056_v20 }
 0x2db   :  { %v1383_v62 = vadd.f32 %v1352_v33, %v1327_v63  ;;  %v4078_v63 = vld [vmem:[%s4638_s1 + $0x10] sm:$0xff] }
 0x2dc   :  { %v1254_v12 = vpop.f32.mrf.mxu0  ;;  %5142 = vst [vmem:[#allocation100_spill] sm:$0xff] %v4078_v63 }
 0x2dd   :  { %v1255_v52 = vadd.f32 %v1254_v12, %v5140_v5  ;;  %v1378_v15 = vpop.f32.mrf.mxu3  ;;  %v1300_v12 = vadd.f32 0.5, %v1299_v36  ;;  %v1390_v13 = vmul.f32 0.5, %v1383_v62  ;;  %v4081_v36 = vld [vmem:[#allocation2 + $0x18] sm:$0xff] }
 0x2df   :  { %v3058_v26 = vpop.eup %3057  ;;  %v1268_v47 = vadd.f32 %v1267_v50, %v1255_v52  ;;  %v1354_v60 = vpop.f32.mrf.mxu1  ;;  %v4059_v52 = vld [vmem:[%s4638_s1] sm:$0xff] }
 0x2e0   :  { %v1303_v61 = vmul.f32 0.5, %v3058_v26  ;;  %v1322_v24 = vmul.f32 %v4059_v52, %v1320_v45 }
 0x2e1   :  { %3059 = vtanh.f32 %v1268_v47  ;;  %v4071_v47 = vld [vmem:[#allocation2] sm:$0xff] }
 0x2e2   :  { %v1280_v49 = vpop.f32.mrf.mxu2  ;;  %v1304_v2 = vadd.f32 0.5, %v1303_v61  ;;  %5141 = vst [vmem:[#allocation96_spill] sm:$0xff] %v4071_v47  ;;  %v1326_v61 = vadd.f32 %v4071_v47, %v1322_v24 }
 0x2e3   :  { %v1281_v39 = vadd.f32 %v1280_v49, %v3805_v10 }
 0x2e4   :  { %v1256_v14 = vpop.f32.mrf.mxu0  ;;  %v1310_v20 = vmul.f32 %v1304_v2, %v3937_v3 }
 0x2e5   :  { %v1294_v32 = vadd.f32 %v1293_v21, %v1281_v39  ;;  %v1380_v33 = vpop.f32.mrf.mxu3 }
 0x2e7   :  { %v3060_v5 = vpop.eup %3059  ;;  %v1306_v50 = vmul.f32 0.5, %v1294_v32  ;;  %v4068_v32 = vld [vmem:[%s4638_s1 + $0x18] sm:$0xff] }
 0x2e8   :  { %v1311_v26 = vmul.f32 %v3060_v5, %v1300_v12  ;;  %v1325_v21 = vmul.f32 %v4068_v32, %v1320_v45 }
 0x2e9   :  { %3061 = vtanh.f32 %v1306_v50 }
 0x2ea   :  { %v4063_v10 = vadd.f32 %v1311_v26, %v1310_v20  ;;  %v1282_v14 = vpop.f32.mrf.mxu2  ;;  %3063 = vtanh.f32 %v1390_v13  ;;  %v1324_v13 = vmul.f32 %v4078_v63, %v1320_v45  ;;  %v1329_v49 = vadd.f32 %v4081_v36, %v1325_v21  ;;  %v4084_v20 = vld [vmem:[#allocation2 + $0x10] sm:$0xff] }
 0x2ec   :  { %3065 = vtanh.f32 %v4063_v10  ;;  %v1339_v3 = vpop.f32.mrf.mxu0  ;;  %v1385_v5 = vadd.f32 %v1378_v15, %v1329_v49  ;;  %v1328_v26 = vadd.f32 %v4084_v20, %v1324_v13 }
 0x2ed   :  { %v1382_v2 = vadd.f32 %v1339_v3, %v1326_v61 }
 0x2ee   :  { %v1395_v63 = vmul.f32 0.5, %v1385_v5 }
 0x2ef   :  { %v3062_v60 = vpop.eup %3061  ;;  %v1386_v62 = vmul.f32 0.5, %v1382_v2 }
 0x2f0   :  { %v1308_v39 = vmul.f32 0.5, %v3062_v60  ;;  %v3064_v12 = vpop.eup %3063 }
 0x2f1   :  { %3067 = vtanh.f32 %v1386_v62  ;;  %v1392_v3 = vmul.f32 0.5, %v3064_v12 }
 0x2f2   :  { %v3066_v50 = vpop.eup %3065  ;;  %v1309_v24 = vadd.f32 0.5, %v1308_v39  ;;  %v1365_v33 = vpop.f32.mrf.mxu2 }
 0x2f3   :  { %v1384_v61 = vadd.f32 %v1365_v33, %v1328_v26  ;;  %v1393_v15 = vadd.f32 0.5, %v1392_v3  ;;  %v2854_v33 = vld [vmem:[%s4637_s0 + $0x20] sm:$0xff]  ;;  %v5146_v3 = vld [vmem:[#allocation51_spill] sm:$0xff] }
 0x2f4   :  { %v1314_v14 = vmul.f32 %v3066_v50, %v1309_v24  ;;  %v1341_v45 = vpop.f32.mrf.mxu0  ;;  %1532 = vperm.xlu2 %3004, %v2854_v33   ;;  %v5160_v33 = vld [vmem:[#allocation58_spill] sm:$0xff] }
 0x2f5   :  { %3069 = vtanh.f32 %v1384_v61  ;;  %v1399_v62 = vmul.f32 %v1393_v15, %v3948_v11  ;;  %v5144_v61 = vld [vmem:[#allocation50_spill] sm:$0xff] }
 0x2f6   :  { %v1405_v47 = vpack.c.bf16 %v1314_v14, %v1314_v14  ;;  %3071 = vtanh.f32 %v1395_v63  ;;  %v5143_v14 = vld [vmem:[#allocation32_spill] sm:$0xff]  ;;  %v5145_v45 = vld [vmem:[#allocation34_spill] sm:$0xff] }
 0x2f7   :  { %v3068_v21 = vpop.eup %3067  ;;  %v5149_v15 = vld [vmem:[#allocation42_spill] sm:$0xff] }
 0x2f8   :  { %v1388_v2 = vmul.f32 0.5, %v3068_v21  ;;  %1427 = vmatmul.bf16.vlgmr.msra.gmra.mxu1 %v1405_v47  ;;  %1453 = vmatmul.bf16.vlgmr.msra.gmra.mxu3 %v1405_v47  ;;  %v5147_v21 = vld [vmem:[#allocation36_spill] sm:$0xff] }
 0x2f9   :  { %1556 = vmatpush.bf16.msra.mxu1 %v5002_v28  ;;  %1582 = vmatpush.bf16.msra.mxu3 %v5003_v40 }
 0x2fa   :  { %v1389_v60 = vadd.f32 0.5, %v1388_v2  ;;  %v1367_v13 = vpop.f32.mrf.mxu2  ;;  %v5148_v2 = vld [vmem:[#allocation41_spill] sm:$0xff] }
 0x2fb   :  { %v3070_v49 = vpop.eup %3069  ;;  %v5151_v13 = vld [vmem:[#allocation53_spill] sm:$0xff] }
 0x2fc   :  { %v1400_v39 = vmul.f32 %v3070_v49, %v1389_v60  ;;  %v3072_v12 = vpop.eup %3071  ;;  %v5150_v60 = vld [vmem:[#allocation52_spill] sm:$0xff]  ;;  %v5152_v49 = vld [vmem:[#allocation45_spill] sm:$0xff] }
 0x2fd   :  { %1557 = vmatpush.bf16.msra.mxu1 %v5004_v16  ;;  %1583 = vmatpush.bf16.msra.mxu3 %v5005_v48  ;;  %v1397_v63 = vmul.f32 0.5, %v3072_v12  ;;  %v5155_v12 = vld [vmem:[#allocation55_spill] sm:$0xff] }
 0x2fe   :  { %v4092_v5 = vadd.f32 %v1400_v39, %v1399_v62  ;;  %v5153_v62 = vld [vmem:[#allocation46_spill] sm:$0xff] }
 0x2ff   :  { %v1398_v11 = vadd.f32 0.5, %v1397_v63  ;;  %v5154_v39 = vld [vmem:[#allocation54_spill] sm:$0xff]  ;;  %v5156_v63 = vld [vmem:[#allocation64_spill] sm:$0xff] }
 0x300   :  { %3073 = vtanh.f32 %v4092_v5 }
 0x301   :  { %1558 = vmatpush.bf16.msra.mxu1 %v5006_v7  ;;  %1584 = vmatpush.bf16.msra.mxu3 %v5007_v31 }
 0x305   :  { %1559 = vmatpush.bf16.msra.mxu1 %v5008_v8  ;;  %1585 = vmatpush.bf16.msra.mxu3 %v5009_v6 }
 0x306   :  { %v3074_v50 = vpop.eup %3073 }
 0x307   :  { %v1403_v24 = vmul.f32 %v3074_v50, %v1398_v11  ;;  %v5157_v11 = vld [vmem:[#allocation65_spill] sm:$0xff]  ;;  %v5158_v50 = vld [vmem:[#allocation56_spill] sm:$0xff] }
 0x308   :  { %1479 = vmatmul.bf16.vlgmr.msrb.gmra.mxu1 %v1405_v47  ;;  %1505 = vmatmul.bf16.vlgmr.msrb.gmra.mxu3 %v1405_v47  ;;  %v2855_v47 = vld [vmem:[%s4637_s0 + $0x28] sm:$0xff] }
 0x309   :  { %1560 = vmatpush.bf16.msra.mxu1 %v5010_v56  ;;  %1586 = vmatpush.bf16.msra.mxu3 %v5011_v27  ;;  %v1404_v26 = vpack.c.bf16 %v1403_v24, %v1403_v24  ;;  %v5159_v24 = vld [vmem:[#allocation57_spill] sm:$0xff] }
 0x30a   :  { %1745 = vperm.xlu2 %3004, %v2855_v47   ;;  %v5162_v47 = vld [vmem:[#allocation68_spill] sm:$0xff] }
 0x30b   :  { %1414 = vmatmul.bf16.vlgmr.msra.gmra.mxu0 %v1404_v26  ;;  %1440 = vmatmul.bf16.vlgmr.msra.gmra.mxu2 %v1404_v26 }
 0x30c   :  { %1543 = vmatpush.bf16.msra.mxu0 %v3359_v4  ;;  %1569 = vmatpush.bf16.msra.mxu2 %v3363_v9 }
 0x30d   :  { %1561 = vmatpush.bf16.msra.mxu1 %v5012_v46  ;;  %1587 = vmatpush.bf16.msra.mxu3 %v5013_v1 }
 0x310   :  { %1544 = vmatpush.bf16.msra.mxu0 %v3370_v17  ;;  %1570 = vmatpush.bf16.msra.mxu2 %v3375_v22 }
 0x311   :  { %1562 = vmatpush.bf16.msra.mxu1 %v5014_v53  ;;  %1588 = vmatpush.bf16.msra.mxu3 %v5015_v41 }
 0x314   :  { %1545 = vmatpush.bf16.msra.mxu0 %v3380_v30  ;;  %1571 = vmatpush.bf16.msra.mxu2 %v3386_v35 }
 0x315   :  { %1563 = vmatpush.bf16.msra.mxu1 %v5016_v55  ;;  %1589 = vmatpush.bf16.msra.mxu3 %v5017_v37 }
 0x318   :  { %1546 = vmatpush.bf16.msra.mxu0 %v5071_v58  ;;  %1564 = vmatmul.bf16.vlgmr.msra.gmra.mxu1 %v1404_v26 }
 0x319   :  { %1632 = vmatpush.bf16.msrb.mxu1 %v5070_v25  ;;  %1658 = vmatpush.bf16.msrb.mxu3 %v5019_v57 }
 0x31a   :  { %1572 = vmatpush.bf16.msra.mxu2 %v5072_v42  ;;  %1590 = vmatmul.bf16.vlgmr.msra.gmra.mxu3 %v1404_v26 }
 0x31b   :  { %1466 = vmatmul.bf16.vlgmr.msrb.gmra.mxu0 %v1404_v26  ;;  %1492 = vmatmul.bf16.vlgmr.msrb.gmra.mxu2 %v1404_v26 }
 0x31c   :  { %1547 = vmatpush.bf16.msra.mxu0 %v4969_v18 }
 0x31d   :  { %1633 = vmatpush.bf16.msrb.mxu1 %v5020_v54  ;;  %1659 = vmatpush.bf16.msrb.mxu3 %v5021_v34 }
 0x31e   :  { %1573 = vmatpush.bf16.msra.mxu2 %v4970_v29 }
 0x320   :  { %1548 = vmatpush.bf16.msra.mxu0 %v5073_v44 }
 0x321   :  { %1634 = vmatpush.bf16.msrb.mxu1 %v5022_v51  ;;  %1660 = vmatpush.bf16.msrb.mxu3 %v5023_v59 }
 0x322   :  { %1574 = vmatpush.bf16.msra.mxu2 %v5074_v0 }
 0x324   :  { %1549 = vmatpush.bf16.msra.mxu0 %v5077_v19  ;;  %v5204_v19 = vld [vmem:[#allocation101_spill] sm:$0xff] }
 0x325   :  { %1635 = vmatpush.bf16.msrb.mxu1 %v5075_v23  ;;  %1661 = vmatpush.bf16.msrb.mxu3 %v5076_v43 }
 0x326   :  { %1575 = vmatpush.bf16.msra.mxu2 %v5143_v14 }
 0x328   :  { %1550 = vmatpush.bf16.msra.mxu0 %v5145_v45 }
 0x329   :  { %1636 = vmatpush.bf16.msrb.mxu1 %v5144_v61  ;;  %1662 = vmatpush.bf16.msrb.mxu3 %v5146_v3 }
 0x32a   :  { %1576 = vmatpush.bf16.msra.mxu2 %v5147_v21  ;;  %v4196_v21 = vld [vmem:[#allocation7 + $0x8] sm:$0xff] }
 0x32b   :  { %1551 = vmatmul.bf16.vlgmr.msra.gmra.mxu0 %v1404_v26  ;;  %5203 = vst [vmem:[#allocation13_spill] sm:$0xff] %v4196_v21 }
 0x32c   :  { %1619 = vmatpush.bf16.msrb.mxu0 %v5148_v2 }
 0x32d   :  { %1637 = vmatpush.bf16.msrb.mxu1 %v5150_v60  ;;  %1577 = vmatmul.bf16.vlgmr.msra.gmra.mxu2 %v1404_v26  ;;  %v5161_v26 = vld [vmem:[#allocation59_spill] sm:$0xff] }
 0x32e   :  { %1645 = vmatpush.bf16.msrb.mxu2 %v5149_v15  ;;  %1663 = vmatpush.bf16.msrb.mxu3 %v5151_v13  ;;  %v4193_v15 = vld [vmem:[#allocation7] sm:$0xff] }
 0x32f   :  { %5202 = vst [vmem:[#allocation12_spill] sm:$0xff] %v4193_v15 }
 0x330   :  { %1620 = vmatpush.bf16.msrb.mxu0 %v5152_v49  ;;  %v5163_v49 = vld [vmem:[#allocation69_spill] sm:$0xff] }
 0x331   :  { %1638 = vmatpush.bf16.msrb.mxu1 %v5154_v39  ;;  %v5165_v39 = vld [vmem:[#allocation61_spill] sm:$0xff] }
 0x332   :  { %1646 = vmatpush.bf16.msrb.mxu2 %v5153_v62  ;;  %1664 = vmatpush.bf16.msrb.mxu3 %v5155_v12  ;;  %v5164_v62 = vld [vmem:[#allocation60_spill] sm:$0xff] }
 0x333   :  { %v5166_v12 = vld [vmem:[#allocation72_spill] sm:$0xff] }
 0x334   :  { %1621 = vmatpush.bf16.msrb.mxu0 %v5156_v63  ;;  %v5167_v63 = vld [vmem:[#allocation73_spill] sm:$0xff] }
 0x335   :  { %1639 = vmatpush.bf16.msrb.mxu1 %v5158_v50  ;;  %v5169_v50 = vld [vmem:[#allocation63_spill] sm:$0xff] }
 0x336   :  { %1647 = vmatpush.bf16.msrb.mxu2 %v5157_v11  ;;  %1665 = vmatpush.bf16.msrb.mxu3 %v5160_v33  ;;  %v5168_v11 = vld [vmem:[#allocation62_spill] sm:$0xff]  ;;  %v5171_v33 = vld [vmem:[#allocation77_spill] sm:$0xff] }
 0x338   :  { %1622 = vmatpush.bf16.msrb.mxu0 %v5162_v47  ;;  %v5173_v47 = vld [vmem:[#allocation67_spill] sm:$0xff] }
 0x339   :  { %1684 = vmatpush.bf16.msra.mxu1 %v5159_v24  ;;  %v5170_v24 = vld [vmem:[#allocation76_spill] sm:$0xff] }
 0x33a   :  { %1710 = vmatpush.bf16.msra.mxu3 %v5161_v26  ;;  %1648 = vmatpush.bf16.msrb.mxu2 %v5163_v49  ;;  %v5172_v26 = vld [vmem:[#allocation66_spill] sm:$0xff]  ;;  %v5174_v49 = vld [vmem:[#allocation80_spill] sm:$0xff] }
 0x33c   :  { %1623 = vmatpush.bf16.msrb.mxu0 %v5166_v12  ;;  %v5177_v12 = vld [vmem:[#allocation71_spill] sm:$0xff] }
 0x33d   :  { %1685 = vmatpush.bf16.msra.mxu1 %v5164_v62  ;;  %v5175_v62 = vld [vmem:[#allocation81_spill] sm:$0xff] }
 0x33e   :  { %1711 = vmatpush.bf16.msra.mxu3 %v5165_v39  ;;  %1649 = vmatpush.bf16.msrb.mxu2 %v5167_v63  ;;  %v5176_v39 = vld [vmem:[#allocation70_spill] sm:$0xff]  ;;  %v5178_v63 = vld [vmem:[#allocation84_spill] sm:$0xff] }
 0x340   :  { %1624 = vmatpush.bf16.msrb.mxu0 %v5170_v24  ;;  %v5181_v24 = vld [vmem:[#allocation87_spill] sm:$0xff] }
 0x341   :  { %1686 = vmatpush.bf16.msra.mxu1 %v5168_v11  ;;  %v5179_v11 = vld [vmem:[#allocation85_spill] sm:$0xff] }
 0x342   :  { %1712 = vmatpush.bf16.msra.mxu3 %v5169_v50  ;;  %1650 = vmatpush.bf16.msrb.mxu2 %v5171_v33  ;;  %v5180_v50 = vld [vmem:[#allocation86_spill] sm:$0xff] }
 0x343   :  { %v5182_v33 = vld [vmem:[#allocation74_spill] sm:$0xff] }
 0x344   :  { %1625 = vmatpush.bf16.msrb.mxu0 %v5174_v49  ;;  %v5185_v49 = vld [vmem:[#allocation89_spill] sm:$0xff] }
 0x345   :  { %1687 = vmatpush.bf16.msra.mxu1 %v5172_v26  ;;  %v5183_v26 = vld [vmem:[#allocation75_spill] sm:$0xff] }
 0x346   :  { %1713 = vmatpush.bf16.msra.mxu3 %v5173_v47  ;;  %1651 = vmatpush.bf16.msrb.mxu2 %v5175_v62  ;;  %v5184_v47 = vld [vmem:[#allocation88_spill] sm:$0xff]  ;;  %v5186_v62 = vld [vmem:[#allocation78_spill] sm:$0xff] }
 0x348   :  { %1626 = vmatpush.bf16.msrb.mxu0 %v5178_v63  ;;  %v5189_v63 = vld [vmem:[#allocation91_spill] sm:$0xff] }
 0x349   :  { %1688 = vmatpush.bf16.msra.mxu1 %v5176_v39  ;;  %v5187_v39 = vld [vmem:[#allocation79_spill] sm:$0xff] }
 0x34a   :  { %1714 = vmatpush.bf16.msra.mxu3 %v5177_v12  ;;  %1652 = vmatpush.bf16.msrb.mxu2 %v5179_v11  ;;  %v5188_v12 = vld [vmem:[#allocation90_spill] sm:$0xff] }
 0x34b   :  { %v5190_v11 = vld [vmem:[#allocation82_spill] sm:$0xff] }
 0x34c   :  { %1671 = vmatpush.bf16.msra.mxu0 %v5180_v50  ;;  %v5191_v50 = vld [vmem:[#allocation83_spill] sm:$0xff] }
 0x34d   :  { %1689 = vmatpush.bf16.msra.mxu1 %v5182_v33  ;;  %v5193_v33 = vld [vmem:[#allocation93_spill] sm:$0xff] }
 0x34e   :  { %1697 = vmatpush.bf16.msra.mxu2 %v5181_v24  ;;  %1715 = vmatpush.bf16.msra.mxu3 %v5183_v26  ;;  %v5192_v24 = vld [vmem:[#allocation92_spill] sm:$0xff]  ;;  %v5194_v26 = vld [vmem:[#allocation94_spill] sm:$0xff] }
 0x350   :  { %1672 = vmatpush.bf16.msra.mxu0 %v5184_v47  ;;  %v5195_v47 = vld [vmem:[#allocation95_spill] sm:$0xff] }
 0x351   :  { %1690 = vmatpush.bf16.msra.mxu1 %v5186_v62  ;;  %v5197_v62 = vld [vmem:[#allocation99_spill] sm:$0xff] }
 0x352   :  { %1698 = vmatpush.bf16.msra.mxu2 %v5185_v49  ;;  %1716 = vmatpush.bf16.msra.mxu3 %v5187_v39  ;;  %v5196_v49 = vld [vmem:[#allocation98_spill] sm:$0xff] }
 0x353   :  { %v5198_v39 = vld [vmem:[#allocation102_spill] sm:$0xff] }
 0x354   :  { %1673 = vmatpush.bf16.msra.mxu0 %v5188_v12  ;;  %v5199_v12 = vld [vmem:[#allocation103_spill] sm:$0xff] }
 0x355   :  { %1691 = vmatpush.bf16.msra.mxu1 %v5190_v11  ;;  %v5201_v11 = vld [vmem:[#allocation105_spill] sm:$0xff] }
 0x356   :  { %1699 = vmatpush.bf16.msra.mxu2 %v5189_v63  ;;  %1717 = vmatpush.bf16.msra.mxu3 %v5191_v50  ;;  %v5200_v63 = vld [vmem:[#allocation104_spill] sm:$0xff] }
 0x358   :  { %1674 = vmatpush.bf16.msra.mxu0 %v5192_v24 }
 0x35a   :  { %1700 = vmatpush.bf16.msra.mxu2 %v5193_v33 }
 0x35c   :  { %1675 = vmatpush.bf16.msra.mxu0 %v5194_v26 }
 0x35e   :  { %1701 = vmatpush.bf16.msra.mxu2 %v5195_v47 }
 0x360   :  { %1676 = vmatpush.bf16.msra.mxu0 %v5196_v49 }
 0x362   :  { %1702 = vmatpush.bf16.msra.mxu2 %v5197_v62 }
 0x364   :  { %1677 = vmatpush.bf16.msra.mxu0 %v5198_v39 }
 0x366   :  { %1703 = vmatpush.bf16.msra.mxu2 %v5199_v12 }
 0x368   :  { %1678 = vmatpush.bf16.msra.mxu0 %v5200_v63 }
 0x36a   :  { %1704 = vmatpush.bf16.msra.mxu2 %v5201_v11 }
 0x375   :  { %v1428_v50 = vpop.f32.mrf.mxu1 }
 0x37b   :  { %v1454_v24 = vpop.f32.mrf.mxu3 }
 0x37d   :  { %v1430_v13 = vpop.f32.mrf.mxu1 }
 0x383   :  { %v1456_v33 = vpop.f32.mrf.mxu3 }
 0x384   :  { %v1533_v33 = vpop.permute.xlu2 %1532 }
 0x385   :  { %v1480_v60 = vpop.f32.mrf.mxu1 }
 0x388   :  { %v1415_v26 = vpop.f32.mrf.mxu0 }
 0x389   :  { %v1416_v49 = vadd.f32 %v4193_v15, %v1415_v26  ;;  %v1536_v26 = vmul.f32 %v5204_v19, %v1533_v33 }
 0x38b   :  { %v1506_v47 = vpop.f32.mrf.mxu3  ;;  %v1429_v62 = vadd.f32 %v1428_v50, %v1416_v49  ;;  %v4200_v49 = vld [vmem:[#allocation7 + $0x10] sm:$0xff] }
 0x38c   :  { %5205 = vst [vmem:[#allocation14_spill] sm:$0xff] %v4200_v49 }
 0x38d   :  { %v1482_v2 = vpop.f32.mrf.mxu1  ;;  %v1510_v12 = vmul.f32 0.5, %v1429_v62  ;;  %v1540_v62 = vadd.f32 %v4052_v38, %v1536_v26 }
 0x38e   :  { %v1441_v39 = vpop.f32.mrf.mxu2 }
 0x38f   :  { %v1442_v63 = vadd.f32 %v4196_v21, %v1441_v39  ;;  %3075 = vtanh.f32 %v1510_v12 }
 0x390   :  { %v1417_v11 = vpop.f32.mrf.mxu0 }
 0x391   :  { %v1455_v45 = vadd.f32 %v1454_v24, %v1442_v63 }
 0x393   :  { %v1508_v3 = vpop.f32.mrf.mxu3  ;;  %v1514_v13 = vmul.f32 0.5, %v1455_v45 }
 0x395   :  { %3077 = vtanh.f32 %v1514_v13  ;;  %v1565_v61 = vpop.f32.mrf.mxu1  ;;  %v3076_v50 = vpop.eup %3075 }
 0x396   :  { %v1443_v14 = vpop.f32.mrf.mxu2  ;;  %v1512_v12 = vmul.f32 0.5, %v3076_v50  ;;  %v1596_v24 = vadd.f32 %v1565_v61, %v1540_v62  ;;  %v1538_v50 = vmul.f32 %v4068_v32, %v1533_v33  ;;  %v5206_v61 = vld [vmem:[#allocation96_spill] sm:$0xff] }
 0x397   :  { %v4204_v14 = vld [vmem:[#allocation7 + $0x18] sm:$0xff] }
 0x398   :  { %v1467_v15 = vpop.f32.mrf.mxu0  ;;  %v1603_v26 = vmul.f32 0.5, %v1596_v24 }
 0x399   :  { %v1468_v2 = vadd.f32 %v4200_v49, %v1467_v15  ;;  %v1535_v15 = vmul.f32 %v4059_v52, %v1533_v33  ;;  %v1513_v49 = vadd.f32 0.5, %v1512_v12 }
 0x39b   :  { %v3078_v43 = vpop.eup %3077  ;;  %v1481_v39 = vadd.f32 %v1480_v60, %v1468_v2  ;;  %v1539_v62 = vadd.f32 %v5206_v61, %v1535_v15 }
 0x39c   :  { %v1516_v63 = vmul.f32 0.5, %v3078_v43 }
 0x39d   :  { %v1591_v3 = vpop.f32.mrf.mxu3  ;;  %3079 = vtanh.f32 %v1481_v39  ;;  %v1567_v45 = vpop.f32.mrf.mxu1 }
 0x39e   :  { %v1493_v11 = vpop.f32.mrf.mxu2  ;;  %v1517_v19 = vadd.f32 0.5, %v1516_v63 }
 0x39f   :  { %v1494_v13 = vadd.f32 %v4204_v14, %v1493_v11 }
 0x3a0   :  { %v1469_v21 = vpop.f32.mrf.mxu0  ;;  %v1523_v43 = vmul.f32 %v1517_v19, %v4063_v10 }
 0x3a1   :  { %v1507_v23 = vadd.f32 %v1506_v47, %v1494_v13  ;;  %v1542_v47 = vadd.f32 %v4081_v36, %v1538_v50 }
 0x3a3   :  { %v3080_v0 = vpop.eup %3079  ;;  %v1519_v60 = vmul.f32 0.5, %v1507_v23  ;;  %v5207_v23 = vld [vmem:[#allocation100_spill] sm:$0xff]  ;;  %v1598_v24 = vadd.f32 %v1591_v3, %v1542_v47 }
 0x3a4   :  { %v1524_v2 = vmul.f32 %v3080_v0, %v1513_v49  ;;  %v1537_v11 = vmul.f32 %v5207_v23, %v1533_v33 }
 0x3a5   :  { %v1593_v39 = vpop.f32.mrf.mxu3  ;;  %3081 = vtanh.f32 %v1519_v60  ;;  %v1608_v61 = vmul.f32 0.5, %v1598_v24 }
 0x3a6   :  { %v4211_v45 = vadd.f32 %v1524_v2, %v1523_v43  ;;  %v1495_v63 = vpop.f32.mrf.mxu2  ;;  %3083 = vtanh.f32 %v1603_v26  ;;  %v1541_v60 = vadd.f32 %v4084_v20, %v1537_v11 }
 0x3a8   :  { %3085 = vtanh.f32 %v4211_v45  ;;  %v1552_v21 = vpop.f32.mrf.mxu0 }
 0x3a9   :  { %v1595_v12 = vadd.f32 %v1552_v21, %v1539_v62 }
 0x3ab   :  { %v3082_v19 = vpop.eup %3081  ;;  %v1599_v0 = vmul.f32 0.5, %v1595_v12 }
 0x3ac   :  { %v1521_v10 = vmul.f32 0.5, %v3082_v19  ;;  %v3084_v49 = vpop.eup %3083 }
 0x3ad   :  { %3087 = vtanh.f32 %v1599_v0  ;;  %v1605_v63 = vmul.f32 0.5, %v3084_v49 }
 0x3ae   :  { %v3086_v13 = vpop.eup %3085  ;;  %v1522_v15 = vadd.f32 0.5, %v1521_v10 }
 0x3af   :  { %v1606_v21 = vadd.f32 0.5, %v1605_v63  ;;  %v5214_v63 = vld [vmem:[#allocation51_spill] sm:$0xff] }
 0x3b0   :  { %v1578_v43 = vpop.f32.mrf.mxu2  ;;  %v1527_v26 = vmul.f32 %v3086_v13, %v1522_v15  ;;  %v1554_v39 = vpop.f32.mrf.mxu0  ;;  %v5208_v15 = vld [vmem:[#allocation28_spill] sm:$0xff] }
 0x3b1   :  { %v1597_v2 = vadd.f32 %v1578_v43, %v1541_v60  ;;  %v1612_v11 = vmul.f32 %v1606_v21, %v4092_v5  ;;  %v5209_v60 = vld [vmem:[#allocation48_spill] sm:$0xff]  ;;  %v5210_v43 = vld [vmem:[#allocation49_spill] sm:$0xff]  ;;  %v5213_v39 = vld [vmem:[#allocation50_spill] sm:$0xff] }
 0x3b2   :  { %v1618_v50 = vpack.c.bf16 %v1527_v26, %v1527_v26  ;;  %v5211_v26 = vld [vmem:[#allocation30_spill] sm:$0xff] }
 0x3b3   :  { %3089 = vtanh.f32 %v1597_v2  ;;  %v3088_v62 = vpop.eup %3087  ;;  %v5212_v2 = vld [vmem:[#allocation32_spill] sm:$0xff]  ;;  %v5218_v21 = vld [vmem:[#allocation42_spill] sm:$0xff] }
 0x3b4   :  { %v1601_v33 = vmul.f32 0.5, %v3088_v62  ;;  %1640 = vmatmul.bf16.vlgmr.msrb.gmra.mxu1 %v1618_v50  ;;  %1666 = vmatmul.bf16.vlgmr.msrb.gmra.mxu3 %v1618_v50  ;;  %3091 = vtanh.f32 %v1608_v61  ;;  %v5216_v62 = vld [vmem:[#allocation36_spill] sm:$0xff] }
 0x3b5   :  { %1769 = vmatpush.bf16.msrb.mxu1 %v5002_v28  ;;  %1795 = vmatpush.bf16.msrb.mxu3 %v5003_v40 }
 0x3b6   :  { %v1602_v3 = vadd.f32 0.5, %v1601_v33  ;;  %v5217_v33 = vld [vmem:[#allocation41_spill] sm:$0xff] }
 0x3b8   :  { %v1580_v47 = vpop.f32.mrf.mxu2 }
 0x3b9   :  { %v3090_v12 = vpop.eup %3089  ;;  %1770 = vmatpush.bf16.msrb.mxu1 %v5004_v16  ;;  %1796 = vmatpush.bf16.msrb.mxu3 %v5005_v48  ;;  %v5220_v47 = vld [vmem:[#allocation53_spill] sm:$0xff] }
 0x3ba   :  { %v1613_v19 = vmul.f32 %v3090_v12, %v1602_v3  ;;  %v3092_v0 = vpop.eup %3091  ;;  %v5219_v3 = vld [vmem:[#allocation52_spill] sm:$0xff]  ;;  %v5221_v12 = vld [vmem:[#allocation45_spill] sm:$0xff] }
 0x3bb   :  { %v1610_v61 = vmul.f32 0.5, %v3092_v0  ;;  %v5224_v0 = vld [vmem:[#allocation55_spill] sm:$0xff] }
 0x3bc   :  { %v4222_v10 = vadd.f32 %v1613_v19, %v1612_v11  ;;  %v5222_v11 = vld [vmem:[#allocation46_spill] sm:$0xff] }
 0x3bd   :  { %1771 = vmatpush.bf16.msrb.mxu1 %v5006_v7  ;;  %1797 = vmatpush.bf16.msrb.mxu3 %v5007_v31  ;;  %v1611_v5 = vadd.f32 0.5, %v1610_v61  ;;  %v5223_v19 = vld [vmem:[#allocation54_spill] sm:$0xff]  ;;  %v5225_v61 = vld [vmem:[#allocation64_spill] sm:$0xff] }
 0x3be   :  { %3093 = vtanh.f32 %v4222_v10 }
 0x3c1   :  { %1772 = vmatpush.bf16.msrb.mxu1 %v5008_v8  ;;  %1798 = vmatpush.bf16.msrb.mxu3 %v5009_v6 }
 0x3c4   :  { %v3094_v49 = vpop.eup %3093  ;;  %1692 = vmatmul.bf16.vlgmr.msra.gmra.mxu1 %v1618_v50  ;;  %1718 = vmatmul.bf16.vlgmr.msra.gmra.mxu3 %v1618_v50  ;;  %v5215_v50 = vld [vmem:[#allocation34_spill] sm:$0xff] }
 0x3c5   :  { %v1616_v24 = vmul.f32 %v3094_v49, %v1611_v5  ;;  %1773 = vmatpush.bf16.msrb.mxu1 %v5010_v56  ;;  %1799 = vmatpush.bf16.msrb.mxu3 %v5011_v27  ;;  %v5226_v5 = vld [vmem:[#allocation65_spill] sm:$0xff]  ;;  %v5227_v49 = vld [vmem:[#allocation56_spill] sm:$0xff] }
 0x3c7   :  { %v1617_v13 = vpack.c.bf16 %v1616_v24, %v1616_v24  ;;  %v5228_v24 = vld [vmem:[#allocation58_spill] sm:$0xff] }
 0x3c9   :  { %1627 = vmatmul.bf16.vlgmr.msrb.gmra.mxu0 %v1617_v13  ;;  %1653 = vmatmul.bf16.vlgmr.msrb.gmra.mxu2 %v1617_v13 }
 0x3ca   :  { %1756 = vmatpush.bf16.msrb.mxu0 %v3359_v4  ;;  %1782 = vmatpush.bf16.msrb.mxu2 %v3363_v9 }
 0x3cb   :  { %1774 = vmatpush.bf16.msrb.mxu1 %v5012_v46  ;;  %1800 = vmatpush.bf16.msrb.mxu3 %v5013_v1 }
 0x3ce   :  { %1757 = vmatpush.bf16.msrb.mxu0 %v3370_v17  ;;  %1783 = vmatpush.bf16.msrb.mxu2 %v3375_v22 }
 0x3cf   :  { %1775 = vmatpush.bf16.msrb.mxu1 %v5014_v53  ;;  %1801 = vmatpush.bf16.msrb.mxu3 %v5015_v41 }
 0x3d2   :  { %1758 = vmatpush.bf16.msrb.mxu0 %v3380_v30  ;;  %1784 = vmatpush.bf16.msrb.mxu2 %v3386_v35 }
 0x3d3   :  { %1776 = vmatpush.bf16.msrb.mxu1 %v5016_v55  ;;  %1802 = vmatpush.bf16.msrb.mxu3 %v5017_v37 }
 0x3d6   :  { %1759 = vmatpush.bf16.msrb.mxu0 %v5071_v58  ;;  %1777 = vmatmul.bf16.vlgmr.msrb.gmra.mxu1 %v1617_v13 }
 0x3d7   :  { %1845 = vmatpush.bf16.msra.mxu1 %v5070_v25  ;;  %1871 = vmatpush.bf16.msra.mxu3 %v5019_v57 }
 0x3d8   :  { %1785 = vmatpush.bf16.msrb.mxu2 %v5072_v42  ;;  %1803 = vmatmul.bf16.vlgmr.msrb.gmra.mxu3 %v1617_v13 }
 0x3d9   :  { %1679 = vmatmul.bf16.vlgmr.msra.gmra.mxu0 %v1617_v13  ;;  %1705 = vmatmul.bf16.vlgmr.msra.gmra.mxu2 %v1617_v13 }
 0x3da   :  { %1760 = vmatpush.bf16.msrb.mxu0 %v4969_v18 }
 0x3db   :  { %1846 = vmatpush.bf16.msra.mxu1 %v5020_v54  ;;  %1872 = vmatpush.bf16.msra.mxu3 %v5021_v34 }
 0x3dc   :  { %1786 = vmatpush.bf16.msrb.mxu2 %v4970_v29 }
 0x3de   :  { %1761 = vmatpush.bf16.msrb.mxu0 %v5073_v44 }
 0x3df   :  { %1847 = vmatpush.bf16.msra.mxu1 %v5022_v51  ;;  %1873 = vmatpush.bf16.msra.mxu3 %v5023_v59 }
 0x3e0   :  { %1787 = vmatpush.bf16.msrb.mxu2 %v5208_v15  ;;  %v5273_v15 = vld [vmem:[#allocation101_spill] sm:$0xff] }
 0x3e2   :  { %1762 = vmatpush.bf16.msrb.mxu0 %v5211_v26 }
 0x3e3   :  { %1848 = vmatpush.bf16.msra.mxu1 %v5209_v60  ;;  %1874 = vmatpush.bf16.msra.mxu3 %v5210_v43 }
 0x3e4   :  { %1788 = vmatpush.bf16.msrb.mxu2 %v5212_v2 }
 0x3e6   :  { %1763 = vmatpush.bf16.msrb.mxu0 %v5215_v50 }
 0x3e7   :  { %1849 = vmatpush.bf16.msra.mxu1 %v5213_v39  ;;  %1875 = vmatpush.bf16.msra.mxu3 %v5214_v63  ;;  %v5272_v39 = vld [vmem:[#allocation13_spill] sm:$0xff] }
 0x3e8   :  { %1789 = vmatpush.bf16.msrb.mxu2 %v5216_v62  ;;  %v5271_v62 = vld [vmem:[#allocation12_spill] sm:$0xff] }
 0x3e9   :  { %1764 = vmatmul.bf16.vlgmr.msrb.gmra.mxu0 %v1617_v13 }
 0x3ea   :  { %1832 = vmatpush.bf16.msra.mxu0 %v5217_v33 }
 0x3eb   :  { %1850 = vmatpush.bf16.msra.mxu1 %v5219_v3  ;;  %1876 = vmatpush.bf16.msra.mxu3 %v5220_v47  ;;  %v5229_v3 = vld [vmem:[#allocation57_spill] sm:$0xff]  ;;  %v5230_v47 = vld [vmem:[#allocation59_spill] sm:$0xff] }
 0x3ec   :  { %1858 = vmatpush.bf16.msra.mxu2 %v5218_v21 }
 0x3ed   :  { %1790 = vmatmul.bf16.vlgmr.msrb.gmra.mxu2 %v1617_v13  ;;  %v5231_v13 = vld [vmem:[#allocation68_spill] sm:$0xff] }
 0x3ee   :  { %1833 = vmatpush.bf16.msra.mxu0 %v5221_v12  ;;  %v5232_v12 = vld [vmem:[#allocation69_spill] sm:$0xff] }
 0x3ef   :  { %1851 = vmatpush.bf16.msra.mxu1 %v5223_v19  ;;  %1877 = vmatpush.bf16.msra.mxu3 %v5224_v0  ;;  %v5234_v19 = vld [vmem:[#allocation61_spill] sm:$0xff]  ;;  %v5235_v0 = vld [vmem:[#allocation72_spill] sm:$0xff] }
 0x3f0   :  { %1859 = vmatpush.bf16.msra.mxu2 %v5222_v11  ;;  %v5233_v11 = vld [vmem:[#allocation60_spill] sm:$0xff] }
 0x3f2   :  { %1834 = vmatpush.bf16.msra.mxu0 %v5225_v61  ;;  %v5236_v61 = vld [vmem:[#allocation73_spill] sm:$0xff] }
 0x3f3   :  { %1852 = vmatpush.bf16.msra.mxu1 %v5227_v49  ;;  %1878 = vmatpush.bf16.msra.mxu3 %v5228_v24  ;;  %v5238_v49 = vld [vmem:[#allocation63_spill] sm:$0xff]  ;;  %v5239_v24 = vld [vmem:[#allocation76_spill] sm:$0xff] }
 0x3f4   :  { %1860 = vmatpush.bf16.msra.mxu2 %v5226_v5  ;;  %v5237_v5 = vld [vmem:[#allocation62_spill] sm:$0xff] }
 0x3f6   :  { %1835 = vmatpush.bf16.msra.mxu0 %v5231_v13  ;;  %v5242_v13 = vld [vmem:[#allocation67_spill] sm:$0xff] }
 0x3f7   :  { %1897 = vmatpush.bf16.msrb.mxu1 %v5229_v3  ;;  %1923 = vmatpush.bf16.msrb.mxu3 %v5230_v47  ;;  %v5240_v3 = vld [vmem:[#allocation77_spill] sm:$0xff]  ;;  %v5241_v47 = vld [vmem:[#allocation66_spill] sm:$0xff] }
 0x3f8   :  { %1861 = vmatpush.bf16.msra.mxu2 %v5232_v12  ;;  %v5243_v12 = vld [vmem:[#allocation80_spill] sm:$0xff] }
 0x3fa   :  { %1836 = vmatpush.bf16.msra.mxu0 %v5235_v0  ;;  %v5246_v0 = vld [vmem:[#allocation71_spill] sm:$0xff] }
 0x3fb   :  { %1898 = vmatpush.bf16.msrb.mxu1 %v5233_v11  ;;  %1924 = vmatpush.bf16.msrb.mxu3 %v5234_v19  ;;  %v5244_v11 = vld [vmem:[#allocation81_spill] sm:$0xff]  ;;  %v5245_v19 = vld [vmem:[#allocation70_spill] sm:$0xff] }
 0x3fc   :  { %1862 = vmatpush.bf16.msra.mxu2 %v5236_v61  ;;  %v5247_v61 = vld [vmem:[#allocation84_spill] sm:$0xff] }
 0x3fe   :  { %1837 = vmatpush.bf16.msra.mxu0 %v5239_v24  ;;  %v5250_v24 = vld [vmem:[#allocation87_spill] sm:$0xff] }
 0x3ff   :  { %1899 = vmatpush.bf16.msrb.mxu1 %v5237_v5  ;;  %1925 = vmatpush.bf16.msrb.mxu3 %v5238_v49  ;;  %v5248_v5 = vld [vmem:[#allocation85_spill] sm:$0xff]  ;;  %v5249_v49 = vld [vmem:[#allocation86_spill] sm:$0xff] }
 0x400   :  { %1863 = vmatpush.bf16.msra.mxu2 %v5240_v3  ;;  %v5251_v3 = vld [vmem:[#allocation74_spill] sm:$0xff] }
 0x402   :  { %1838 = vmatpush.bf16.msra.mxu0 %v5243_v12  ;;  %v5254_v12 = vld [vmem:[#allocation89_spill] sm:$0xff] }
 0x403   :  { %1900 = vmatpush.bf16.msrb.mxu1 %v5241_v47  ;;  %1926 = vmatpush.bf16.msrb.mxu3 %v5242_v13  ;;  %v5252_v47 = vld [vmem:[#allocation75_spill] sm:$0xff]  ;;  %v5253_v13 = vld [vmem:[#allocation88_spill] sm:$0xff] }
 0x404   :  { %1864 = vmatpush.bf16.msra.mxu2 %v5244_v11  ;;  %v5255_v11 = vld [vmem:[#allocation78_spill] sm:$0xff] }
 0x406   :  { %1839 = vmatpush.bf16.msra.mxu0 %v5247_v61  ;;  %v5258_v61 = vld [vmem:[#allocation91_spill] sm:$0xff] }
 0x407   :  { %1901 = vmatpush.bf16.msrb.mxu1 %v5245_v19  ;;  %1927 = vmatpush.bf16.msrb.mxu3 %v5246_v0  ;;  %v5256_v19 = vld [vmem:[#allocation79_spill] sm:$0xff]  ;;  %v5257_v0 = vld [vmem:[#allocation90_spill] sm:$0xff] }
 0x408   :  { %1865 = vmatpush.bf16.msra.mxu2 %v5248_v5  ;;  %v5259_v5 = vld [vmem:[#allocation82_spill] sm:$0xff] }
 0x40a   :  { %1884 = vmatpush.bf16.msrb.mxu0 %v5249_v49  ;;  %v5260_v49 = vld [vmem:[#allocation83_spill] sm:$0xff] }
 0x40b   :  { %1902 = vmatpush.bf16.msrb.mxu1 %v5251_v3  ;;  %1928 = vmatpush.bf16.msrb.mxu3 %v5252_v47  ;;  %v5262_v3 = vld [vmem:[#allocation93_spill] sm:$0xff]  ;;  %v5263_v47 = vld [vmem:[#allocation94_spill] sm:$0xff] }
 0x40c   :  { %1910 = vmatpush.bf16.msrb.mxu2 %v5250_v24  ;;  %v5261_v24 = vld [vmem:[#allocation92_spill] sm:$0xff] }
 0x40e   :  { %1885 = vmatpush.bf16.msrb.mxu0 %v5253_v13  ;;  %v5264_v13 = vld [vmem:[#allocation95_spill] sm:$0xff] }
 0x40f   :  { %1903 = vmatpush.bf16.msrb.mxu1 %v5255_v11  ;;  %1929 = vmatpush.bf16.msrb.mxu3 %v5256_v19  ;;  %v5266_v11 = vld [vmem:[#allocation99_spill] sm:$0xff]  ;;  %v5267_v19 = vld [vmem:[#allocation102_spill] sm:$0xff] }
 0x410   :  { %1911 = vmatpush.bf16.msrb.mxu2 %v5254_v12  ;;  %v5265_v12 = vld [vmem:[#allocation98_spill] sm:$0xff] }
 0x412   :  { %1886 = vmatpush.bf16.msrb.mxu0 %v5257_v0  ;;  %v5268_v0 = vld [vmem:[#allocation103_spill] sm:$0xff] }
 0x413   :  { %1904 = vmatpush.bf16.msrb.mxu1 %v5259_v5  ;;  %1930 = vmatpush.bf16.msrb.mxu3 %v5260_v49  ;;  %v5270_v5 = vld [vmem:[#allocation105_spill] sm:$0xff] }
 0x414   :  { %1912 = vmatpush.bf16.msrb.mxu2 %v5258_v61  ;;  %v5269_v61 = vld [vmem:[#allocation104_spill] sm:$0xff] }
 0x416   :  { %1887 = vmatpush.bf16.msrb.mxu0 %v5261_v24 }
 0x418   :  { %1913 = vmatpush.bf16.msrb.mxu2 %v5262_v3 }
 0x41a   :  { %1888 = vmatpush.bf16.msrb.mxu0 %v5263_v47 }
 0x41c   :  { %1914 = vmatpush.bf16.msrb.mxu2 %v5264_v13 }
 0x41e   :  { %1889 = vmatpush.bf16.msrb.mxu0 %v5265_v12 }
 0x420   :  { %1915 = vmatpush.bf16.msrb.mxu2 %v5266_v11 }
 0x422   :  { %1890 = vmatpush.bf16.msrb.mxu0 %v5267_v19 }
 0x424   :  { %1916 = vmatpush.bf16.msrb.mxu2 %v5268_v0 }
 0x426   :  { %1891 = vmatpush.bf16.msrb.mxu0 %v5269_v61 }
 0x428   :  { %1917 = vmatpush.bf16.msrb.mxu2 %v5270_v5 }
 0x431   :  { %v1641_v49 = vpop.f32.mrf.mxu1 }
 0x437   :  { %v1667_v24 = vpop.f32.mrf.mxu3 }
 0x439   :  { %v1643_v21 = vpop.f32.mrf.mxu1 }
 0x43a   :  { %v1746_v21 = vpop.permute.xlu2 %1745 }
 0x43b   :  { %v1749_v44 = vmul.f32 %v5273_v15, %v1746_v21 }
 0x43f   :  { %v1669_v3 = vpop.f32.mrf.mxu3 }
 0x441   :  { %v1693_v33 = vpop.f32.mrf.mxu1 }
 0x446   :  { %v1628_v47 = vpop.f32.mrf.mxu0 }
 0x447   :  { %v1629_v13 = vadd.f32 %v5271_v62, %v1628_v47  ;;  %v1719_v50 = vpop.f32.mrf.mxu3  ;;  %v5274_v47 = vld [vmem:[#allocation14_spill] sm:$0xff] }
 0x449   :  { %v1642_v12 = vadd.f32 %v1641_v49, %v1629_v13  ;;  %v1695_v63 = vpop.f32.mrf.mxu1 }
 0x44b   :  { %v1723_v2 = vmul.f32 0.5, %v1642_v12  ;;  %v1753_v12 = vadd.f32 %v4052_v38, %v1749_v44 }
 0x44c   :  { %v1654_v11 = vpop.f32.mrf.mxu2 }
 0x44d   :  { %v1655_v19 = vadd.f32 %v5272_v39, %v1654_v11  ;;  %3095 = vtanh.f32 %v1723_v2 }
 0x44e   :  { %v1630_v0 = vpop.f32.mrf.mxu0 }
 0x44f   :  { %v1668_v26 = vadd.f32 %v1667_v24, %v1655_v19  ;;  %v1721_v61 = vpop.f32.mrf.mxu3 }
 0x451   :  { %v1727_v43 = vmul.f32 0.5, %v1668_v26 }
 0x453   :  { %3097 = vtanh.f32 %v1727_v43  ;;  %v1778_v5 = vpop.f32.mrf.mxu1  ;;  %v3096_v49 = vpop.eup %3095 }
 0x454   :  { %v1656_v3 = vpop.f32.mrf.mxu2  ;;  %v1725_v26 = vmul.f32 0.5, %v3096_v49  ;;  %v1809_v43 = vadd.f32 %v1778_v5, %v1753_v12  ;;  %v1751_v5 = vmul.f32 %v4068_v32, %v1746_v21 }
 0x456   :  { %v1680_v60 = vpop.f32.mrf.mxu0  ;;  %v1726_v15 = vadd.f32 0.5, %v1725_v26 }
 0x457   :  { %v1681_v62 = vadd.f32 %v5274_v47, %v1680_v60  ;;  %v1748_v60 = vmul.f32 %v4059_v52, %v1746_v21  ;;  %v1816_v47 = vmul.f32 0.5, %v1809_v43  ;;  %v1750_v52 = vmul.f32 %v5207_v23, %v1746_v21 }
 0x459   :  { %v3098_v63 = vpop.eup %3097  ;;  %v1694_v13 = vadd.f32 %v1693_v33, %v1681_v62  ;;  %v1754_v32 = vadd.f32 %v4084_v20, %v1750_v52 }
 0x45a   :  { %v1729_v59 = vmul.f32 0.5, %v3098_v63 }
 0x45b   :  { %v1804_v11 = vpop.f32.mrf.mxu3  ;;  %3099 = vtanh.f32 %v1694_v13  ;;  %v1780_v19 = vpop.f32.mrf.mxu1 }
 0x45c   :  { %v1706_v2 = vpop.f32.mrf.mxu2  ;;  %v1730_v61 = vadd.f32 0.5, %v1729_v59  ;;  %v5275_v59 = vld [vmem:[#allocation96_spill] sm:$0xff] }
 0x45d   :  { %v1707_v0 = vadd.f32 %v4204_v14, %v1706_v2  ;;  %v1752_v13 = vadd.f32 %v5275_v59, %v1748_v60 }
 0x45e   :  { %v1682_v24 = vpop.f32.mrf.mxu0  ;;  %v1736_v33 = vmul.f32 %v1730_v61, %v4211_v45  ;;  %v1755_v45 = vadd.f32 %v4081_v36, %v1751_v5 }
 0x45f   :  { %v1720_v3 = vadd.f32 %v1719_v50, %v1707_v0 }
 0x460   :  { %v1811_v43 = vadd.f32 %v1804_v11, %v1755_v45  ;;  %v5277_v45 = vld [vmem:[#allocation26_spill] sm:$0xff] }
 0x461   :  { %v3100_v39 = vpop.eup %3099  ;;  %v1732_v62 = vmul.f32 0.5, %v1720_v3 }
 0x462   :  { %v1737_v63 = vmul.f32 %v3100_v39, %v1726_v15 }
 0x463   :  { %v1806_v44 = vpop.f32.mrf.mxu3  ;;  %3101 = vtanh.f32 %v1732_v62  ;;  %v1821_v62 = vmul.f32 0.5, %v1811_v43  ;;  %v5281_v43 = vld [vmem:[#allocation30_spill] sm:$0xff] }
 0x464   :  { %v4325_v38 = vadd.f32 %v1737_v63, %v1736_v33  ;;  %v1708_v49 = vpop.f32.mrf.mxu2  ;;  %3103 = vtanh.f32 %v1816_v47 }
 0x466   :  { %3105 = vtanh.f32 %v4325_v38  ;;  %v1765_v50 = vpop.f32.mrf.mxu0 }
 0x467   :  { %v1808_v12 = vadd.f32 %v1765_v50, %v1752_v13 }
 0x469   :  { %v3102_v19 = vpop.eup %3101  ;;  %v1812_v39 = vmul.f32 0.5, %v1808_v12 }
 0x46a   :  { %v1734_v26 = vmul.f32 0.5, %v3102_v19  ;;  %v3104_v2 = vpop.eup %3103  ;;  %v5276_v19 = vld [vmem:[#allocation47_spill] sm:$0xff] }
 0x46b   :  { %3107 = vtanh.f32 %v1812_v39  ;;  %v1818_v60 = vmul.f32 0.5, %v3104_v2  ;;  %v5278_v39 = vld [vmem:[#allocation28_spill] sm:$0xff]  ;;  %v5280_v2 = vld [vmem:[#allocation49_spill] sm:$0xff] }
 0x46c   :  { %v3106_v0 = vpop.eup %3105  ;;  %v1735_v61 = vadd.f32 0.5, %v1734_v26  ;;  %v5279_v26 = vld [vmem:[#allocation48_spill] sm:$0xff] }
 0x46d   :  { %v1819_v36 = vadd.f32 0.5, %v1818_v60  ;;  %v5289_v60 = vld [vmem:[#allocation52_spill] sm:$0xff] }
 0x46e   :  { %v1740_v24 = vmul.f32 %v3106_v0, %v1735_v61  ;;  %v1767_v15 = vpop.f32.mrf.mxu0  ;;  %v5282_v0 = vld [vmem:[#allocation32_spill] sm:$0xff]  ;;  %v5283_v61 = vld [vmem:[#allocation50_spill] sm:$0xff] }
 0x46f   :  { %v1825_v44 = vmul.f32 %v1819_v36, %v4222_v10  ;;  %v5288_v15 = vld [vmem:[#allocation42_spill] sm:$0xff]  ;;  %v5294_v36 = vld [vmem:[#allocation55_spill] sm:$0xff] }
 0x470   :  { %v1791_v47 = vpop.f32.mrf.mxu2  ;;  %v1831_v33 = vpack.c.bf16 %v1740_v24, %v1740_v24  ;;  %v5286_v24 = vld [vmem:[#allocation36_spill] sm:$0xff] }
 0x471   :  { %v1810_v3 = vadd.f32 %v1791_v47, %v1754_v32  ;;  %v3108_v23 = vpop.eup %3107  ;;  %v5284_v32 = vld [vmem:[#allocation51_spill] sm:$0xff]  ;;  %v5285_v47 = vld [vmem:[#allocation34_spill] sm:$0xff] }
 0x472   :  { %v1814_v21 = vmul.f32 0.5, %v3108_v23  ;;  %1853 = vmatmul.bf16.vlgmr.msra.gmra.mxu1 %v1831_v33  ;;  %1879 = vmatmul.bf16.vlgmr.msra.gmra.mxu3 %v1831_v33  ;;  %v5292_v23 = vld [vmem:[#allocation46_spill] sm:$0xff] }
 0x473   :  { %3109 = vtanh.f32 %v1810_v3  ;;  %1982 = vmatpush.bf16.msra.mxu1 %v5002_v28  ;;  %2008 = vmatpush.bf16.msra.mxu3 %v5003_v40  ;;  %v5287_v3 = vld [vmem:[#allocation41_spill] sm:$0xff] }
 0x474   :  { %3111 = vtanh.f32 %v1821_v62  ;;  %v1815_v11 = vadd.f32 0.5, %v1814_v21  ;;  %v5290_v62 = vld [vmem:[#allocation53_spill] sm:$0xff]  ;;  %v5293_v21 = vld [vmem:[#allocation54_spill] sm:$0xff] }
 0x477   :  { %1983 = vmatpush.bf16.msra.mxu1 %v5004_v16  ;;  %2009 = vmatpush.bf16.msra.mxu3 %v5005_v48 }
 0x478   :  { %v1793_v20 = vpop.f32.mrf.mxu2 }
 0x479   :  { %v3110_v63 = vpop.eup %3109  ;;  %v5296_v20 = vld [vmem:[#allocation65_spill] sm:$0xff] }
 0x47a   :  { %v1826_v49 = vmul.f32 %v3110_v63, %v1815_v11  ;;  %v3112_v5 = vpop.eup %3111  ;;  %v5295_v11 = vld [vmem:[#allocation64_spill] sm:$0xff] }
 0x47b   :  { %1984 = vmatpush.bf16.msra.mxu1 %v5006_v7  ;;  %2010 = vmatpush.bf16.msra.mxu3 %v5007_v31  ;;  %v1823_v13 = vmul.f32 0.5, %v3112_v5  ;;  %v5297_v63 = vld [vmem:[#allocation56_spill] sm:$0xff]  ;;  %v5300_v5 = vld [vmem:[#allocation59_spill] sm:$0xff] }
 0x47c   :  { %v4338_v59 = vadd.f32 %v1826_v49, %v1825_v44  ;;  %v5298_v44 = vld [vmem:[#allocation58_spill] sm:$0xff]  ;;  %v5299_v49 = vld [vmem:[#allocation57_spill] sm:$0xff] }
 0x47d   :  { %v1824_v10 = vadd.f32 0.5, %v1823_v13  ;;  %v5301_v13 = vld [vmem:[#allocation68_spill] sm:$0xff] }
 0x47e   :  { %3113 = vtanh.f32 %v4338_v59 }
 0x47f   :  { %1985 = vmatpush.bf16.msra.mxu1 %v5008_v8  ;;  %2011 = vmatpush.bf16.msra.mxu3 %v5009_v6 }
 0x482   :  { %1905 = vmatmul.bf16.vlgmr.msrb.gmra.mxu1 %v1831_v33  ;;  %1931 = vmatmul.bf16.vlgmr.msrb.gmra.mxu3 %v1831_v33  ;;  %v5291_v33 = vld [vmem:[#allocation45_spill] sm:$0xff] }
 0x483   :  { %1986 = vmatpush.bf16.msra.mxu1 %v5010_v56  ;;  %2012 = vmatpush.bf16.msra.mxu3 %v5011_v27 }
 0x484   :  { %v3114_v50 = vpop.eup %3113 }
 0x485   :  { %v1829_v12 = vmul.f32 %v3114_v50, %v1824_v10  ;;  %v5302_v10 = vld [vmem:[#allocation69_spill] sm:$0xff]  ;;  %v5303_v50 = vld [vmem:[#allocation60_spill] sm:$0xff] }
 0x487   :  { %v1830_v52 = vpack.c.bf16 %v1829_v12, %v1829_v12  ;;  %1987 = vmatpush.bf16.msra.mxu1 %v5012_v46  ;;  %2013 = vmatpush.bf16.msra.mxu3 %v5013_v1  ;;  %v5304_v12 = vld [vmem:[#allocation61_spill] sm:$0xff] }
 0x489   :  { %1840 = vmatmul.bf16.vlgmr.msra.gmra.mxu0 %v1830_v52  ;;  %1866 = vmatmul.bf16.vlgmr.msra.gmra.mxu2 %v1830_v52 }
 0x48a   :  { %1969 = vmatpush.bf16.msra.mxu0 %v3359_v4  ;;  %1995 = vmatpush.bf16.msra.mxu2 %v3363_v9 }
 0x48b   :  { %1988 = vmatpush.bf16.msra.mxu1 %v5014_v53  ;;  %2014 = vmatpush.bf16.msra.mxu3 %v5015_v41 }
 0x48e   :  { %1970 = vmatpush.bf16.msra.mxu0 %v3370_v17  ;;  %1996 = vmatpush.bf16.msra.mxu2 %v3375_v22 }
 0x48f   :  { %1989 = vmatpush.bf16.msra.mxu1 %v5016_v55  ;;  %2015 = vmatpush.bf16.msra.mxu3 %v5017_v37 }
 0x492   :  { %1971 = vmatpush.bf16.msra.mxu0 %v3380_v30  ;;  %1997 = vmatpush.bf16.msra.mxu2 %v3386_v35 }
 0x493   :  { %2058 = vmatpush.bf16.msrb.mxu1 %v5070_v25  ;;  %2084 = vmatpush.bf16.msrb.mxu3 %v5019_v57 }
 0x494   :  { %1990 = vmatmul.bf16.vlgmr.msra.gmra.mxu1 %v1830_v52  ;;  %2016 = vmatmul.bf16.vlgmr.msra.gmra.mxu3 %v1830_v52 }
 0x496   :  { %1972 = vmatpush.bf16.msra.mxu0 %v5071_v58  ;;  %1998 = vmatpush.bf16.msra.mxu2 %v5072_v42 }
 0x497   :  { %2059 = vmatpush.bf16.msrb.mxu1 %v5020_v54  ;;  %2085 = vmatpush.bf16.msrb.mxu3 %v5021_v34 }
 0x499   :  { %1892 = vmatmul.bf16.vlgmr.msrb.gmra.mxu0 %v1830_v52  ;;  %1918 = vmatmul.bf16.vlgmr.msrb.gmra.mxu2 %v1830_v52 }
 0x49a   :  { %1973 = vmatpush.bf16.msra.mxu0 %v4969_v18  ;;  %1999 = vmatpush.bf16.msra.mxu2 %v4970_v29 }
 0x49b   :  { %2060 = vmatpush.bf16.msrb.mxu1 %v5022_v51  ;;  %2086 = vmatpush.bf16.msrb.mxu3 %v5276_v19 }
 0x49e   :  { %1974 = vmatpush.bf16.msra.mxu0 %v5277_v45  ;;  %2000 = vmatpush.bf16.msra.mxu2 %v5278_v39 }
 0x49f   :  { %2061 = vmatpush.bf16.msrb.mxu1 %v5279_v26  ;;  %2087 = vmatpush.bf16.msrb.mxu3 %v5280_v2 }
 0x4a2   :  { %1975 = vmatpush.bf16.msra.mxu0 %v5281_v43  ;;  %2001 = vmatpush.bf16.msra.mxu2 %v5282_v0 }
 0x4a3   :  { %2062 = vmatpush.bf16.msrb.mxu1 %v5283_v61  ;;  %2088 = vmatpush.bf16.msrb.mxu3 %v5284_v32 }
 0x4a6   :  { %1976 = vmatpush.bf16.msra.mxu0 %v5285_v47  ;;  %2002 = vmatpush.bf16.msra.mxu2 %v5286_v24 }
 0x4a7   :  { %2063 = vmatpush.bf16.msrb.mxu1 %v5289_v60  ;;  %2089 = vmatpush.bf16.msrb.mxu3 %v5290_v62  ;;  %v5342_v60 = vld [vmem:[#allocation13_spill] sm:$0xff] }
 0x4a9   :  { %1977 = vmatmul.bf16.vlgmr.msra.gmra.mxu0 %v1830_v52  ;;  %2003 = vmatmul.bf16.vlgmr.msra.gmra.mxu2 %v1830_v52  ;;  %v5305_v52 = vld [vmem:[#allocation72_spill] sm:$0xff] }
 0x4aa   :  { %2045 = vmatpush.bf16.msrb.mxu0 %v5287_v3  ;;  %2071 = vmatpush.bf16.msrb.mxu2 %v5288_v15 }
 0x4ab   :  { %2064 = vmatpush.bf16.msrb.mxu1 %v5293_v21  ;;  %2090 = vmatpush.bf16.msrb.mxu3 %v5294_v36 }
 0x4ae   :  { %2046 = vmatpush.bf16.msrb.mxu0 %v5291_v33  ;;  %2072 = vmatpush.bf16.msrb.mxu2 %v5292_v23  ;;  %v5341_v23 = vld [vmem:[#allocation12_spill] sm:$0xff] }
 0x4af   :  { %2065 = vmatpush.bf16.msrb.mxu1 %v5297_v63  ;;  %2091 = vmatpush.bf16.msrb.mxu3 %v5298_v44  ;;  %v5308_v63 = vld [vmem:[#allocation63_spill] sm:$0xff]  ;;  %v5309_v44 = vld [vmem:[#allocation76_spill] sm:$0xff] }
 0x4b2   :  { %2047 = vmatpush.bf16.msrb.mxu0 %v5295_v11  ;;  %2073 = vmatpush.bf16.msrb.mxu2 %v5296_v20  ;;  %v5306_v11 = vld [vmem:[#allocation73_spill] sm:$0xff]  ;;  %v5307_v20 = vld [vmem:[#allocation62_spill] sm:$0xff] }
 0x4b3   :  { %2110 = vmatpush.bf16.msra.mxu1 %v5299_v49  ;;  %2136 = vmatpush.bf16.msra.mxu3 %v5300_v5  ;;  %v5310_v49 = vld [vmem:[#allocation77_spill] sm:$0xff]  ;;  %v5311_v5 = vld [vmem:[#allocation66_spill] sm:$0xff] }
 0x4b6   :  { %2048 = vmatpush.bf16.msrb.mxu0 %v5301_v13  ;;  %2074 = vmatpush.bf16.msrb.mxu2 %v5302_v10  ;;  %v5312_v13 = vld [vmem:[#allocation67_spill] sm:$0xff]  ;;  %v5313_v10 = vld [vmem:[#allocation80_spill] sm:$0xff] }
 0x4b7   :  { %2111 = vmatpush.bf16.msra.mxu1 %v5303_v50  ;;  %2137 = vmatpush.bf16.msra.mxu3 %v5304_v12  ;;  %v5314_v50 = vld [vmem:[#allocation81_spill] sm:$0xff]  ;;  %v5315_v12 = vld [vmem:[#allocation70_spill] sm:$0xff] }
 0x4ba   :  { %2049 = vmatpush.bf16.msrb.mxu0 %v5305_v52  ;;  %2075 = vmatpush.bf16.msrb.mxu2 %v5306_v11  ;;  %v5316_v52 = vld [vmem:[#allocation71_spill] sm:$0xff]  ;;  %v5317_v11 = vld [vmem:[#allocation84_spill] sm:$0xff] }
 0x4bb   :  { %2112 = vmatpush.bf16.msra.mxu1 %v5307_v20  ;;  %2138 = vmatpush.bf16.msra.mxu3 %v5308_v63  ;;  %v5318_v20 = vld [vmem:[#allocation85_spill] sm:$0xff]  ;;  %v5319_v63 = vld [vmem:[#allocation86_spill] sm:$0xff] }
 0x4be   :  { %2050 = vmatpush.bf16.msrb.mxu0 %v5309_v44  ;;  %2076 = vmatpush.bf16.msrb.mxu2 %v5310_v49  ;;  %v5320_v44 = vld [vmem:[#allocation87_spill] sm:$0xff]  ;;  %v5321_v49 = vld [vmem:[#allocation74_spill] sm:$0xff] }
 0x4bf   :  { %2113 = vmatpush.bf16.msra.mxu1 %v5311_v5  ;;  %2139 = vmatpush.bf16.msra.mxu3 %v5312_v13  ;;  %v5322_v5 = vld [vmem:[#allocation75_spill] sm:$0xff]  ;;  %v5323_v13 = vld [vmem:[#allocation88_spill] sm:$0xff] }
 0x4c2   :  { %2051 = vmatpush.bf16.msrb.mxu0 %v5313_v10  ;;  %2077 = vmatpush.bf16.msrb.mxu2 %v5314_v50  ;;  %v5324_v10 = vld [vmem:[#allocation89_spill] sm:$0xff]  ;;  %v5325_v50 = vld [vmem:[#allocation78_spill] sm:$0xff] }
 0x4c3   :  { %2114 = vmatpush.bf16.msra.mxu1 %v5315_v12  ;;  %2140 = vmatpush.bf16.msra.mxu3 %v5316_v52  ;;  %v5326_v12 = vld [vmem:[#allocation79_spill] sm:$0xff]  ;;  %v5327_v52 = vld [vmem:[#allocation90_spill] sm:$0xff] }
 0x4c6   :  { %2052 = vmatpush.bf16.msrb.mxu0 %v5317_v11  ;;  %2078 = vmatpush.bf16.msrb.mxu2 %v5318_v20  ;;  %v5328_v11 = vld [vmem:[#allocation91_spill] sm:$0xff]  ;;  %v5329_v20 = vld [vmem:[#allocation82_spill] sm:$0xff] }
 0x4c7   :  { %2115 = vmatpush.bf16.msra.mxu1 %v5321_v49  ;;  %2141 = vmatpush.bf16.msra.mxu3 %v5322_v5  ;;  %v5332_v49 = vld [vmem:[#allocation93_spill] sm:$0xff]  ;;  %v5333_v5 = vld [vmem:[#allocation94_spill] sm:$0xff] }
 0x4ca   :  { %2097 = vmatpush.bf16.msra.mxu0 %v5319_v63  ;;  %2123 = vmatpush.bf16.msra.mxu2 %v5320_v44  ;;  %v5330_v63 = vld [vmem:[#allocation83_spill] sm:$0xff]  ;;  %v5331_v44 = vld [vmem:[#allocation92_spill] sm:$0xff] }
 0x4cb   :  { %2116 = vmatpush.bf16.msra.mxu1 %v5325_v50  ;;  %2142 = vmatpush.bf16.msra.mxu3 %v5326_v12  ;;  %v5336_v50 = vld [vmem:[#allocation99_spill] sm:$0xff]  ;;  %v5337_v12 = vld [vmem:[#allocation102_spill] sm:$0xff] }
 0x4ce   :  { %2098 = vmatpush.bf16.msra.mxu0 %v5323_v13  ;;  %2124 = vmatpush.bf16.msra.mxu2 %v5324_v10  ;;  %v5334_v13 = vld [vmem:[#allocation95_spill] sm:$0xff]  ;;  %v5335_v10 = vld [vmem:[#allocation98_spill] sm:$0xff] }
 0x4cf   :  { %2117 = vmatpush.bf16.msra.mxu1 %v5329_v20  ;;  %2143 = vmatpush.bf16.msra.mxu3 %v5330_v63  ;;  %v5340_v20 = vld [vmem:[#allocation105_spill] sm:$0xff] }
 0x4d2   :  { %2099 = vmatpush.bf16.msra.mxu0 %v5327_v52  ;;  %2125 = vmatpush.bf16.msra.mxu2 %v5328_v11  ;;  %v5338_v52 = vld [vmem:[#allocation103_spill] sm:$0xff]  ;;  %v5339_v11 = vld [vmem:[#allocation104_spill] sm:$0xff] }
 0x4d6   :  { %2100 = vmatpush.bf16.msra.mxu0 %v5331_v44  ;;  %2126 = vmatpush.bf16.msra.mxu2 %v5332_v49 }
 0x4da   :  { %2101 = vmatpush.bf16.msra.mxu0 %v5333_v5  ;;  %2127 = vmatpush.bf16.msra.mxu2 %v5334_v13 }
 0x4de   :  { %2102 = vmatpush.bf16.msra.mxu0 %v5335_v10  ;;  %2128 = vmatpush.bf16.msra.mxu2 %v5336_v50 }
 0x4e2   :  { %2103 = vmatpush.bf16.msra.mxu0 %v5337_v12  ;;  %2129 = vmatpush.bf16.msra.mxu2 %v5338_v52 }
 0x4e6   :  { %2104 = vmatpush.bf16.msra.mxu0 %v5339_v11  ;;  %2130 = vmatpush.bf16.msra.mxu2 %v5340_v20 }
 0x4ef   :  { %v1854_v63 = vpop.f32.mrf.mxu1 }
 0x4f5   :  { %v1880_v44 = vpop.f32.mrf.mxu3 }
 0x4f7   :  { %v1856_v36 = vpop.f32.mrf.mxu1 }
 0x4f8   :  { %v1959_v36 = vpop.permute.xlu0 %1958 }
 0x4fd   :  { %v1882_v49 = vpop.f32.mrf.mxu3 }
 0x4ff   :  { %v1906_v21 = vpop.f32.mrf.mxu1 }
 0x505   :  { %v1932_v33 = vpop.f32.mrf.mxu3 }
 0x506   :  { %v1841_v5 = vpop.f32.mrf.mxu0 }
 0x507   :  { %v1842_v13 = vadd.f32 %v5341_v23, %v1841_v5  ;;  %v1908_v62 = vpop.f32.mrf.mxu1  ;;  %v4438_v23 = vld [vmem:[%s4638_s1 + $0x8] sm:$0xff] }
 0x508   :  { %5343 = vst [vmem:[#allocation15_spill] sm:$0xff] %v4438_v23  ;;  %v1962_v62 = vmul.f32 %v4438_v23, %v1959_v36 }
 0x509   :  { %v1855_v10 = vadd.f32 %v1854_v63, %v1842_v13  ;;  %v5344_v63 = vld [vmem:[#allocation14_spill] sm:$0xff] }
 0x50b   :  { %v1936_v15 = vmul.f32 0.5, %v1855_v10 }
 0x50c   :  { %v1867_v50 = vpop.f32.mrf.mxu2 }
 0x50d   :  { %v1868_v12 = vadd.f32 %v5342_v60, %v1867_v50  ;;  %v1934_v11 = vpop.f32.mrf.mxu3  ;;  %3115 = vtanh.f32 %v1936_v15  ;;  %v4442_v15 = vld [vmem:[#allocation2 + $0x8] sm:$0xff] }
 0x50e   :  { %v1843_v52 = vpop.f32.mrf.mxu0 }
 0x50f   :  { %v1881_v3 = vadd.f32 %v1880_v44, %v1868_v12 }
 0x511   :  { %v1940_v24 = vmul.f32 0.5, %v1881_v3  ;;  %v1991_v20 = vpop.f32.mrf.mxu1 }
 0x513   :  { %3117 = vtanh.f32 %v1940_v24  ;;  %v3116_v5 = vpop.eup %3115  ;;  %v1966_v24 = vadd.f32 %v4442_v15, %v1962_v62 }
 0x514   :  { %v1869_v49 = vpop.f32.mrf.mxu2  ;;  %v1938_v50 = vmul.f32 0.5, %v3116_v5 }
 0x515   :  { %v2022_v52 = vadd.f32 %v1991_v20, %v1966_v24  ;;  %v4461_v24 = vld [vmem:[#allocation2] sm:$0xff] }
 0x516   :  { %v1893_v47 = vpop.f32.mrf.mxu0  ;;  %5346 = vst [vmem:[#allocation17_spill] sm:$0xff] %v4461_v24 }
 0x517   :  { %v1894_v60 = vadd.f32 %v5344_v63, %v1893_v47  ;;  %v2017_v3 = vpop.f32.mrf.mxu3  ;;  %v1939_v47 = vadd.f32 0.5, %v1938_v50  ;;  %v2029_v62 = vmul.f32 0.5, %v2022_v52  ;;  %v4471_v52 = vld [vmem:[#allocation2 + $0x18] sm:$0xff] }
 0x519   :  { %v3118_v13 = vpop.eup %3117  ;;  %v1907_v44 = vadd.f32 %v1906_v21, %v1894_v60  ;;  %v1993_v10 = vpop.f32.mrf.mxu1  ;;  %v4449_v21 = vld [vmem:[%s4638_s1] sm:$0xff] }
 0x51a   :  { %v1942_v11 = vmul.f32 0.5, %v3118_v13  ;;  %v1961_v60 = vmul.f32 %v4449_v21, %v1959_v36  ;;  %v4468_v10 = vld [vmem:[%s4638_s1 + $0x10] sm:$0xff] }
 0x51b   :  { %3119 = vtanh.f32 %v1907_v44  ;;  %5347 = vst [vmem:[#allocation19_spill] sm:$0xff] %v4468_v10  ;;  %v1963_v50 = vmul.f32 %v4468_v10, %v1959_v36 }
 0x51c   :  { %v1919_v12 = vpop.f32.mrf.mxu2  ;;  %v1943_v32 = vadd.f32 0.5, %v1942_v11 }
 0x51d   :  { %v1920_v49 = vadd.f32 %v4204_v14, %v1919_v12 }
 0x51e   :  { %v1895_v23 = vpop.f32.mrf.mxu0  ;;  %v1949_v5 = vmul.f32 %v1943_v32, %v4325_v38 }
 0x51f   :  { %v1933_v61 = vadd.f32 %v1932_v33, %v1920_v49  ;;  %v2019_v20 = vpop.f32.mrf.mxu3  ;;  %v4458_v33 = vld [vmem:[%s4638_s1 + $0x18] sm:$0xff] }
 0x520   :  { %5345 = vst [vmem:[#allocation16_spill] sm:$0xff] %v4458_v33  ;;  %v1964_v11 = vmul.f32 %v4458_v33, %v1959_v36 }
 0x521   :  { %v3120_v63 = vpop.eup %3119  ;;  %v1945_v13 = vmul.f32 0.5, %v1933_v61  ;;  %v1965_v61 = vadd.f32 %v4461_v24, %v1961_v60 }
 0x522   :  { %v1950_v44 = vmul.f32 %v3120_v63, %v1939_v47  ;;  %v1968_v49 = vadd.f32 %v4471_v52, %v1964_v11 }
 0x523   :  { %3121 = vtanh.f32 %v1945_v13 }
 0x524   :  { %v4453_v14 = vadd.f32 %v1950_v44, %v1949_v5  ;;  %v1921_v23 = vpop.f32.mrf.mxu2  ;;  %3123 = vtanh.f32 %v2029_v62  ;;  %v2024_v60 = vadd.f32 %v2017_v3, %v1968_v49  ;;  %v4474_v44 = vld [vmem:[#allocation2 + $0x10] sm:$0xff] }
 0x525   :  { %v1967_v20 = vadd.f32 %v4474_v44, %v1963_v50 }
 0x526   :  { %3125 = vtanh.f32 %v4453_v14  ;;  %v1978_v38 = vpop.f32.mrf.mxu0  ;;  %v2034_v24 = vmul.f32 0.5, %v2024_v60 }
 0x527   :  { %v2021_v32 = vadd.f32 %v1978_v38, %v1965_v61 }
 0x529   :  { %v3122_v12 = vpop.eup %3121  ;;  %v2025_v47 = vmul.f32 0.5, %v2021_v32 }
 0x52a   :  { %v1947_v63 = vmul.f32 0.5, %v3122_v12  ;;  %v3124_v62 = vpop.eup %3123 }
 0x52b   :  { %3127 = vtanh.f32 %v2025_v47  ;;  %v2031_v10 = vmul.f32 0.5, %v3124_v62 }
 0x52c   :  { %v3126_v13 = vpop.eup %3125  ;;  %v1948_v5 = vadd.f32 0.5, %v1947_v63  ;;  %v2004_v23 = vpop.f32.mrf.mxu2 }
 0x52d   :  { %v2023_v38 = vadd.f32 %v2004_v23, %v1967_v20  ;;  %v2032_v3 = vadd.f32 0.5, %v2031_v10  ;;  %v5384_v10 = vld [vmem:[#allocation86_spill] sm:$0xff]  ;;  %v5387_v20 = vld [vmem:[#allocation75_spill] sm:$0xff]  ;;  %v5388_v23 = vld [vmem:[#allocation88_spill] sm:$0xff] }
 0x52e   :  { %v1953_v61 = vmul.f32 %v3126_v13, %v1948_v5  ;;  %v1980_v36 = vpop.f32.mrf.mxu0  ;;  %v5385_v13 = vld [vmem:[#allocation87_spill] sm:$0xff]  ;;  %v5386_v5 = vld [vmem:[#allocation74_spill] sm:$0xff] }
 0x52f   :  { %3129 = vtanh.f32 %v2023_v38  ;;  %v2038_v47 = vmul.f32 %v2032_v3, %v4338_v59  ;;  %v5390_v38 = vld [vmem:[#allocation78_spill] sm:$0xff]  ;;  %v5391_v36 = vld [vmem:[#allocation79_spill] sm:$0xff] }
 0x530   :  { %v2044_v33 = vpack.c.bf16 %v1953_v61, %v1953_v61  ;;  %3131 = vtanh.f32 %v2034_v24  ;;  %v5389_v61 = vld [vmem:[#allocation89_spill] sm:$0xff]  ;;  %v5394_v3 = vld [vmem:[#allocation82_spill] sm:$0xff] }
 0x531   :  { %v3128_v11 = vpop.eup %3127 }
 0x532   :  { %v2027_v32 = vmul.f32 0.5, %v3128_v11  ;;  %2066 = vmatmul.bf16.vlgmr.msrb.gmra.mxu1 %v2044_v33  ;;  %2092 = vmatmul.bf16.vlgmr.msrb.gmra.mxu3 %v2044_v33  ;;  %v5392_v11 = vld [vmem:[#allocation90_spill] sm:$0xff] }
 0x533   :  { %2195 = vmatpush.bf16.msrb.mxu1 %v5002_v28  ;;  %2221 = vmatpush.bf16.msrb.mxu3 %v5003_v40 }
 0x534   :  { %v2028_v12 = vadd.f32 0.5, %v2027_v32  ;;  %v2006_v50 = vpop.f32.mrf.mxu2  ;;  %v5393_v32 = vld [vmem:[#allocation91_spill] sm:$0xff] }
 0x535   :  { %v3130_v49 = vpop.eup %3129  ;;  %v5396_v50 = vld [vmem:[#allocation92_spill] sm:$0xff] }
 0x536   :  { %v2039_v63 = vmul.f32 %v3130_v49, %v2028_v12  ;;  %v3132_v62 = vpop.eup %3131  ;;  %v5395_v12 = vld [vmem:[#allocation83_spill] sm:$0xff]  ;;  %v5397_v49 = vld [vmem:[#allocation93_spill] sm:$0xff] }
 0x537   :  { %2196 = vmatpush.bf16.msrb.mxu1 %v5004_v16  ;;  %2222 = vmatpush.bf16.msrb.mxu3 %v5005_v48  ;;  %v2036_v28 = vmul.f32 0.5, %v3132_v62  ;;  %v5356_v48 = vld [vmem:[#allocation45_spill] sm:$0xff]  ;;  %v5400_v62 = vld [vmem:[#allocation98_spill] sm:$0xff] }
 0x538   :  { %v4482_v60 = vadd.f32 %v2039_v63, %v2038_v47  ;;  %v5398_v47 = vld [vmem:[#allocation94_spill] sm:$0xff]  ;;  %v5399_v63 = vld [vmem:[#allocation95_spill] sm:$0xff] }
 0x539   :  { %v2037_v40 = vadd.f32 0.5, %v2036_v28  ;;  %v5401_v28 = vld [vmem:[#allocation99_spill] sm:$0xff] }
 0x53a   :  { %3133 = vtanh.f32 %v4482_v60 }
 0x53b   :  { %2197 = vmatpush.bf16.msrb.mxu1 %v5006_v7  ;;  %2223 = vmatpush.bf16.msrb.mxu3 %v5007_v31  ;;  %v5357_v7 = vld [vmem:[#allocation46_spill] sm:$0xff] }
 0x53c   :  { %v5358_v31 = vld [vmem:[#allocation54_spill] sm:$0xff] }
 0x53f   :  { %2198 = vmatpush.bf16.msrb.mxu1 %v5008_v8  ;;  %2224 = vmatpush.bf16.msrb.mxu3 %v5009_v6  ;;  %v5359_v8 = vld [vmem:[#allocation55_spill] sm:$0xff]  ;;  %v5360_v6 = vld [vmem:[#allocation64_spill] sm:$0xff] }
 0x540   :  { %v3134_v59 = vpop.eup %3133 }
 0x541   :  { %v2042_v24 = vmul.f32 %v3134_v59, %v2037_v40  ;;  %v5402_v40 = vld [vmem:[#allocation102_spill] sm:$0xff]  ;;  %v5403_v59 = vld [vmem:[#allocation103_spill] sm:$0xff] }
 0x542   :  { %2118 = vmatmul.bf16.vlgmr.msra.gmra.mxu1 %v2044_v33  ;;  %2144 = vmatmul.bf16.vlgmr.msra.gmra.mxu3 %v2044_v33  ;;  %v5383_v33 = vld [vmem:[#allocation85_spill] sm:$0xff] }
 0x543   :  { %2199 = vmatpush.bf16.msrb.mxu1 %v5010_v56  ;;  %2225 = vmatpush.bf16.msrb.mxu3 %v5011_v27  ;;  %v2043_v16 = vpack.c.bf16 %v2042_v24, %v2042_v24  ;;  %v5361_v56 = vld [vmem:[#allocation65_spill] sm:$0xff]  ;;  %v5362_v27 = vld [vmem:[#allocation56_spill] sm:$0xff] }
 0x544   :  { %v5404_v24 = vld [vmem:[#allocation104_spill] sm:$0xff] }
 0x545   :  { %2053 = vmatmul.bf16.vlgmr.msrb.gmra.mxu0 %v2043_v16  ;;  %2079 = vmatmul.bf16.vlgmr.msrb.gmra.mxu2 %v2043_v16 }
 0x546   :  { %2182 = vmatpush.bf16.msrb.mxu0 %v3359_v4  ;;  %2208 = vmatpush.bf16.msrb.mxu2 %v3363_v9  ;;  %v5348_v4 = vld [vmem:[#allocation50_spill] sm:$0xff]  ;;  %v5349_v9 = vld [vmem:[#allocation51_spill] sm:$0xff] }
 0x547   :  { %2200 = vmatpush.bf16.msrb.mxu1 %v5012_v46  ;;  %2226 = vmatpush.bf16.msrb.mxu3 %v5013_v1  ;;  %v5363_v46 = vld [vmem:[#allocation58_spill] sm:$0xff]  ;;  %v5364_v1 = vld [vmem:[#allocation57_spill] sm:$0xff] }
 0x54a   :  { %2183 = vmatpush.bf16.msrb.mxu0 %v3370_v17  ;;  %2209 = vmatpush.bf16.msrb.mxu2 %v3375_v22  ;;  %v5350_v17 = vld [vmem:[#allocation34_spill] sm:$0xff]  ;;  %v5351_v22 = vld [vmem:[#allocation36_spill] sm:$0xff] }
 0x54b   :  { %2201 = vmatpush.bf16.msrb.mxu1 %v5014_v53  ;;  %2227 = vmatpush.bf16.msrb.mxu3 %v5015_v41  ;;  %v5365_v53 = vld [vmem:[#allocation59_spill] sm:$0xff]  ;;  %v5366_v41 = vld [vmem:[#allocation68_spill] sm:$0xff] }
 0x54e   :  { %2184 = vmatpush.bf16.msrb.mxu0 %v3380_v30  ;;  %2210 = vmatpush.bf16.msrb.mxu2 %v3386_v35  ;;  %v5352_v30 = vld [vmem:[#allocation41_spill] sm:$0xff]  ;;  %v5353_v35 = vld [vmem:[#allocation42_spill] sm:$0xff] }
 0x54f   :  { %2202 = vmatpush.bf16.msrb.mxu1 %v5016_v55  ;;  %2228 = vmatpush.bf16.msrb.mxu3 %v5017_v37  ;;  %v5367_v55 = vld [vmem:[#allocation69_spill] sm:$0xff]  ;;  %v5368_v37 = vld [vmem:[#allocation60_spill] sm:$0xff] }
 0x552   :  { %2185 = vmatpush.bf16.msrb.mxu0 %v5071_v58  ;;  %2203 = vmatmul.bf16.vlgmr.msrb.gmra.mxu1 %v2043_v16  ;;  %v5374_v58 = vld [vmem:[#allocation76_spill] sm:$0xff] }
 0x553   :  { %2271 = vmatpush.bf16.msra.mxu1 %v5070_v25  ;;  %2297 = vmatpush.bf16.msra.mxu3 %v5019_v57  ;;  %v5369_v57 = vld [vmem:[#allocation61_spill] sm:$0xff]  ;;  %v5373_v25 = vld [vmem:[#allocation63_spill] sm:$0xff] }
 0x554   :  { %2211 = vmatpush.bf16.msrb.mxu2 %v5072_v42  ;;  %2229 = vmatmul.bf16.vlgmr.msrb.gmra.mxu3 %v2043_v16  ;;  %v5375_v42 = vld [vmem:[#allocation77_spill] sm:$0xff] }
 0x555   :  { %2105 = vmatmul.bf16.vlgmr.msra.gmra.mxu0 %v2043_v16  ;;  %2131 = vmatmul.bf16.vlgmr.msra.gmra.mxu2 %v2043_v16 }
 0x556   :  { %2186 = vmatpush.bf16.msrb.mxu0 %v4969_v18  ;;  %v5354_v18 = vld [vmem:[#allocation52_spill] sm:$0xff] }
 0x557   :  { %2272 = vmatpush.bf16.msra.mxu1 %v5020_v54  ;;  %2298 = vmatpush.bf16.msra.mxu3 %v5021_v34  ;;  %v5370_v54 = vld [vmem:[#allocation72_spill] sm:$0xff]  ;;  %v5371_v34 = vld [vmem:[#allocation73_spill] sm:$0xff] }
 0x558   :  { %2212 = vmatpush.bf16.msrb.mxu2 %v4970_v29  ;;  %v5355_v29 = vld [vmem:[#allocation53_spill] sm:$0xff] }
 0x55a   :  { %2187 = vmatpush.bf16.msrb.mxu0 %v5277_v45  ;;  %v5377_v45 = vld [vmem:[#allocation67_spill] sm:$0xff] }
 0x55b   :  { %2273 = vmatpush.bf16.msra.mxu1 %v5022_v51  ;;  %2299 = vmatpush.bf16.msra.mxu3 %v5276_v19  ;;  %v5372_v51 = vld [vmem:[#allocation62_spill] sm:$0xff] }
 0x55c   :  { %2213 = vmatpush.bf16.msrb.mxu2 %v5278_v39  ;;  %v5376_v19 = vld [vmem:[#allocation66_spill] sm:$0xff]  ;;  %v5378_v39 = vld [vmem:[#allocation80_spill] sm:$0xff] }
 0x55e   :  { %2188 = vmatpush.bf16.msrb.mxu0 %v5281_v43  ;;  %v5381_v43 = vld [vmem:[#allocation71_spill] sm:$0xff] }
 0x55f   :  { %2274 = vmatpush.bf16.msra.mxu1 %v5279_v26  ;;  %2300 = vmatpush.bf16.msra.mxu3 %v5280_v2  ;;  %v5379_v26 = vld [vmem:[#allocation81_spill] sm:$0xff]  ;;  %v5380_v2 = vld [vmem:[#allocation70_spill] sm:$0xff] }
 0x560   :  { %2214 = vmatpush.bf16.msrb.mxu2 %v5282_v0  ;;  %v5382_v0 = vld [vmem:[#allocation84_spill] sm:$0xff] }
 0x562   :  { %2189 = vmatpush.bf16.msrb.mxu0 %v5350_v17 }
 0x563   :  { %2275 = vmatpush.bf16.msra.mxu1 %v5348_v4  ;;  %2301 = vmatpush.bf16.msra.mxu3 %v5349_v9 }
 0x564   :  { %2215 = vmatpush.bf16.msrb.mxu2 %v5351_v22 }
 0x565   :  { %2190 = vmatmul.bf16.vlgmr.msrb.gmra.mxu0 %v2043_v16 }
 0x566   :  { %2258 = vmatpush.bf16.msra.mxu0 %v5352_v30 }
 0x567   :  { %2276 = vmatpush.bf16.msra.mxu1 %v5354_v18  ;;  %2302 = vmatpush.bf16.msra.mxu3 %v5355_v29  ;;  %v4577_v18 = vld [vmem:[#allocation7] sm:$0xff] }
 0x568   :  { %2284 = vmatpush.bf16.msra.mxu2 %v5353_v35 }
 0x569   :  { %2216 = vmatmul.bf16.vlgmr.msrb.gmra.mxu2 %v2043_v16  ;;  %v5405_v16 = vld [vmem:[#allocation105_spill] sm:$0xff] }
 0x56a   :  { %2259 = vmatpush.bf16.msra.mxu0 %v5356_v48 }
 0x56b   :  { %2277 = vmatpush.bf16.msra.mxu1 %v5358_v31  ;;  %2303 = vmatpush.bf16.msra.mxu3 %v5359_v8 }
 0x56c   :  { %2285 = vmatpush.bf16.msra.mxu2 %v5357_v7 }
 0x56e   :  { %2260 = vmatpush.bf16.msra.mxu0 %v5360_v6  ;;  %v4580_v6 = vld [vmem:[#allocation7 + $0x8] sm:$0xff] }
 0x56f   :  { %2278 = vmatpush.bf16.msra.mxu1 %v5362_v27  ;;  %2304 = vmatpush.bf16.msra.mxu3 %v5363_v46 }
 0x570   :  { %2286 = vmatpush.bf16.msra.mxu2 %v5361_v56 }
 0x572   :  { %2261 = vmatpush.bf16.msra.mxu0 %v5366_v41 }
 0x573   :  { %2323 = vmatpush.bf16.msrb.mxu1 %v5364_v1  ;;  %2349 = vmatpush.bf16.msrb.mxu3 %v5365_v53 }
 0x574   :  { %2287 = vmatpush.bf16.msra.mxu2 %v5367_v55 }
 0x576   :  { %2262 = vmatpush.bf16.msra.mxu0 %v5370_v54 }
 0x577   :  { %2324 = vmatpush.bf16.msrb.mxu1 %v5368_v37  ;;  %2350 = vmatpush.bf16.msrb.mxu3 %v5369_v57  ;;  %v2172_v37 = vpop.permute.xlu1 %2171 }
 0x578   :  { %2288 = vmatpush.bf16.msra.mxu2 %v5371_v34  ;;  %v5406_v34 = vld [vmem:[#allocation15_spill] sm:$0xff] }
 0x57a   :  { %2263 = vmatpush.bf16.msra.mxu0 %v5374_v58 }
 0x57b   :  { %2325 = vmatpush.bf16.msrb.mxu1 %v5372_v51  ;;  %2351 = vmatpush.bf16.msrb.mxu3 %v5373_v25  ;;  %v2175_v51 = vmul.f32 %v5406_v34, %v2172_v37  ;;  %v4584_v25 = vld [vmem:[#allocation7 + $0x10] sm:$0xff] }
 0x57c   :  { %2289 = vmatpush.bf16.msra.mxu2 %v5375_v42 }
 0x57e   :  { %2264 = vmatpush.bf16.msra.mxu0 %v5378_v39 }
 0x57f   :  { %2326 = vmatpush.bf16.msrb.mxu1 %v5376_v19  ;;  %2352 = vmatpush.bf16.msrb.mxu3 %v5377_v45 }
 0x580   :  { %2290 = vmatpush.bf16.msra.mxu2 %v5379_v26 }
 0x582   :  { %2265 = vmatpush.bf16.msra.mxu0 %v5382_v0 }
 0x583   :  { %2327 = vmatpush.bf16.msrb.mxu1 %v5380_v2  ;;  %2353 = vmatpush.bf16.msrb.mxu3 %v5381_v43  ;;  %v2179_v2 = vadd.f32 %v4442_v15, %v2175_v51 }
 0x584   :  { %2291 = vmatpush.bf16.msra.mxu2 %v5383_v33 }
 0x586   :  { %2310 = vmatpush.bf16.msrb.mxu0 %v5384_v10 }
 0x587   :  { %2328 = vmatpush.bf16.msrb.mxu1 %v5386_v5  ;;  %2354 = vmatpush.bf16.msrb.mxu3 %v5387_v20 }
 0x588   :  { %2336 = vmatpush.bf16.msrb.mxu2 %v5385_v13  ;;  %v4588_v13 = vld [vmem:[#allocation7 + $0x18] sm:$0xff] }
 0x58a   :  { %2311 = vmatpush.bf16.msrb.mxu0 %v5388_v23 }
 0x58b   :  { %2329 = vmatpush.bf16.msrb.mxu1 %v5390_v38  ;;  %2355 = vmatpush.bf16.msrb.mxu3 %v5391_v36 }
 0x58c   :  { %2337 = vmatpush.bf16.msrb.mxu2 %v5389_v61 }
 0x58e   :  { %2312 = vmatpush.bf16.msrb.mxu0 %v5392_v11  ;;  %v2174_v11 = vmul.f32 %v4449_v21, %v2172_v37  ;;  %v5409_v21 = vld [vmem:[#allocation19_spill] sm:$0xff] }
 0x58f   :  { %2330 = vmatpush.bf16.msrb.mxu1 %v5394_v3  ;;  %2356 = vmatpush.bf16.msrb.mxu3 %v5395_v12 }
 0x590   :  { %2338 = vmatpush.bf16.msrb.mxu2 %v5393_v32 }
 0x592   :  { %2313 = vmatpush.bf16.msrb.mxu0 %v5396_v50 }
 0x594   :  { %2339 = vmatpush.bf16.msrb.mxu2 %v5397_v49 }
 0x596   :  { %2314 = vmatpush.bf16.msrb.mxu0 %v5398_v47 }
 0x598   :  { %2340 = vmatpush.bf16.msrb.mxu2 %v5399_v63  ;;  %v5407_v63 = vld [vmem:[#allocation16_spill] sm:$0xff] }
 0x59a   :  { %2315 = vmatpush.bf16.msrb.mxu0 %v5400_v62  ;;  %v2177_v62 = vmul.f32 %v5407_v63, %v2172_v37 }
 0x59c   :  { %2341 = vmatpush.bf16.msrb.mxu2 %v5401_v28  ;;  %v5408_v28 = vld [vmem:[#allocation17_spill] sm:$0xff] }
 0x59e   :  { %2316 = vmatpush.bf16.msrb.mxu0 %v5402_v40  ;;  %v2178_v40 = vadd.f32 %v5408_v28, %v2174_v11 }
 0x5a0   :  { %2342 = vmatpush.bf16.msrb.mxu2 %v5403_v59 }
 0x5a2   :  { %2317 = vmatpush.bf16.msrb.mxu0 %v5404_v24 }
 0x5a4   :  { %2343 = vmatpush.bf16.msrb.mxu2 %v5405_v16  ;;  %v2176_v16 = vmul.f32 %v5409_v21, %v2172_v37 }
 0x5af   :  { %v2067_v4 = vpop.f32.mrf.mxu1 }
 0x5b5   :  { %v2093_v9 = vpop.f32.mrf.mxu3 }
 0x5b7   :  { %v2069_v17 = vpop.f32.mrf.mxu1 }
 0x5bd   :  { %v2095_v22 = vpop.f32.mrf.mxu3 }
 0x5bf   :  { %v2119_v30 = vpop.f32.mrf.mxu1 }
 0x5c2   :  { %v2054_v35 = vpop.f32.mrf.mxu0 }
 0x5c3   :  { %v2055_v29 = vadd.f32 %v4577_v18, %v2054_v35 }
 0x5c5   :  { %v2145_v48 = vpop.f32.mrf.mxu3  ;;  %v2068_v7 = vadd.f32 %v2067_v4, %v2055_v29 }
 0x5c7   :  { %v2121_v31 = vpop.f32.mrf.mxu1  ;;  %v2149_v27 = vmul.f32 0.5, %v2068_v7 }
 0x5c8   :  { %v2080_v8 = vpop.f32.mrf.mxu2 }
 0x5c9   :  { %v2081_v56 = vadd.f32 %v4580_v6, %v2080_v8  ;;  %3135 = vtanh.f32 %v2149_v27 }
 0x5ca   :  { %v2056_v46 = vpop.f32.mrf.mxu0 }
 0x5cb   :  { %v2094_v1 = vadd.f32 %v2093_v9, %v2081_v56 }
 0x5cd   :  { %v2147_v53 = vpop.f32.mrf.mxu3  ;;  %v2153_v41 = vmul.f32 0.5, %v2094_v1 }
 0x5cf   :  { %3137 = vtanh.f32 %v2153_v41  ;;  %v2204_v55 = vpop.f32.mrf.mxu1  ;;  %v3136_v42 = vpop.eup %3135 }
 0x5d0   :  { %v2082_v57 = vpop.f32.mrf.mxu2  ;;  %v2151_v0 = vmul.f32 0.5, %v3136_v42  ;;  %v2235_v10 = vadd.f32 %v2204_v55, %v2179_v2  ;;  %v2992_v2 = vld [vmem:[%s4643_s6 + $0x30] sm:$0xff] }
 0x5d2   :  { %v2106_v54 = vpop.f32.mrf.mxu0  ;;  %v2152_v38 = vadd.f32 0.5, %v2151_v0  ;;  %v2242_v32 = vmul.f32 0.5, %v2235_v10  ;;  %v2991_v0 = vld [vmem:[%s4643_s6 + $0x28] sm:$0xff]  ;;  %v2990_v10 = vld [vmem:[%s4643_s6 + $0x20] sm:$0xff] }
 0x5d3   :  { %v2107_v58 = vadd.f32 %v4584_v25, %v2106_v54 }
 0x5d5   :  { %v3138_v19 = vpop.eup %3137  ;;  %v2120_v45 = vadd.f32 %v2119_v30, %v2107_v58 }
 0x5d6   :  { %v2155_v39 = vmul.f32 0.5, %v3138_v19 }
 0x5d7   :  { %v2230_v26 = vpop.f32.mrf.mxu3  ;;  %3139 = vtanh.f32 %v2120_v45  ;;  %v2206_v43 = vpop.f32.mrf.mxu1 }
 0x5d8   :  { %v2132_v33 = vpop.f32.mrf.mxu2  ;;  %v2156_v20 = vadd.f32 0.5, %v2155_v39 }
 0x5d9   :  { %v2133_v5 = vadd.f32 %v4588_v13, %v2132_v33 }
 0x5da   :  { %v2108_v23 = vpop.f32.mrf.mxu0  ;;  %v2162_v15 = vmul.f32 %v2156_v20, %v4453_v14  ;;  %v2181_v14 = vadd.f32 %v4471_v52, %v2177_v62  ;;  %v2989_v20 = vld [vmem:[%s4643_s6 + $0x18] sm:$0xff] }
 0x5db   :  { %v2146_v61 = vadd.f32 %v2145_v48, %v2133_v5  ;;  %v2180_v48 = vadd.f32 %v4474_v44, %v2176_v16 }
 0x5dc   :  { %v2237_v30 = vadd.f32 %v2230_v26, %v2181_v14  ;;  %v2993_v26 = vld [vmem:[%s4643_s6 + $0x38] sm:$0xff] }
 0x5dd   :  { %v3140_v36 = vpop.eup %3139  ;;  %v2158_v3 = vmul.f32 0.5, %v2146_v61  ;;  %v2988_v61 = vld [vmem:[%s4643_s6 + $0x10] sm:$0xff] }
 0x5de   :  { %v2163_v12 = vmul.f32 %v3140_v36, %v2152_v38  ;;  %v2247_v46 = vmul.f32 0.5, %v2237_v30 }
 0x5df   :  { %v2232_v50 = vpop.f32.mrf.mxu3  ;;  %3141 = vtanh.f32 %v2158_v3 }
 0x5e0   :  { %v4593_v49 = vadd.f32 %v2163_v12, %v2162_v15  ;;  %v2134_v47 = vpop.f32.mrf.mxu2  ;;  %3143 = vtanh.f32 %v2242_v32  ;;  %v2987_v32 = vld [vmem:[%s4643_s6 + $0x8] sm:$0xff] }
 0x5e1   :  { %v2986_v47 = vld [vmem:[%s4643_s6] sm:$0xff] }
 0x5e2   :  { %3145 = vtanh.f32 %v4593_v49  ;;  %v2191_v59 = vpop.f32.mrf.mxu0 }
 0x5e3   :  { %v2234_v24 = vadd.f32 %v2191_v59, %v2178_v40 }
 0x5e5   :  { %v3142_v4 = vpop.eup %3141  ;;  %v2238_v9 = vmul.f32 0.5, %v2234_v24 }
 0x5e6   :  { %v2160_v17 = vmul.f32 0.5, %v3142_v4  ;;  %v3144_v22 = vpop.eup %3143 }
 0x5e7   :  { %3147 = vtanh.f32 %v2238_v9  ;;  %v2244_v27 = vmul.f32 0.5, %v3144_v22 }
 0x5e8   :  { %v3146_v35 = vpop.eup %3145  ;;  %v2161_v29 = vadd.f32 0.5, %v2160_v17 }
 0x5e9   :  { %v2245_v52 = vadd.f32 0.5, %v2244_v27 }
 0x5ea   :  { %v2166_v31 = vmul.f32 %v3146_v35, %v2161_v29  ;;  %v2193_v56 = vpop.f32.mrf.mxu0 }
 0x5eb   :  { %v2251_v54 = vmul.f32 %v2245_v52, %v4482_v60 }
 0x5ec   :  { %v2217_v7 = vpop.f32.mrf.mxu2  ;;  %v2257_v1 = vpack.c.bf16 %v2166_v31, %v2166_v31 }
 0x5ed   :  { %v2236_v8 = vadd.f32 %v2217_v7, %v2180_v48  ;;  %v3148_v53 = vpop.eup %3147 }
 0x5ee   :  { %v2240_v41 = vmul.f32 0.5, %v3148_v53  ;;  %2279 = vmatmul.bf16.vlgmr.msra.gmra.mxu1 %v2257_v1  ;;  %2305 = vmatmul.bf16.vlgmr.msra.gmra.mxu3 %v2257_v1 }
 0x5ef   :  { %3149 = vtanh.f32 %v2236_v8 }
 0x5f0   :  { %3151 = vtanh.f32 %v2247_v46  ;;  %v2241_v55 = vadd.f32 0.5, %v2240_v41 }
 0x5f4   :  { %v2219_v37 = vpop.f32.mrf.mxu2 }
 0x5f5   :  { %v3150_v57 = vpop.eup %3149 }
 0x5f6   :  { %v2252_v44 = vmul.f32 %v3150_v57, %v2241_v55  ;;  %v3152_v34 = vpop.eup %3151 }
 0x5f7   :  { %v2249_v58 = vmul.f32 0.5, %v3152_v34 }
 0x5f8   :  { %v2253_v51 = vadd.f32 %v2252_v44, %v2251_v54 }
 0x5f9   :  { %v2250_v42 = vadd.f32 0.5, %v2249_v58 }
 0x5fa   :  { %3153 = vtanh.f32 %v2253_v51 }
 0x5fe   :  { %2331 = vmatmul.bf16.vlgmr.msrb.gmra.mxu1 %v2257_v1  ;;  %2357 = vmatmul.bf16.vlgmr.msrb.gmra.mxu3 %v2257_v1 }
 0x600   :  { %v3154_v19 = vpop.eup %3153 }
 0x601   :  { %v2255_v45 = vmul.f32 %v3154_v19, %v2250_v42 }
 0x603   :  { %v2256_v39 = vpack.c.bf16 %v2255_v45, %v2255_v45 }
 0x605   :  { %2266 = vmatmul.bf16.vlgmr.msra.gmra.mxu0 %v2256_v39  ;;  %2292 = vmatmul.bf16.vlgmr.msra.gmra.mxu2 %v2256_v39 }
 0x606   :  { %2446 = vmatpush.bf16.msra.mxu0 %v2993_v26 }
 0x60a   :  { %2447 = vmatpush.bf16.msra.mxu0 %v2992_v2 }
 0x60e   :  { %2448 = vmatpush.bf16.msra.mxu0 %v2991_v0 }
 0x612   :  { %2449 = vmatpush.bf16.msra.mxu0 %v2990_v10 }
 0x615   :  { %2318 = vmatmul.bf16.vlgmr.msrb.gmra.mxu0 %v2256_v39  ;;  %2344 = vmatmul.bf16.vlgmr.msrb.gmra.mxu2 %v2256_v39 }
 0x616   :  { %2450 = vmatpush.bf16.msra.mxu0 %v2989_v20 }
 0x61a   :  { %2451 = vmatpush.bf16.msra.mxu0 %v2988_v61 }
 0x61e   :  { %2452 = vmatpush.bf16.msra.mxu0 %v2987_v32 }
 0x622   :  { %2453 = vmatpush.bf16.msra.mxu0 %v2986_v47 }
 0x66b   :  { %v2280_v60 = vpop.f32.mrf.mxu1 }
 0x671   :  { %v2306_v43 = vpop.f32.mrf.mxu3 }
 0x673   :  { %v2282_v33 = vpop.f32.mrf.mxu1 }
 0x679   :  { %v2308_v5 = vpop.f32.mrf.mxu3 }
 0x67b   :  { %v2332_v23 = vpop.f32.mrf.mxu1 }
 0x681   :  { %v2358_v11 = vpop.f32.mrf.mxu3 }
 0x682   :  { %v2267_v38 = vpop.f32.mrf.mxu0 }
 0x683   :  { %v2268_v36 = vadd.f32 %v4577_v18, %v2267_v38  ;;  %v2334_v15 = vpop.f32.mrf.mxu1 }
 0x685   :  { %v2281_v3 = vadd.f32 %v2280_v60, %v2268_v36 }
 0x687   :  { %v2362_v63 = vmul.f32 0.5, %v2281_v3 }
 0x688   :  { %v2293_v12 = vpop.f32.mrf.mxu2 }
 0x689   :  { %v2294_v50 = vadd.f32 %v4580_v6, %v2293_v12  ;;  %v2360_v18 = vpop.f32.mrf.mxu3  ;;  %3155 = vtanh.f32 %v2362_v63 }
 0x68a   :  { %v2269_v62 = vpop.f32.mrf.mxu0 }
 0x68b   :  { %v2307_v28 = vadd.f32 %v2306_v43, %v2294_v50 }
 0x68d   :  { %v2366_v40 = vmul.f32 0.5, %v2307_v28 }
 0x68f   :  { %3157 = vtanh.f32 %v2366_v40  ;;  %v3156_v16 = vpop.eup %3155 }
 0x690   :  { %v2295_v59 = vpop.f32.mrf.mxu2  ;;  %v2364_v9 = vmul.f32 0.5, %v3156_v16 }
 0x692   :  { %v2319_v24 = vpop.f32.mrf.mxu0  ;;  %v2365_v48 = vadd.f32 0.5, %v2364_v9 }
 0x693   :  { %v2320_v21 = vadd.f32 %v4584_v25, %v2319_v24 }
 0x695   :  { %v3158_v4 = vpop.eup %3157  ;;  %v2333_v14 = vadd.f32 %v2332_v23, %v2320_v21 }
 0x696   :  { %v2368_v6 = vmul.f32 0.5, %v3158_v4 }
 0x697   :  { %3159 = vtanh.f32 %v2333_v14 }
 0x698   :  { %v2345_v17 = vpop.f32.mrf.mxu2  ;;  %v2369_v30 = vadd.f32 0.5, %v2368_v6 }
 0x699   :  { %v2346_v22 = vadd.f32 %v4588_v13, %v2345_v17  ;;  %v2397_v13 = vld [vmem:[%s4644_s7] sm:$0xff] }
 0x69a   :  { %v2321_v35 = vpop.f32.mrf.mxu0  ;;  %v2375_v8 = vmul.f32 %v2369_v30, %v4593_v49 }
 0x69b   :  { %v2359_v29 = vadd.f32 %v2358_v11, %v2346_v22 }
 0x69d   :  { %v3160_v7 = vpop.eup %3159  ;;  %v2371_v31 = vmul.f32 0.5, %v2359_v29 }
 0x69e   :  { %v2376_v56 = vmul.f32 %v3160_v7, %v2365_v48 }
 0x69f   :  { %3161 = vtanh.f32 %v2371_v31 }
 0x6a0   :  { %v2377_v25 = vadd.f32 %v2376_v56, %v2375_v8  ;;  %v2347_v27 = vpop.f32.mrf.mxu2 }
 0x6a2   :  { %3163 = vtanh.f32 %v2377_v25 }
 0x6a5   :  { %v3162_v46 = vpop.eup %3161 }
 0x6a6   :  { %v2373_v1 = vmul.f32 0.5, %v3162_v46 }
 0x6a8   :  { %v3164_v53 = vpop.eup %3163  ;;  %v2374_v41 = vadd.f32 0.5, %v2373_v1 }
 0x6aa   :  { %v2379_v52 = vmul.f32 %v3164_v53, %v2374_v41 }
 0x6ac   :  { %v2380_v55 = vpack.c.bf16 %v2379_v52, %v2379_v52 }
 0x6ae   :  { %2454 = vmatmul.bf16.vlgmr.msra.gmra.mxu0 %v2380_v55 }
 0x72b   :  { %v2455_v37 = vpop.f32.mrf.mxu0 }
 0x72c   :  { %v2456_v57 = vadd.f32 %v2455_v37, %v2397_v13 }
 0x72e   :  { %2459 = vst [vmem:[%s4645_s8] sm:$0xff] %v2456_v57 }
 0x733   :  { %v2457_v49 = vpop.f32.mrf.mxu0 }
 0x734   :  { %2464 = vsyncpa [#allocation3], 1 }
 0x735   :  { %2465 = vsyncpa [#allocation5], 1 }
 0x736   :  { %2466 = vsyncpa [#allocation8], 1 }

</bundles_post_ra>
